<compile_context>
chip_gen: v6e
topology: v6e:2x2x1
jax: 0.10.0
libtpu: 0.0.40
codegen_flags: <defaults>
</compile_context>

<pallas_src>
import functools

import jax
import jax.numpy as jnp
from jax.experimental import pallas as pl
from jax.experimental.pallas import tpu as pltpu


# --------------------------------------------------------------------------------------
# Pallas kernel: tiled matmul with fused bias + activation (the conv hot path)
# --------------------------------------------------------------------------------------
def _matmul_bias_act_kernel(a_ref, b_ref, bias_ref, o_ref, *, act, slope):
    k = pl.program_id(1)

    @pl.when(k == 0)
    def _():
        o_ref[...] = jnp.zeros_like(o_ref)

    # bf16 x bf16 -> f32 accumulation directly into the (resident) output tile.
    o_ref[...] += jnp.dot(a_ref[...], b_ref[...], preferred_element_type=jnp.float32)

    @pl.when(k == pl.num_programs(1) - 1)
    def _():
        r = o_ref[...] + bias_ref[...]          # (tm, tn) + (1, tn) broadcast
        if act == "leaky_relu":
            r = jnp.where(r > 0, r, slope * r)
        elif act == "sigmoid":
            r = jax.nn.sigmoid(r)
        o_ref[...] = r


def matmul_bias_act(a, b, bias, act, slope=0.2):
    """(M,K) @ (K,N) + bias, then activation, fused inside one Pallas kernel.

    a    : (M, K) activations (streamed as bf16; M is small so one M block).
    b    : (K, N) weight panel, pre-cast to bf16; K < 128 (full block) or multiple of 128.
    bias : (1, N) f32.
    """
    M, K = a.shape
    Kb, N = b.shape
    assert K == Kb and bias.shape == (1, N)

    a = a.astype(jnp.bfloat16)

    tm = M                                        # whole M in one block (M <= few hundred)
    tk = min(K, 2048) if K % 128 == 0 else K      # full-dim block legal when K < 128
    tn = min(N, 256)                              # >=2 parallel N steps on the big layers
    assert K % tk == 0 and N % tn == 0

    grid = (N // tn, K // tk)                     # (parallel over N, reduction over K last)

    kernel = functools.partial(_matmul_bias_act_kernel, act=act, slope=slope)
    return pl.pallas_call(
        kernel,
        out_shape=jax.ShapeDtypeStruct((M, N), jnp.float32),
        grid_spec=pltpu.PrefetchScalarGridSpec(
            num_scalar_prefetch=0,
            grid=grid,
            in_specs=[
                pl.BlockSpec((tm, tk), lambda j, k: (0, k)),
                pl.BlockSpec((tk, tn), lambda j, k: (k, j)),
                pl.BlockSpec((1, tn), lambda j, k: (0, j)),
            ],
            out_specs=pl.BlockSpec((tm, tn), lambda j, k: (0, j)),
        ),
        compiler_params=pltpu.CompilerParams(
            dimension_semantics=("parallel", "arbitrary"),
        ),
    )(a, b, bias)


# --------------------------------------------------------------------------------------
# im2col glue (NHWC, pure slicing/reshape) + conv wrapper
# --------------------------------------------------------------------------------------
def _im2col_nhwc(x, kh, kw, stride, pad):
    """x: (N,H,W,C) -> ((N*OH*OW, kh*kw*C), OH, OW); K ordering = (kh, kw, C)."""
    x = jnp.pad(x, ((0, 0), (pad, pad), (pad, pad), (0, 0)))
    n, hp, wp, c = x.shape
    oh = (hp - kh) // stride + 1
    ow = (wp - kw) // stride + 1
    cols = []
    for i in range(kh):
        for j in range(kw):
            cols.append(x[:, i:i + stride * oh:stride, j:j + stride * ow:stride, :])
    patches = jnp.stack(cols, axis=3)                 # (N, OH, OW, kh*kw, C)
    return patches.reshape(n * oh * ow, kh * kw * c), oh, ow


def conv_nhwc(x, w_mat, bias, ksize, stride, pad, act, slope=0.2):
    """Conv on NHWC activations with a pre-reshaped (K, OC) weight via Pallas fused matmul."""
    n = x.shape[0]
    a, oh, ow = _im2col_nhwc(x, ksize, ksize, stride, pad)
    oc = w_mat.shape[1]
    out = matmul_bias_act(a, w_mat, bias, act, slope)  # (N*OH*OW, OC) f32
    return out.reshape(n, oh, ow, oc)


# --------------------------------------------------------------------------------------
# Parameters (PyTorch layout) + one-time preprocessing for the kernel path
# --------------------------------------------------------------------------------------
def init_params(key):
    """PyTorch-layout parameters (OIHW weights), matching the nn.Module init."""
    ks = jax.random.split(key, 5)
    p = {}
    # projection: weight-normed Conv2d(1,1,k=8,s=2,p=3,bias=False), weight_g == 1
    p["proj_v"] = 0.05 * jax.random.normal(ks[0], (1, 1, 8, 8), jnp.float32)
    num_filters = [256, 512, 1024]
    cin = 1
    for i in range(3):
        p[f"w{i + 1}"] = 0.02 * jax.random.normal(
            ks[i + 1], (num_filters[i], cin, 4, 4), jnp.float32)
        p[f"b{i + 1}"] = jnp.zeros((num_filters[i],), jnp.float32)
        cin = num_filters[i]
    p["w_out"] = 0.02 * jax.random.normal(ks[4], (1, num_filters[2], 4, 4), jnp.float32)
    p["b_out"] = jnp.zeros((1,), jnp.float32)
    return p


def _oihw_to_kmat(w):
    """(OC,C,kh,kw) -> (kh*kw*C, OC); matches the (kh,kw,C) K-ordering of _im2col_nhwc."""
    oc, c, kh, kw = w.shape
    return w.transpose(2, 3, 1, 0).reshape(kh * kw * c, oc)


def prepare_params(params):
    """One-time weight preprocessing: weight-norm, reshape to matmul panels, cast to bf16."""
    pp = {}
    # weight norm: w = g * v / ||v||_2 over (C, kh, kw), with g == 1 (nn.init.constant_)
    v = params["proj_v"]
    w_proj = v / jnp.sqrt(jnp.sum(v * v, axis=(1, 2, 3), keepdims=True))
    pp["proj_w"] = _oihw_to_kmat(w_proj)                                 # (64, 1) f32 GEMV
    for i in (1, 2, 3):
        oc = params[f"w{i}"].shape[0]
        pp[f"w{i}"] = _oihw_to_kmat(params[f"w{i}"]).astype(jnp.bfloat16)  # bf16 stream
        pp[f"b{i}"] = params[f"b{i}"].reshape(1, oc).astype(jnp.float32)
    pp["w_out"] = _oihw_to_kmat(params["w_out"])                         # (16384, 1) f32 GEMV
    pp["b_out"] = params["b_out"].astype(jnp.float32)
    return pp


# --------------------------------------------------------------------------------------
# Forward
# --------------------------------------------------------------------------------------
def discriminator_forward(pp, x):
    """x: (N,1,H,W) NCHW (PyTorch convention) -> (N,1,OH,OW) NCHW sigmoid scores."""
    n = x.shape[0]
    h = x.transpose(0, 2, 3, 1)                                # NCHW -> NHWC once

    # projection: weight-normed conv(1->1, k=8, s=2, p=3), no bias.  Single output
    # channel -> plain GEMV (no 128x zero-padded weight slab, no extra launch).
    a, oh, ow = _im2col_nhwc(h, 8, 8, 2, 3)
    h = jnp.dot(a, pp["proj_w"]).reshape(n, oh, ow, 1)

    # hidden conv stack: fused Pallas matmul + bias + LeakyReLU(0.2)
    h = conv_nhwc(h, pp["w1"], pp["b1"], 4, 2, 2, act="leaky_relu")
    h = conv_nhwc(h, pp["w2"], pp["b2"], 4, 2, 1, act="leaky_relu")
    h = conv_nhwc(h, pp["w3"], pp["b3"], 4, 2, 1, act="leaky_relu")

    # output conv (1024 -> 1, k=4, s=1, p=1) + sigmoid.  Single output channel: plain GEMV.
    a, oh, ow = _im2col_nhwc(h, 4, 4, 1, 1)
    out = jax.nn.sigmoid(jnp.dot(a, pp["w_out"]) + pp["b_out"]).reshape(n, oh, ow, 1)
    return out.transpose(0, 3, 1, 2)                           # back to NCHW


# --------------------------------------------------------------------------------------
# Pure-JAX reference for verification
# --------------------------------------------------------------------------------------
def _ref_conv(x, w, b, stride, pad):
    out = jax.lax.conv_general_dilated(
        x, w, (stride, stride), [(pad, pad), (pad, pad)],
        dimension_numbers=("NCHW", "OIHW", "NCHW"),
        precision=jax.lax.Precision.HIGHEST)
    if b is not None:
        out = out + b.reshape(1, -1, 1, 1)
    return out


def reference_forward(params, x):
    v = params["proj_v"]
    w_proj = v / jnp.sqrt(jnp.sum(v * v, axis=(1, 2, 3), keepdims=True))
    lrelu = lambda t: jnp.where(t > 0, t, 0.2 * t)
    h = _ref_conv(x, w_proj, None, 2, 3)
    h = lrelu(_ref_conv(h, params["w1"], params["b1"], 2, 2))
    h = lrelu(_ref_conv(h, params["w2"], params["b2"], 2, 1))
    h = lrelu(_ref_conv(h, params["w3"], params["b3"], 2, 1))
    return jax.nn.sigmoid(_ref_conv(h, params["w_out"], params["b_out"], 1, 1))


# TODO(synk): the module's Adam optimizer construction is training-time state and has no
# forward-pass / Pallas equivalent; it is intentionally not implemented.

if __name__ == "__main__":
    key = jax.random.PRNGKey(0)
    pkey, xkey = jax.random.split(key)
    params = init_params(pkey)
    prepped = prepare_params(params)                      # one-time weight prep (outside jit)
    x = jax.random.normal(xkey, (2, 1, 32, 32), jnp.float32)   # NCHW, 1 input channel

    out = jax.jit(discriminator_forward)(prepped, x)
    out = jax.block_until_ready(out)
    assert out.shape == (2, 1, 1, 1), out.shape

    ref = reference_forward(params, x)
    max_diff = float(jnp.max(jnp.abs(out - ref)))
    assert max_diff < 1e-2, f"mismatch vs reference: {max_diff}"

    print("KERNEL_OK")
</pallas_src>

<mosaic_0001>
module attributes {stable_mosaic.version = 11 : i64} {
  func.func @_matmul_bias_act_kernel(%arg0: i32, %arg1: i32, %arg2: memref<162x16xbf16, #tpu.memory_space<vmem>>, %arg3: memref<16x256xbf16, #tpu.memory_space<vmem>>, %arg4: memref<1x256xf32, #tpu.memory_space<vmem>>, %arg5: memref<162x256xf32, #tpu.memory_space<vmem>>) attributes {dimension_semantics = [#tpu.dimension_semantics<parallel>, #tpu.dimension_semantics<arbitrary>], iteration_bounds = array<i64: 1, 1>, scalar_prefetch = 0 : i64, scratch_operands = 0 : i64, tpu.core_type = #tpu.core_type<tc>, window_params = [{transform_indices = @transform_0, window_bounds = array<i64: 162, 16>}, {transform_indices = @transform_1, window_bounds = array<i64: 16, 256>}, {transform_indices = @transform_2, window_bounds = array<i64: 1, 256>}, {transform_indices = @transform_3, window_bounds = array<i64: 162, 256>}]} {
    %c0_i32 = arith.constant 0 : i32
    %0 = arith.cmpi eq, %arg1, %c0_i32 : i32
    %1 = arith.extui %0 : i1 to i32
    %c0_i32_0 = arith.constant 0 : i32
    %2 = arith.cmpi ne, %1, %c0_i32_0 : i32
    scf.if %2 {
      %cst_10 = arith.constant 0.000000e+00 : f32
      %12 = vector.broadcast %cst_10 : f32 to vector<162x256xf32>
      %c0_11 = arith.constant 0 : index
      %c0_12 = arith.constant 0 : index
      %13 = vector.load %arg5[%c0_11, %c0_12] : memref<162x256xf32, #tpu.memory_space<vmem>>, vector<162x256xf32>
      tpu.vector_store %arg5[%c0_11, %c0_12], %12 {strides = array<i32>} : memref<162x256xf32, #tpu.memory_space<vmem>>, vector<162x256xf32>,
    } else {
    }
    %c0 = arith.constant 0 : index
    %c0_1 = arith.constant 0 : index
    %3 = vector.load %arg5[%c0, %c0_1] : memref<162x256xf32, #tpu.memory_space<vmem>>, vector<162x256xf32>
    %c0_2 = arith.constant 0 : index
    %c0_3 = arith.constant 0 : index
    %4 = vector.load %arg2[%c0_2, %c0_3] : memref<162x16xbf16, #tpu.memory_space<vmem>>, vector<162x16xbf16>
    %c0_4 = arith.constant 0 : index
    %c0_5 = arith.constant 0 : index
    %5 = vector.load %arg3[%c0_4, %c0_5] : memref<16x256xbf16, #tpu.memory_space<vmem>>, vector<16x256xbf16>
    %cst = arith.constant dense<0.000000e+00> : vector<162x256xf32>
    %6 = tpu.matmul %4, %5, %cst {dimension_numbers = #tpu.dot_dimension_numbers<[1], [0], [0], [1], [0, 0, 1, 1], [], []>} : vector<162x16xbf16>, vector<16x256xbf16>, vector<162x256xf32> -> vector<162x256xf32>
    %7 = arith.addf %3, %6 : vector<162x256xf32>
    %c0_6 = arith.constant 0 : index
    %c0_7 = arith.constant 0 : index
    %8 = vector.load %arg5[%c0_6, %c0_7] : memref<162x256xf32, #tpu.memory_space<vmem>>, vector<162x256xf32>
    tpu.vector_store %arg5[%c0_6, %c0_7], %7 {strides = array<i32>} : memref<162x256xf32, #tpu.memory_space<vmem>>, vector<162x256xf32>,
    %c0_i32_8 = arith.constant 0 : i32
    %9 = arith.cmpi eq, %arg1, %c0_i32_8 : i32
    %10 = arith.extui %9 : i1 to i32
    %c0_i32_9 = arith.constant 0 : i32
    %11 = arith.cmpi ne, %10, %c0_i32_9 : i32
    scf.if %11 {
      %c0_10 = arith.constant 0 : index
      %c0_11 = arith.constant 0 : index
      %12 = vector.load %arg5[%c0_10, %c0_11] : memref<162x256xf32, #tpu.memory_space<vmem>>, vector<162x256xf32>
      %c0_12 = arith.constant 0 : index
      %c0_13 = arith.constant 0 : index
      %13 = vector.load %arg4[%c0_12, %c0_13] : memref<1x256xf32, #tpu.memory_space<vmem>>, vector<1x256xf32>
      %14 = vector.broadcast %13 : vector<1x256xf32> to vector<162x256xf32>
      %15 = arith.addf %12, %14 : vector<162x256xf32>
      %cst_14 = arith.constant 0.000000e+00 : f32
      %16 = vector.broadcast %cst_14 : f32 to vector<162x256xf32>
      %17 = arith.cmpf ogt, %15, %16 : vector<162x256xf32>
      %cst_15 = arith.constant 2.000000e-01 : f32
      %18 = vector.broadcast %cst_15 : f32 to vector<162x256xf32>
      %19 = arith.mulf %18, %15 : vector<162x256xf32>
      %20 = arith.select %17, %15, %19 : vector<162x256xi1>, vector<162x256xf32>
      %c0_16 = arith.constant 0 : index
      %c0_17 = arith.constant 0 : index
      %21 = vector.load %arg5[%c0_16, %c0_17] : memref<162x256xf32, #tpu.memory_space<vmem>>, vector<162x256xf32>
      tpu.vector_store %arg5[%c0_16, %c0_17], %20 {strides = array<i32>} : memref<162x256xf32, #tpu.memory_space<vmem>>, vector<162x256xf32>,
    } else {
    }
    return
  }
  func.func @transform_0(%arg0: i32, %arg1: i32) -> (i32, i32) {
    %c0_i32 = arith.constant 0 : i32
    %c0_i32_0 = arith.constant 0 : i32
    return %c0_i32, %arg1 : i32, i32
  }
  func.func @transform_1(%arg0: i32, %arg1: i32) -> (i32, i32) {
    %c0_i32 = arith.constant 0 : i32
    return %arg1, %arg0 : i32, i32
  }
  func.func @transform_2(%arg0: i32, %arg1: i32) -> (i32, i32) {
    %c0_i32 = arith.constant 0 : i32
    %c0_i32_0 = arith.constant 0 : i32
    return %c0_i32, %arg0 : i32, i32
  }
  func.func @transform_3(%arg0: i32, %arg1: i32) -> (i32, i32) {
    %c0_i32 = arith.constant 0 : i32
    %c0_i32_0 = arith.constant 0 : i32
    return %c0_i32, %arg0 : i32, i32
  }
}

module attributes {stable_mosaic.version = 11 : i64} {
  func.func @_matmul_bias_act_kernel(%arg0: i32, %arg1: i32, %arg2: memref<32x2048xbf16, #tpu.memory_space<vmem>>, %arg3: memref<2048x256xbf16, #tpu.memory_space<vmem>>, %arg4: memref<1x256xf32, #tpu.memory_space<vmem>>, %arg5: memref<32x256xf32, #tpu.memory_space<vmem>>) attributes {dimension_semantics = [#tpu.dimension_semantics<parallel>, #tpu.dimension_semantics<arbitrary>], iteration_bounds = array<i64: 2, 2>, scalar_prefetch = 0 : i64, scratch_operands = 0 : i64, tpu.core_type = #tpu.core_type<tc>, window_params = [{transform_indices = @transform_0, window_bounds = array<i64: 32, 2048>}, {transform_indices = @transform_1, window_bounds = array<i64: 2048, 256>}, {transform_indices = @transform_2, window_bounds = array<i64: 1, 256>}, {transform_indices = @transform_3, window_bounds = array<i64: 32, 256>}]} {
    %c0_i32 = arith.constant 0 : i32
    %0 = arith.cmpi eq, %arg1, %c0_i32 : i32
    %1 = arith.extui %0 : i1 to i32
    %c0_i32_0 = arith.constant 0 : i32
    %2 = arith.cmpi ne, %1, %c0_i32_0 : i32
    scf.if %2 {
      %cst_9 = arith.constant 0.000000e+00 : f32
      %12 = vector.broadcast %cst_9 : f32 to vector<32x256xf32>
      %c0_10 = arith.constant 0 : index
      %c0_11 = arith.constant 0 : index
      %13 = vector.load %arg5[%c0_10, %c0_11] : memref<32x256xf32, #tpu.memory_space<vmem>>, vector<32x256xf32>
      tpu.vector_store %arg5[%c0_10, %c0_11], %12 {strides = array<i32>} : memref<32x256xf32, #tpu.memory_space<vmem>>, vector<32x256xf32>,
    } else {
    }
    %c0 = arith.constant 0 : index
    %c0_1 = arith.constant 0 : index
    %3 = vector.load %arg5[%c0, %c0_1] : memref<32x256xf32, #tpu.memory_space<vmem>>, vector<32x256xf32>
    %c0_2 = arith.constant 0 : index
    %c0_3 = arith.constant 0 : index
    %4 = vector.load %arg2[%c0_2, %c0_3] : memref<32x2048xbf16, #tpu.memory_space<vmem>>, vector<32x2048xbf16>
    %c0_4 = arith.constant 0 : index
    %c0_5 = arith.constant 0 : index
    %5 = vector.load %arg3[%c0_4, %c0_5] : memref<2048x256xbf16, #tpu.memory_space<vmem>>, vector<2048x256xbf16>
    %cst = arith.constant dense<0.000000e+00> : vector<32x256xf32>
    %6 = tpu.matmul %4, %5, %cst {dimension_numbers = #tpu.dot_dimension_numbers<[1], [0], [0], [1], [0, 0, 1, 1], [], []>} : vector<32x2048xbf16>, vector<2048x256xbf16>, vector<32x256xf32> -> vector<32x256xf32>
    %7 = arith.addf %3, %6 : vector<32x256xf32>
    %c0_6 = arith.constant 0 : index
    %c0_7 = arith.constant 0 : index
    %8 = vector.load %arg5[%c0_6, %c0_7] : memref<32x256xf32, #tpu.memory_space<vmem>>, vector<32x256xf32>
    tpu.vector_store %arg5[%c0_6, %c0_7], %7 {strides = array<i32>} : memref<32x256xf32, #tpu.memory_space<vmem>>, vector<32x256xf32>,
    %c1_i32 = arith.constant 1 : i32
    %9 = arith.cmpi eq, %arg1, %c1_i32 : i32
    %10 = arith.extui %9 : i1 to i32
    %c0_i32_8 = arith.constant 0 : i32
    %11 = arith.cmpi ne, %10, %c0_i32_8 : i32
    scf.if %11 {
      %c0_9 = arith.constant 0 : index
      %c0_10 = arith.constant 0 : index
      %12 = vector.load %arg5[%c0_9, %c0_10] : memref<32x256xf32, #tpu.memory_space<vmem>>, vector<32x256xf32>
      %c0_11 = arith.constant 0 : index
      %c0_12 = arith.constant 0 : index
      %13 = vector.load %arg4[%c0_11, %c0_12] : memref<1x256xf32, #tpu.memory_space<vmem>>, vector<1x256xf32>
      %14 = vector.broadcast %13 : vector<1x256xf32> to vector<32x256xf32>
      %15 = arith.addf %12, %14 : vector<32x256xf32>
      %cst_13 = arith.constant 0.000000e+00 : f32
      %16 = vector.broadcast %cst_13 : f32 to vector<32x256xf32>
      %17 = arith.cmpf ogt, %15, %16 : vector<32x256xf32>
      %cst_14 = arith.constant 2.000000e-01 : f32
      %18 = vector.broadcast %cst_14 : f32 to vector<32x256xf32>
      %19 = arith.mulf %18, %15 : vector<32x256xf32>
      %20 = arith.select %17, %15, %19 : vector<32x256xi1>, vector<32x256xf32>
      %c0_15 = arith.constant 0 : index
      %c0_16 = arith.constant 0 : index
      %21 = vector.load %arg5[%c0_15, %c0_16] : memref<32x256xf32, #tpu.memory_space<vmem>>, vector<32x256xf32>
      tpu.vector_store %arg5[%c0_15, %c0_16], %20 {strides = array<i32>} : memref<32x256xf32, #tpu.memory_space<vmem>>, vector<32x256xf32>,
    } else {
    }
    return
  }
  func.func @transform_0(%arg0: i32, %arg1: i32) -> (i32, i32) {
    %c0_i32 = arith.constant 0 : i32
    %c0_i32_0 = arith.constant 0 : i32
    return %c0_i32, %arg1 : i32, i32
  }
  func.func @transform_1(%arg0: i32, %arg1: i32) -> (i32, i32) {
    %c0_i32 = arith.constant 0 : i32
    return %arg1, %arg0 : i32, i32
  }
  func.func @transform_2(%arg0: i32, %arg1: i32) -> (i32, i32) {
    %c0_i32 = arith.constant 0 : i32
    %c0_i32_0 = arith.constant 0 : i32
    return %c0_i32, %arg0 : i32, i32
  }
  func.func @transform_3(%arg0: i32, %arg1: i32) -> (i32, i32) {
    %c0_i32 = arith.constant 0 : i32
    %c0_i32_0 = arith.constant 0 : i32
    return %c0_i32, %arg0 : i32, i32
  }
}

module attributes {stable_mosaic.version = 11 : i64} {
  func.func @_matmul_bias_act_kernel(%arg0: i32, %arg1: i32, %arg2: memref<8x2048xbf16, #tpu.memory_space<vmem>>, %arg3: memref<2048x256xbf16, #tpu.memory_space<vmem>>, %arg4: memref<1x256xf32, #tpu.memory_space<vmem>>, %arg5: memref<8x256xf32, #tpu.memory_space<vmem>>) attributes {dimension_semantics = [#tpu.dimension_semantics<parallel>, #tpu.dimension_semantics<arbitrary>], iteration_bounds = array<i64: 4, 4>, scalar_prefetch = 0 : i64, scratch_operands = 0 : i64, tpu.core_type = #tpu.core_type<tc>, window_params = [{transform_indices = @transform_0, window_bounds = array<i64: 8, 2048>}, {transform_indices = @transform_1, window_bounds = array<i64: 2048, 256>}, {transform_indices = @transform_2, window_bounds = array<i64: 1, 256>}, {transform_indices = @transform_3, window_bounds = array<i64: 8, 256>}]} {
    %c0_i32 = arith.constant 0 : i32
    %0 = arith.cmpi eq, %arg1, %c0_i32 : i32
    %1 = arith.extui %0 : i1 to i32
    %c0_i32_0 = arith.constant 0 : i32
    %2 = arith.cmpi ne, %1, %c0_i32_0 : i32
    scf.if %2 {
      %cst_9 = arith.constant 0.000000e+00 : f32
      %12 = vector.broadcast %cst_9 : f32 to vector<8x256xf32>
      %c0_10 = arith.constant 0 : index
      %c0_11 = arith.constant 0 : index
      %13 = vector.load %arg5[%c0_10, %c0_11] : memref<8x256xf32, #tpu.memory_space<vmem>>, vector<8x256xf32>
      tpu.vector_store %arg5[%c0_10, %c0_11], %12 {strides = array<i32>} : memref<8x256xf32, #tpu.memory_space<vmem>>, vector<8x256xf32>,
    } else {
    }
    %c0 = arith.constant 0 : index
    %c0_1 = arith.constant 0 : index
    %3 = vector.load %arg5[%c0, %c0_1] : memref<8x256xf32, #tpu.memory_space<vmem>>, vector<8x256xf32>
    %c0_2 = arith.constant 0 : index
    %c0_3 = arith.constant 0 : index
    %4 = vector.load %arg2[%c0_2, %c0_3] : memref<8x2048xbf16, #tpu.memory_space<vmem>>, vector<8x2048xbf16>
    %c0_4 = arith.constant 0 : index
    %c0_5 = arith.constant 0 : index
    %5 = vector.load %arg3[%c0_4, %c0_5] : memref<2048x256xbf16, #tpu.memory_space<vmem>>, vector<2048x256xbf16>
    %cst = arith.constant dense<0.000000e+00> : vector<8x256xf32>
    %6 = tpu.matmul %4, %5, %cst {dimension_numbers = #tpu.dot_dimension_numbers<[1], [0], [0], [1], [0, 0, 1, 1], [], []>} : vector<8x2048xbf16>, vector<2048x256xbf16>, vector<8x256xf32> -> vector<8x256xf32>
    %7 = arith.addf %3, %6 : vector<8x256xf32>
    %c0_6 = arith.constant 0 : index
    %c0_7 = arith.constant 0 : index
    %8 = vector.load %arg5[%c0_6, %c0_7] : memref<8x256xf32, #tpu.memory_space<vmem>>, vector<8x256xf32>
    tpu.vector_store %arg5[%c0_6, %c0_7], %7 {strides = array<i32>} : memref<8x256xf32, #tpu.memory_space<vmem>>, vector<8x256xf32>,
    %c3_i32 = arith.constant 3 : i32
    %9 = arith.cmpi eq, %arg1, %c3_i32 : i32
    %10 = arith.extui %9 : i1 to i32
    %c0_i32_8 = arith.constant 0 : i32
    %11 = arith.cmpi ne, %10, %c0_i32_8 : i32
    scf.if %11 {
      %c0_9 = arith.constant 0 : index
      %c0_10 = arith.constant 0 : index
      %12 = vector.load %arg5[%c0_9, %c0_10] : memref<8x256xf32, #tpu.memory_space<vmem>>, vector<8x256xf32>
      %c0_11 = arith.constant 0 : index
      %c0_12 = arith.constant 0 : index
      %13 = vector.load %arg4[%c0_11, %c0_12] : memref<1x256xf32, #tpu.memory_space<vmem>>, vector<1x256xf32>
      %14 = vector.broadcast %13 : vector<1x256xf32> to vector<8x256xf32>
      %15 = arith.addf %12, %14 : vector<8x256xf32>
      %cst_13 = arith.constant 0.000000e+00 : f32
      %16 = vector.broadcast %cst_13 : f32 to vector<8x256xf32>
      %17 = arith.cmpf ogt, %15, %16 : vector<8x256xf32>
      %cst_14 = arith.constant 2.000000e-01 : f32
      %18 = vector.broadcast %cst_14 : f32 to vector<8x256xf32>
      %19 = arith.mulf %18, %15 : vector<8x256xf32>
      %20 = arith.select %17, %15, %19 : vector<8x256xi1>, vector<8x256xf32>
      %c0_15 = arith.constant 0 : index
      %c0_16 = arith.constant 0 : index
      %21 = vector.load %arg5[%c0_15, %c0_16] : memref<8x256xf32, #tpu.memory_space<vmem>>, vector<8x256xf32>
      tpu.vector_store %arg5[%c0_15, %c0_16], %20 {strides = array<i32>} : memref<8x256xf32, #tpu.memory_space<vmem>>, vector<8x256xf32>,
    } else {
    }
    return
  }
  func.func @transform_0(%arg0: i32, %arg1: i32) -> (i32, i32) {
    %c0_i32 = arith.constant 0 : i32
    %c0_i32_0 = arith.constant 0 : i32
    return %c0_i32, %arg1 : i32, i32
  }
  func.func @transform_1(%arg0: i32, %arg1: i32) -> (i32, i32) {
    %c0_i32 = arith.constant 0 : i32
    return %arg1, %arg0 : i32, i32
  }
  func.func @transform_2(%arg0: i32, %arg1: i32) -> (i32, i32) {
    %c0_i32 = arith.constant 0 : i32
    %c0_i32_0 = arith.constant 0 : i32
    return %c0_i32, %arg0 : i32, i32
  }
  func.func @transform_3(%arg0: i32, %arg1: i32) -> (i32, i32) {
    %c0_i32 = arith.constant 0 : i32
    %c0_i32_0 = arith.constant 0 : i32
    return %c0_i32, %arg0 : i32, i32
  }
}

</mosaic_0001>

<bundles_post_ra>
// kernel: discriminator_forward.3
= control target key start
LH: loop header
LB: loop body
LE: loop exit
PB: predicated region body
PF: predicated region fallthrough
CT: control target
= control target key end

     0   :  { %v761_v1 = vmov 0   ;;  %v762_v2 = vmov 0.0   ;;  %vm189_vm0 = vcmask 130048   ;;  %v495_v15 = vlaneseq  ;;  %s1044_s1 = inlined_call_operand.vmem [shape: bf16[16,256], index: 1, kind: input, shape index: {}]   ;;  %s1045_s0 = inlined_call_operand.vmem [shape: bf16[162,16], index: 0, kind: input, shape index: {}]   ;;  %s1046_s3 = inlined_call_operand.vmem [shape: f32[162,256], index: 3, kind: output, shape index: {}]   ;;  %s1047_s2 = inlined_call_operand.vmem [shape: f32[1,256], index: 2, kind: input, shape index: {}]  }
   0x1   :  { %v747_v0 = vld [vmem:[%s1044_s1 + $0x4] ss:$8 sps:$4 sm:$0xff]   ;;  %255 = vmatprep.mubr.bf16.mxu0 %v761_v1  ;;  %315 = vmatprep.mubr.bf16.mxu1 %v761_v1  ;;  %59 = vst [vmem:[%s1046_s3 + $0x140] sm:$0x3] %v762_v2  ;;  %60 = vst [vmem:[%s1046_s3 + $0x148] sm:$0x3] %v762_v2 }
   0x2   :  { %v749_v3 = vld [vmem:[%s1044_s1] ss:$8 sps:$4 sm:$0xff]   ;;  %237 = vmatprep.subr.bf16.mxu0 %v747_v0  ;;  %743 = vmatprep.subr.bf16.mxu1 %v747_v0  ;;  %v751_v5 = vld [vmem:[%s1045_s0 + $0x30] sm:$0xff]   ;;  %v753_v7 = vld [vmem:[%s1045_s0 + $0x38] sm:$0xff]   ;;  %v496_v16 = vshrl.u32 %v495_v15, 7 }
   0x3   :  { %v750_v4 = vld [vmem:[%s1045_s0] sm:$0xff]   ;;  %238 = vmatpush1.bf16.msra.mxu0 %v749_v3  ;;  %744 = vmatpush1.bf16.msra.mxu1 %v749_v3  ;;  %v752_v6 = vld [vmem:[%s1045_s0 + $0x8] sm:$0xff]   ;;  %v754_v8 = vld [vmem:[%s1045_s0 + $0x10] sm:$0xff]  }
   0x4   :  { %v755_v9 = vld [vmem:[%s1045_s0 + $0x40] sm:$0xff]   ;;  %v756_v10 = vld [vmem:[%s1045_s0 + $0x18] sm:$0xff]   ;;  %v757_v11 = vld [vmem:[%s1045_s0 + $0x48] sm:$0xff]   ;;  %v497_v17 = vsub.s32 0, %v496_v16  ;;  %v501_v19 = vsub.s32 1, %v496_v16 }
   0x5   :  { %v758_v12 = vld [vmem:[%s1045_s0 + $0x20] sm:$0xff]   ;;  %v759_v13 = vld [vmem:[%s1045_s0 + $0x50] ss:$0 sps:$4 sm:$0x11]   ;;  %v760_v14 = vld [vmem:[%s1045_s0 + $0x28] sm:$0xff]  }
   0x6   :  { %732 = vmatmul.mubr.msk.bf16.vlgmr.msra.gmra.mxu0 %vm189_vm0, %v750_v4  ;;  %738 = vmatmul.mubr.msk.bf16.vlgmr.msra.gmra.mxu1 %vm189_vm0, %v751_v5  ;;  %v493_v18 = vld [vmem:[%s1047_s2] sm:$0x3] }
   0x7   :  { %265 = vmatprep.mubr.bf16.mxu0 %v761_v1  ;;  %325 = vmatprep.mubr.bf16.mxu1 %v761_v1  ;;  %v842_v20 = vrot.slane %v493_v18, %v497_v17  ;;  %v844_v23 = vrot.slane %v493_v18, %v501_v19 }
   0xe   :  { %733 = vmatmul.mubr.msk.bf16.gmra.mxu0 %vm189_vm0, %v752_v6  ;;  %739 = vmatmul.mubr.msk.bf16.gmra.mxu1 %vm189_vm0, %v753_v7 }
   0xf   :  { %275 = vmatprep.mubr.bf16.mxu0 %v761_v1  ;;  %335 = vmatprep.mubr.bf16.mxu1 %v761_v1 }
  0x16   :  { %734 = vmatmul.mubr.msk.bf16.gmra.mxu0 %vm189_vm0, %v754_v8  ;;  %740 = vmatmul.mubr.msk.bf16.gmra.mxu1 %vm189_vm0, %v755_v9 }
  0x17   :  { %285 = vmatprep.mubr.bf16.mxu0 %v761_v1  ;;  %345 = vmatprep.mubr.bf16.mxu1 %v761_v1 }
  0x1e   :  { %735 = vmatmul.mubr.msk.bf16.gmra.mxu0 %vm189_vm0, %v756_v10  ;;  %741 = vmatmul.mubr.msk.bf16.gmra.mxu1 %vm189_vm0, %v757_v11 }
  0x1f   :  { %295 = vmatprep.mubr.bf16.mxu0 %v761_v1  ;;  %355 = vmatprep.mubr.bf16.mxu1 %v761_v1 }
  0x26   :  { %736 = vmatmul.mubr.msk.bf16.gmra.mxu0 %vm189_vm0, %v758_v12  ;;  %742 = vmatmul.mubr.msk.bf16.gmra.mxu1 %vm189_vm0, %v759_v13 }
  0x27   :  { %305 = vmatprep.mubr.bf16.mxu0 %v761_v1 }
  0x2e   :  { %737 = vmatmul.mubr.msk.bf16.gmra.mxu0 %vm189_vm0, %v760_v14 }
  0xc6   :  { %v257_v21 = vpop.f32.mrf.mxu0  ;;  %v317_v22 = vpop.f32.mrf.mxu1 }
  0xc7   :  { %v505_v26 = vadd.f32 %v842_v20, %v257_v21  ;;  %v529_v27 = vadd.f32 %v842_v20, %v317_v22 }
  0xc8   :  { %v259_v24 = vpop.f32.mrf.mxu0  ;;  %v319_v25 = vpop.f32.mrf.mxu1 }
  0xc9   :  { %vm547_vm1 = vcmp.gt.f32.partialorder %v505_v26, 0.0  ;;  %v589_v30 = vmul.f32 0.2, %v505_v26  ;;  %v506_v31 = vadd.f32 %v844_v23, %v259_v24  ;;  %vm571_vm2 = vcmp.gt.f32.partialorder %v529_v27, 0.0 }
  0xca   :  { %v261_v28 = vpop.f32.mrf.mxu0  ;;  %v321_v29 = vpop.f32.mrf.mxu1  ;;  %v613_v32 = vmul.f32 0.2, %v529_v27  ;;  %v530_v34 = vadd.f32 %v844_v23, %v319_v25 }
  0xcb   :  { %v631_v36 = vsel %vm547_vm1, %v505_v26, %v589_v30  ;;  %vm548_vm3 = vcmp.gt.f32.partialorder %v506_v31, 0.0  ;;  %v590_v37 = vmul.f32 0.2, %v506_v31  ;;  %v507_v38 = vadd.f32 %v842_v20, %v261_v28 }
  0xcc   :  { %v263_v33 = vpop.f32.mrf.mxu0  ;;  %v323_v35 = vpop.f32.mrf.mxu1  ;;  %673 = vst [vmem:[%s1046_s3] sm:$0xff] %v631_v36  ;;  %v655_v39 = vsel %vm571_vm2, %v529_v27, %v613_v32  ;;  %vm572_vm4 = vcmp.gt.f32.partialorder %v530_v34, 0.0  ;;  %v614_v40 = vmul.f32 0.2, %v530_v34  ;;  %v531_v47 = vadd.f32 %v842_v20, %v321_v29 }
  0xcd   :  { %v632_v43 = vsel %vm548_vm3, %v506_v31, %v590_v37  ;;  %vm549_vm5 = vcmp.gt.f32.partialorder %v507_v38, 0.0  ;;  %v591_v44 = vmul.f32 0.2, %v507_v38  ;;  %697 = vst [vmem:[%s1046_s3 + $0xc0] sm:$0xff] %v655_v39  ;;  %v508_v45 = vadd.f32 %v844_v23, %v263_v33 }
  0xce   :  { %v267_v41 = vpop.f32.mrf.mxu0  ;;  %v327_v42 = vpop.f32.mrf.mxu1  ;;  %674 = vst [vmem:[%s1046_s3 + $0x8] sm:$0xff] %v632_v43  ;;  %v656_v46 = vsel %vm572_vm4, %v530_v34, %v614_v40  ;;  %vm573_vm7 = vcmp.gt.f32.partialorder %v531_v47, 0.0  ;;  %v615_v53 = vmul.f32 0.2, %v531_v47  ;;  %v532_v58 = vadd.f32 %v844_v23, %v323_v35 }
  0xcf   :  { %v633_v50 = vsel %vm549_vm5, %v507_v38, %v591_v44  ;;  %698 = vst [vmem:[%s1046_s3 + $0xc8] sm:$0xff] %v656_v46  ;;  %v509_v51 = vadd.f32 %v842_v20, %v267_v41  ;;  %vm550_vm6 = vcmp.gt.f32.partialorder %v508_v45, 0.0  ;;  %v592_v52 = vmul.f32 0.2, %v508_v45 }
  0xd0   :  { %v269_v48 = vpop.f32.mrf.mxu0  ;;  %v329_v49 = vpop.f32.mrf.mxu1  ;;  %675 = vst [vmem:[%s1046_s3 + $0x10] sm:$0xff] %v633_v50  ;;  %v657_v60 = vsel %vm573_vm7, %v531_v47, %v615_v53  ;;  %v533_v61 = vadd.f32 %v842_v20, %v327_v42  ;;  %vm574_vm10 = vcmp.gt.f32.partialorder %v532_v58, 0.0  ;;  %v616_v2 = vmul.f32 0.2, %v532_v58 }
  0xd1   :  { %vm551_vm8 = vcmp.gt.f32.partialorder %v509_v51, 0.0  ;;  %v593_v56 = vmul.f32 0.2, %v509_v51  ;;  %v510_v57 = vadd.f32 %v844_v23, %v269_v48  ;;  %v634_v59 = vsel %vm550_vm6, %v508_v45, %v592_v52  ;;  %699 = vst [vmem:[%s1046_s3 + $0xd0] sm:$0xff] %v657_v60 }
  0xd2   :  { %v271_v54 = vpop.f32.mrf.mxu0  ;;  %v331_v55 = vpop.f32.mrf.mxu1  ;;  %676 = vst [vmem:[%s1046_s3 + $0x18] sm:$0xff] %v634_v59  ;;  %vm575_vm11 = vcmp.gt.f32.partialorder %v533_v61, 0.0  ;;  %v617_v4 = vmul.f32 0.2, %v533_v61  ;;  %v658_v8 = vsel %vm574_vm10, %v532_v58, %v616_v2  ;;  %v534_v14 = vadd.f32 %v844_v23, %v329_v49 }
  0xd3   :  { %v635_v0 = vsel %vm551_vm8, %v509_v51, %v593_v56  ;;  %vm552_vm9 = vcmp.gt.f32.partialorder %v510_v57, 0.0  ;;  %v594_v1 = vmul.f32 0.2, %v510_v57  ;;  %v511_v3 = vadd.f32 %v842_v20, %v271_v54  ;;  %700 = vst [vmem:[%s1046_s3 + $0xd8] sm:$0xff] %v658_v8 }
  0xd4   :  { %v273_v62 = vpop.f32.mrf.mxu0  ;;  %v333_v63 = vpop.f32.mrf.mxu1  ;;  %677 = vst [vmem:[%s1046_s3 + $0x20] sm:$0xff] %v635_v0  ;;  %v659_v10 = vsel %vm575_vm11, %v533_v61, %v617_v4  ;;  %vm576_vm14 = vcmp.gt.f32.partialorder %v534_v14, 0.0  ;;  %v618_v21 = vmul.f32 0.2, %v534_v14  ;;  %v535_v24 = vadd.f32 %v842_v20, %v331_v55 }
  0xd5   :  { %v636_v7 = vsel %vm552_vm9, %v510_v57, %v594_v1  ;;  %vm553_vm12 = vcmp.gt.f32.partialorder %v511_v3, 0.0  ;;  %v595_v9 = vmul.f32 0.2, %v511_v3  ;;  %701 = vst [vmem:[%s1046_s3 + $0xe0] sm:$0xff] %v659_v10  ;;  %v512_v13 = vadd.f32 %v844_v23, %v273_v62 }
  0xd6   :  { %v277_v5 = vpop.f32.mrf.mxu0  ;;  %v337_v6 = vpop.f32.mrf.mxu1  ;;  %678 = vst [vmem:[%s1046_s3 + $0x28] sm:$0xff] %v636_v7  ;;  %v660_v29 = vsel %vm576_vm14, %v534_v14, %v618_v21  ;;  %v536_v30 = vadd.f32 %v844_v23, %v333_v63  ;;  %vm577_vm0 = vcmp.gt.f32.partialorder %v535_v24, 0.0  ;;  %v619_v32 = vmul.f32 0.2, %v535_v24 }
  0xd7   :  { %v513_v15 = vadd.f32 %v842_v20, %v277_v5  ;;  %v637_v16 = vsel %vm553_vm12, %v511_v3, %v595_v9  ;;  %vm554_vm13 = vcmp.gt.f32.partialorder %v512_v13, 0.0  ;;  %v596_v19 = vmul.f32 0.2, %v512_v13  ;;  %702 = vst [vmem:[%s1046_s3 + $0xe8] sm:$0xff] %v660_v29 }
  0xd8   :  { %v279_v11 = vpop.f32.mrf.mxu0  ;;  %v339_v12 = vpop.f32.mrf.mxu1  ;;  %679 = vst [vmem:[%s1046_s3 + $0x30] sm:$0xff] %v637_v16  ;;  %vm578_vm2 = vcmp.gt.f32.partialorder %v536_v30, 0.0  ;;  %v620_v36 = vmul.f32 0.2, %v536_v30  ;;  %v661_v38 = vsel %vm577_vm0, %v535_v24, %v619_v32  ;;  %v537_v39 = vadd.f32 %v842_v20, %v337_v6 }
  0xd9   :  { %vm555_vm15 = vcmp.gt.f32.partialorder %v513_v15, 0.0  ;;  %v597_v22 = vmul.f32 0.2, %v513_v15  ;;  %v514_v25 = vadd.f32 %v844_v23, %v279_v11  ;;  %v638_v28 = vsel %vm554_vm13, %v512_v13, %v596_v19  ;;  %703 = vst [vmem:[%s1046_s3 + $0xf0] sm:$0xff] %v661_v38 }
  0xda   :  { %v281_v17 = vpop.f32.mrf.mxu0  ;;  %v341_v18 = vpop.f32.mrf.mxu1  ;;  %680 = vst [vmem:[%s1046_s3 + $0x38] sm:$0xff] %v638_v28  ;;  %v662_v43 = vsel %vm578_vm2, %v536_v30, %v620_v36  ;;  %vm579_vm4 = vcmp.gt.f32.partialorder %v537_v39, 0.0  ;;  %v621_v45 = vmul.f32 0.2, %v537_v39  ;;  %v538_v47 = vadd.f32 %v844_v23, %v339_v12 }
  0xdb   :  { %v639_v31 = vsel %vm555_vm15, %v513_v15, %v597_v22  ;;  %vm556_vm1 = vcmp.gt.f32.partialorder %v514_v25, 0.0  ;;  %v598_v35 = vmul.f32 0.2, %v514_v25  ;;  %v515_v37 = vadd.f32 %v842_v20, %v281_v17  ;;  %704 = vst [vmem:[%s1046_s3 + $0xf8] sm:$0xff] %v662_v43 }
  0xdc   :  { %v283_v26 = vpop.f32.mrf.mxu0  ;;  %v343_v27 = vpop.f32.mrf.mxu1  ;;  %681 = vst [vmem:[%s1046_s3 + $0x40] sm:$0xff] %v639_v31  ;;  %v663_v51 = vsel %vm579_vm4, %v537_v39, %v621_v45  ;;  %vm580_vm6 = vcmp.gt.f32.partialorder %v538_v47, 0.0  ;;  %v622_v55 = vmul.f32 0.2, %v538_v47  ;;  %v539_v57 = vadd.f32 %v842_v20, %v341_v18  ;;  %v101_v31 = vld [vmem:[%s1046_s3 + $0x140] sm:$0x3] }
  0xdd   :  { %v640_v42 = vsel %vm556_vm1, %v514_v25, %v598_v35  ;;  %vm557_vm3 = vcmp.gt.f32.partialorder %v515_v37, 0.0  ;;  %v599_v44 = vmul.f32 0.2, %v515_v37  ;;  %v516_v46 = vadd.f32 %v844_v23, %v283_v26  ;;  %705 = vst [vmem:[%s1046_s3 + $0x100] sm:$0xff] %v663_v51  ;;  %v102_v39 = vld [vmem:[%s1046_s3 + $0x148] sm:$0x3] }
  0xde   :  { %v287_v33 = vpop.f32.mrf.mxu0  ;;  %v347_v34 = vpop.f32.mrf.mxu1  ;;  %682 = vst [vmem:[%s1046_s3 + $0x48] sm:$0xff] %v640_v42  ;;  %v664_v62 = vsel %vm580_vm6, %v538_v47, %v622_v55  ;;  %vm581_vm8 = vcmp.gt.f32.partialorder %v539_v57, 0.0  ;;  %v623_v0 = vmul.f32 0.2, %v539_v57  ;;  %v540_v2 = vadd.f32 %v844_v23, %v343_v27 }
  0xdf   :  { %v641_v50 = vsel %vm557_vm3, %v515_v37, %v599_v44  ;;  %vm558_vm5 = vcmp.gt.f32.partialorder %v516_v46, 0.0  ;;  %v600_v52 = vmul.f32 0.2, %v516_v46  ;;  %v517_v56 = vadd.f32 %v842_v20, %v287_v33  ;;  %706 = vst [vmem:[%s1046_s3 + $0x108] sm:$0xff] %v664_v62 }
  0xe0   :  { %v289_v40 = vpop.f32.mrf.mxu0  ;;  %v911_v41 = vpop.f32.mrf.mxu1  ;;  %683 = vst [vmem:[%s1046_s3 + $0x50] sm:$0xff] %v641_v50  ;;  %v541_v7 = vadd.f32 %v842_v20, %v347_v34  ;;  %v665_v8 = vsel %vm581_vm8, %v539_v57, %v623_v0  ;;  %vm582_vm10 = vcmp.gt.f32.partialorder %v540_v2, 0.0  ;;  %v624_v10 = vmul.f32 0.2, %v540_v2 }
  0xe1   :  { %v518_v58 = vadd.f32 %v844_v23, %v289_v40  ;;  %v642_v59 = vsel %vm558_vm5, %v516_v46, %v600_v52  ;;  %vm559_vm7 = vcmp.gt.f32.partialorder %v517_v56, 0.0  ;;  %v601_v63 = vmul.f32 0.2, %v517_v56  ;;  %707 = vst [vmem:[%s1046_s3 + $0x110] sm:$0xff] %v665_v8 }
  0xe2   :  { %v291_v48 = vpop.f32.mrf.mxu0  ;;  %v351_v49 = vpop.f32.mrf.mxu1  ;;  %684 = vst [vmem:[%s1046_s3 + $0x58] sm:$0xff] %v642_v59  ;;  %vm583_vm12 = vcmp.gt.f32.partialorder %v541_v7, 0.0  ;;  %v625_v14 = vmul.f32 0.2, %v541_v7  ;;  %v666_v15 = vsel %vm582_vm10, %v540_v2, %v624_v10  ;;  %v542_v24 = vadd.f32 %v844_v23, %v911_v41 }
  0xe3   :  { %vm560_vm9 = vcmp.gt.f32.partialorder %v518_v58, 0.0  ;;  %v602_v1 = vmul.f32 0.2, %v518_v58  ;;  %v643_v5 = vsel %vm559_vm7, %v517_v56, %v601_v63  ;;  %v519_v6 = vadd.f32 %v842_v20, %v291_v48  ;;  %708 = vst [vmem:[%s1046_s3 + $0x118] sm:$0xff] %v666_v15 }
  0xe4   :  { %v293_v53 = vpop.f32.mrf.mxu0  ;;  %v927_v54 = vpop.f32.mrf.mxu1  ;;  %685 = vst [vmem:[%s1046_s3 + $0x60] sm:$0xff] %v643_v5  ;;  %v667_v21 = vsel %vm583_vm12, %v541_v7, %v625_v14  ;;  %v543_v27 = vadd.f32 %v842_v20, %v351_v49  ;;  %vm584_vm14 = vcmp.gt.f32.partialorder %v542_v24, 0.0  ;;  %v626_v30 = vmul.f32 0.2, %v542_v24 }
  0xe5   :  { %v644_v9 = vsel %vm560_vm9, %v518_v58, %v602_v1  ;;  %vm561_vm11 = vcmp.gt.f32.partialorder %v519_v6, 0.0  ;;  %v603_v13 = vmul.f32 0.2, %v519_v6  ;;  %v520_v16 = vadd.f32 %v844_v23, %v293_v53  ;;  %709 = vst [vmem:[%s1046_s3 + $0x120] sm:$0xff] %v667_v21 }
  0xe6   :  { %v297_v60 = vpop.f32.mrf.mxu0  ;;  %v935_v61 = vpop.f32.mrf.mxu1  ;;  %686 = vst [vmem:[%s1046_s3 + $0x68] sm:$0xff] %v644_v9  ;;  %vm585_vm0 = vcmp.gt.f32.partialorder %v543_v27, 0.0  ;;  %v627_v34 = vmul.f32 0.2, %v543_v27  ;;  %v668_v35 = vsel %vm584_vm14, %v542_v24, %v626_v30  ;;  %v544_v37 = vadd.f32 %v844_v23, %v927_v54 }
  0xe7   :  { %v645_v19 = vsel %vm561_vm11, %v519_v6, %v603_v13  ;;  %vm562_vm13 = vcmp.gt.f32.partialorder %v520_v16, 0.0  ;;  %v604_v22 = vmul.f32 0.2, %v520_v16  ;;  %v521_v25 = vadd.f32 %v842_v20, %v297_v60  ;;  %710 = vst [vmem:[%s1046_s3 + $0x128] sm:$0xff] %v668_v35 }
  0xe8   :  { %v299_v3 = vpop.f32.mrf.mxu0  ;;  %v944_v4 = vpop.f32.mrf.mxu1  ;;  %687 = vst [vmem:[%s1046_s3 + $0x70] sm:$0xff] %v645_v19  ;;  %v669_v42 = vsel %vm585_vm0, %v543_v27, %v627_v34  ;;  %v404_v43 = vadd.f32 %v935_v61, %v101_v31  ;;  %vm586_vm2 = vcmp.gt.f32.partialorder %v544_v37, 0.0  ;;  %v628_v45 = vmul.f32 0.2, %v544_v37 }
  0xe9   :  { %v522_v28 = vadd.f32 %v844_v23, %v299_v3  ;;  %v646_v29 = vsel %vm562_vm13, %v520_v16, %v604_v22  ;;  %vm563_vm15 = vcmp.gt.f32.partialorder %v521_v25, 0.0  ;;  %v605_v33 = vmul.f32 0.2, %v521_v25  ;;  %711 = vst [vmem:[%s1046_s3 + $0x130] sm:$0xff] %v669_v42 }
  0xea   :  { %v301_v11 = vpop.f32.mrf.mxu0  ;;  %v361_v12 = vpop.f32.mrf.mxu1  ;;  %688 = vst [vmem:[%s1046_s3 + $0x78] sm:$0xff] %v646_v29  ;;  %446 = vst [vmem:[%s1046_s3 + $0x140] sm:$0x3] %v404_v43  ;;  %v405_v49 = vadd.f32 %v944_v4, %v102_v39  ;;  %v670_v50 = vsel %vm586_vm2, %v544_v37, %v628_v45 }
  0xeb   :  { %vm564_vm1 = vcmp.gt.f32.partialorder %v522_v28, 0.0  ;;  %v606_v36 = vmul.f32 0.2, %v522_v28  ;;  %v523_v38 = vadd.f32 %v842_v20, %v301_v11  ;;  %v647_v41 = vsel %vm563_vm15, %v521_v25, %v605_v33  ;;  %712 = vst [vmem:[%s1046_s3 + $0x138] sm:$0xff] %v670_v50 }
  0xec   :  { %v303_v17 = vpop.f32.mrf.mxu0  ;;  %v362_v18 = vpop.f32.mrf.mxu1  ;;  %689 = vst [vmem:[%s1046_s3 + $0x80] sm:$0xff] %v647_v41  ;;  %447 = vst [vmem:[%s1046_s3 + $0x148] sm:$0x3] %v405_v49 }
  0xed   :  { %v648_v44 = vsel %vm564_vm1, %v522_v28, %v606_v36  ;;  %vm565_vm3 = vcmp.gt.f32.partialorder %v523_v38, 0.0  ;;  %v607_v47 = vmul.f32 0.2, %v523_v38  ;;  %v524_v48 = vadd.f32 %v844_v23, %v303_v17 }
  0xee   :  { %v307_v26 = vpop.f32.mrf.mxu0  ;;  %690 = vst [vmem:[%s1046_s3 + $0x88] sm:$0xff] %v648_v44 }
  0xef   :  { %v649_v51 = vsel %vm565_vm3, %v523_v38, %v607_v47  ;;  %vm566_vm4 = vcmp.gt.f32.partialorder %v524_v48, 0.0  ;;  %v608_v52 = vmul.f32 0.2, %v524_v48  ;;  %v525_v53 = vadd.f32 %v842_v20, %v307_v26 }
  0xf0   :  { %v309_v32 = vpop.f32.mrf.mxu0  ;;  %691 = vst [vmem:[%s1046_s3 + $0x90] sm:$0xff] %v649_v51 }
  0xf1   :  { %v526_v54 = vadd.f32 %v844_v23, %v309_v32  ;;  %v650_v57 = vsel %vm566_vm4, %v524_v48, %v608_v52  ;;  %vm567_vm5 = vcmp.gt.f32.partialorder %v525_v53, 0.0  ;;  %v609_v58 = vmul.f32 0.2, %v525_v53  ;;  %v491_v63 = vld [vmem:[%s1046_s3 + $0x140] sm:$0x3] }
  0xf2   :  { %v311_v40 = vpop.f32.mrf.mxu0  ;;  %692 = vst [vmem:[%s1046_s3 + $0x98] sm:$0xff] %v650_v57  ;;  %v545_v2 = vadd.f32 %v842_v20, %v491_v63 }
  0xf3   :  { %v527_v55 = vadd.f32 %v842_v20, %v311_v40  ;;  %vm568_vm6 = vcmp.gt.f32.partialorder %v526_v54, 0.0  ;;  %v610_v59 = vmul.f32 0.2, %v526_v54  ;;  %v651_v61 = vsel %vm567_vm5, %v525_v53, %v609_v58  ;;  %v492_v4 = vld [vmem:[%s1046_s3 + $0x148] sm:$0x3] }
  0xf4   :  { %v313_v46 = vpop.f32.mrf.mxu0  ;;  %693 = vst [vmem:[%s1046_s3 + $0xa0] sm:$0xff] %v651_v61  ;;  %vm587_vm9 = vcmp.gt.f32.partialorder %v545_v2, 0.0  ;;  %v629_v5 = vmul.f32 0.2, %v545_v2  ;;  %v546_v20 = vadd.f32 %v844_v23, %v492_v4 }
  0xf5   :  { %v528_v56 = vadd.f32 %v844_v23, %v313_v46  ;;  %vm569_vm7 = vcmp.gt.f32.partialorder %v527_v55, 0.0  ;;  %v611_v60 = vmul.f32 0.2, %v527_v55  ;;  %v652_v0 = vsel %vm568_vm6, %v526_v54, %v610_v59 }
  0xf6   :  { %694 = vst [vmem:[%s1046_s3 + $0xa8] sm:$0xff] %v652_v0  ;;  %v671_v6 = vsel %vm587_vm9, %v545_v2, %v629_v5  ;;  %vm588_vm10 = vcmp.gt.f32.partialorder %v546_v20, 0.0  ;;  %v630_v7 = vmul.f32 0.2, %v546_v20 }
  0xf7   :  { %vm570_vm8 = vcmp.gt.f32.partialorder %v528_v56, 0.0  ;;  %v612_v62 = vmul.f32 0.2, %v528_v56  ;;  %v653_v1 = vsel %vm569_vm7, %v527_v55, %v611_v60  ;;  %713 = vst [vmem:[%s1046_s3 + $0x140] sm:$0x3] %v671_v6 }
  0xf8   :  { %695 = vst [vmem:[%s1046_s3 + $0xb0] sm:$0xff] %v653_v1  ;;  %v672_v8 = vsel %vm588_vm10, %v546_v20, %v630_v7 }
  0xf9   :  { %v654_v3 = vsel %vm570_vm8, %v528_v56, %v612_v62  ;;  %714 = vst [vmem:[%s1046_s3 + $0x148] sm:$0x3] %v672_v8 }
  0xfa   :  { %696 = vst [vmem:[%s1046_s3 + $0xb8] sm:$0xff] %v654_v3 }

// kernel: discriminator_forward.4
= control target key start
LH: loop header
LB: loop body
LE: loop exit
PB: predicated region body
PF: predicated region fallthrough
CT: control target
= control target key end

     0   :  { %s5803_s0 = inlined_call_operand.vmem [shape: bf16[32,4096], index: 0, kind: input, shape index: {}]   ;;  %s5804_s1 = inlined_call_operand.vmem [shape: bf16[4096,512], index: 1, kind: input, shape index: {}]   ;;  %s5805_s2 = inlined_call_operand.vmem [shape: f32[1,512], index: 2, kind: input, shape index: {}]   ;;  %s5806_s3 = inlined_call_operand.vmem [shape: f32[32,512], index: 3, kind: output, shape index: {}]  }
   0x1   :  { %5808 = sst [smem:[#allocation6_spill]] %s5803_s0 }
   0x2   :  { %5809 = sst [smem:[#allocation7_spill]] %s5804_s1 }
   0x3   :  { %s4651_s12 = smov 0   ;;  %s4653_s13 = smov 0  }
   0x4   :  { %s4655_s14 = smov 0   ;;  %s4657_s15 = smov 0  }
   0x5   :  { %s4659_s16 = smov 0   ;;  %s4661_s17 = smov 0  }
   0x6   :  { %s4663_s18 = smov 0   ;;  %s4665_s19 = smov 0  }
   0x7   :  { %s4667_s20 = smov 0   ;;  %s4669_s21 = smov 0  }
   0x8   :  { %s4671_s22 = smov 0  }
   0x9 LB: > { %s3754_s23 = sadd.s32 4294967295, %s4628_s22   ;;  %s22_s24 = sadd.s32 1, %s4620_s20  ;;  %s4628_s22 = sphi %s4671_s22, %s13_s22   ;;  %s4624_s21 = sphi %s4669_s21, %s5826_s21   ;;  %s4620_s20 = sphi %s4667_s20, %s5825_s20   ;;  %s4616_s19 = sphi %s4665_s19, %s5824_s19   ;;  %s4612_s18 = sphi %s4663_s18, %s5823_s18   ;;  %s4608_s17 = sphi %s4661_s17, %s5822_s17   ;;  %s4604_s16 = sphi %s4659_s16, %s5821_s16   ;;  %s4600_s15 = sphi %s4657_s15, %s5820_s15   ;;  %s4596_s14 = sphi %s4655_s14, %s5819_s14   ;;  %s4592_s13 = sphi %s4653_s13, %s5818_s13   ;;  %s4588_s12 = sphi %s4651_s12, %s5817_s12  }
   0xa   : > { %p23_p0 = scmp.ge.s32.totalorder %s22_s24, 2  ;;  %s25_s25 = sadd.s32 1, %s4624_s21 }
   0xb   : > { %s32_s26 = sadd.s32 1, %s4608_s17  ;;  %p39_p1 = scmp.ne.s32.totalorder %s4608_s17, %s4604_s16 }
   0xc   : > { %s5828_s24 = smov (%p23_p0, %s22_s24), 0  ;;  %s5830_s25 = smov (!%p23_p0, %s25_s25), %s4624_s21 }
   0xd   : > { %s29_s27 = ssub.s32 %s4620_s20, %s5828_s24  ;;  %p40_p2 = scmp.eq.s32.totalorder %s4628_s22, 0 }
   0xe   : > { %p27_p3 = scmp.ge.s32.totalorder %s5830_s25, 2  ;;  %p30_p4 = scmp.eq.s32.totalorder %s29_s27, 0 }
   0xf   : > { %p4718_p5 = por %p40_p2, %p39_p1  ;;  %s60_s29 = sadd.s32 1, %s4600_s15 }
  0x10   : > { %s5832_s25 = smov (%p27_p3, %s5830_s25), 0  ;;  %p67_p6 = scmp.ne.s32.totalorder %s4600_s15, %s4596_s14 }
  0x11   : > { %5811 = sst [smem:[#allocation5_spill]] %s5832_s25  ;;  %s56_s4 = ssub.s32 %s4624_s21, %s5832_s25 }
  0x12   : > { %s4726_s30 = scalar_select %p30_p4, %s4608_s17, %s32_s26  }
  0x13   : > { %s57_s5 = sor.u32 %s56_s4, %s29_s27  ;;  %p110_p7 = scmp.eq.s32.totalorder %s56_s4, 0 }
  0x14   : > { %p58_p8 = scmp.eq.s32.totalorder %s57_s5, 0  ;;  %p4732_p9 = por %p67_p6, %p40_p2 }
  0x15   : > { %s112_s7 = sadd.s32 1, %s4592_s13  ;;  %p122_p10 = scmp.ne.s32.totalorder %s4592_s13, %s4588_s12 }
  0x16   : > { %s4740_s8 = scalar_select %p58_p8, %s4600_s15, %s60_s29  }
  0x17   : > { %s4743_s9 = scalar_select %p110_p7, %s4592_s13, %s112_s7  }
  0x18   : > { %p123_p11 = scmp.eq.s32.totalorder %s3754_s23, 3  ;;  %p3757_p13 = scmp.ge.s32.totalorder %s4628_s22, 4 }
  0x1a   : > { %p4745_p12 = por %p123_p11, %p122_p10  ;;  %145 = sbr.rel (%p3757_p13) target bundleno = 195 (0xc3), region = 16 }
  0x1f   : > { %148 = sbr.rel (!%p4718_p5) target bundleno = 57 (0x39), region = 20  ;;  %s150_s11 = sand.u32 (%p4718_p5), 1, %s4608_s17  }
  0x20   : > { %s4066_s26 = sshll.u32 (%p4718_p5), %s4620_s20, 6  ;;  %s3758_s27 = sshll.u32 (%p4718_p5), %s150_s11, 8 }
  0x21   : > { %s5814_s0 = sld [smem:[#allocation6_spill]] (%p4718_p5)  ;;  %s4762_s23 = scalar_lea.vmem (%p4718_p5), [#allocation2], %s3758_s27 }
  0x27   : > { %s4757_s5 = scalar_lea.vmem %s5814_s0, %s4066_s26 }
  0x28   : > { %v168_v0 = vld [vmem:[%s4757_s5] sm:$0xff]  ;;  %v170_v1 = vld [vmem:[%s4757_s5 + $0x8] sm:$0xff]  ;;  %v172_v2 = vld [vmem:[%s4757_s5 + $0x10] sm:$0xff] }
  0x29   : > { %169 = vst [vmem:[%s4762_s23] sm:$0xff] %v168_v0  ;;  %171 = vst [vmem:[%s4762_s23 + $0x8] sm:$0xff] %v170_v1  ;;  %v174_v3 = vld [vmem:[%s4757_s5 + $0x18] sm:$0xff]  ;;  %v176_v4 = vld [vmem:[%s4757_s5 + $0x20] sm:$0xff] }
  0x2a   : > { %173 = vst [vmem:[%s4762_s23 + $0x10] sm:$0xff] %v172_v2  ;;  %v178_v5 = vld [vmem:[%s4757_s5 + $0x28] sm:$0xff]  ;;  %175 = vst [vmem:[%s4762_s23 + $0x18] sm:$0xff] %v174_v3  ;;  %v180_v6 = vld [vmem:[%s4757_s5 + $0x30] sm:$0xff] }
  0x2b   : > { %177 = vst [vmem:[%s4762_s23 + $0x20] sm:$0xff] %v176_v4  ;;  %179 = vst [vmem:[%s4762_s23 + $0x28] sm:$0xff] %v178_v5  ;;  %v182_v7 = vld [vmem:[%s4757_s5 + $0x38] sm:$0xff]  ;;  %v184_v8 = vld [vmem:[%s4757_s5 + $0x80] sm:$0xff] }
  0x2c   : > { %181 = vst [vmem:[%s4762_s23 + $0x30] sm:$0xff] %v180_v6  ;;  %183 = vst [vmem:[%s4762_s23 + $0x38] sm:$0xff] %v182_v7  ;;  %v186_v9 = vld [vmem:[%s4757_s5 + $0x88] sm:$0xff]  ;;  %v188_v10 = vld [vmem:[%s4757_s5 + $0x90] sm:$0xff] }
  0x2d   : > { %185 = vst [vmem:[%s4762_s23 + $0x40] sm:$0xff] %v184_v8  ;;  %v190_v11 = vld [vmem:[%s4757_s5 + $0x98] sm:$0xff]  ;;  %187 = vst [vmem:[%s4762_s23 + $0x48] sm:$0xff] %v186_v9  ;;  %v192_v12 = vld [vmem:[%s4757_s5 + $0xa0] sm:$0xff] }
  0x2e   : > { %189 = vst [vmem:[%s4762_s23 + $0x50] sm:$0xff] %v188_v10  ;;  %191 = vst [vmem:[%s4762_s23 + $0x58] sm:$0xff] %v190_v11  ;;  %v194_v13 = vld [vmem:[%s4757_s5 + $0xa8] sm:$0xff]  ;;  %v196_v14 = vld [vmem:[%s4757_s5 + $0xb0] sm:$0xff] }
  0x2f   : > { %193 = vst [vmem:[%s4762_s23 + $0x60] sm:$0xff] %v192_v12  ;;  %195 = vst [vmem:[%s4762_s23 + $0x68] sm:$0xff] %v194_v13  ;;  %v198_v15 = vld [vmem:[%s4757_s5 + $0xb8] sm:$0xff]  ;;  %v200_v16 = vld [vmem:[%s4757_s5 + $0x100] sm:$0xff] }
  0x30   : > { %197 = vst [vmem:[%s4762_s23 + $0x70] sm:$0xff] %v196_v14  ;;  %v202_v17 = vld [vmem:[%s4757_s5 + $0x108] sm:$0xff]  ;;  %199 = vst [vmem:[%s4762_s23 + $0x78] sm:$0xff] %v198_v15  ;;  %v204_v18 = vld [vmem:[%s4757_s5 + $0x110] sm:$0xff] }
  0x31   : > { %201 = vst [vmem:[%s4762_s23 + $0x80] sm:$0xff] %v200_v16  ;;  %203 = vst [vmem:[%s4762_s23 + $0x88] sm:$0xff] %v202_v17  ;;  %v206_v19 = vld [vmem:[%s4757_s5 + $0x118] sm:$0xff]  ;;  %v208_v20 = vld [vmem:[%s4757_s5 + $0x120] sm:$0xff] }
  0x32   : > { %205 = vst [vmem:[%s4762_s23 + $0x90] sm:$0xff] %v204_v18  ;;  %207 = vst [vmem:[%s4762_s23 + $0x98] sm:$0xff] %v206_v19  ;;  %v210_v21 = vld [vmem:[%s4757_s5 + $0x128] sm:$0xff]  ;;  %v212_v22 = vld [vmem:[%s4757_s5 + $0x130] sm:$0xff] }
  0x33   : > { %209 = vst [vmem:[%s4762_s23 + $0xa0] sm:$0xff] %v208_v20  ;;  %v214_v23 = vld [vmem:[%s4757_s5 + $0x138] sm:$0xff]  ;;  %211 = vst [vmem:[%s4762_s23 + $0xa8] sm:$0xff] %v210_v21  ;;  %v216_v24 = vld [vmem:[%s4757_s5 + $0x180] sm:$0xff] }
  0x34   : > { %213 = vst [vmem:[%s4762_s23 + $0xb0] sm:$0xff] %v212_v22  ;;  %215 = vst [vmem:[%s4762_s23 + $0xb8] sm:$0xff] %v214_v23  ;;  %v218_v25 = vld [vmem:[%s4757_s5 + $0x188] sm:$0xff]  ;;  %v220_v26 = vld [vmem:[%s4757_s5 + $0x190] sm:$0xff] }
  0x35   : > { %217 = vst [vmem:[%s4762_s23 + $0xc0] sm:$0xff] %v216_v24  ;;  %219 = vst [vmem:[%s4762_s23 + $0xc8] sm:$0xff] %v218_v25  ;;  %v222_v27 = vld [vmem:[%s4757_s5 + $0x198] sm:$0xff]  ;;  %v224_v28 = vld [vmem:[%s4757_s5 + $0x1a0] sm:$0xff] }
  0x36   : > { %221 = vst [vmem:[%s4762_s23 + $0xd0] sm:$0xff] %v220_v26  ;;  %v226_v29 = vld [vmem:[%s4757_s5 + $0x1a8] sm:$0xff]  ;;  %223 = vst [vmem:[%s4762_s23 + $0xd8] sm:$0xff] %v222_v27  ;;  %v228_v30 = vld [vmem:[%s4757_s5 + $0x1b0] sm:$0xff] }
  0x37   : > { %225 = vst [vmem:[%s4762_s23 + $0xe0] sm:$0xff] %v224_v28  ;;  %227 = vst [vmem:[%s4762_s23 + $0xe8] sm:$0xff] %v226_v29  ;;  %v230_v31 = vld [vmem:[%s4757_s5 + $0x1b8] sm:$0xff] }
  0x38   : > { %229 = vst [vmem:[%s4762_s23 + $0xf0] sm:$0xff] %v228_v30  ;;  %231 = vst [vmem:[%s4762_s23 + $0xf8] sm:$0xff] %v230_v31 }
  0x39 PF: > { %237 = sbr.rel (!%p4732_p9) target bundleno = 195 (0xc3), region = 43  ;;  %s239_s28 = sand.u32 (%p4732_p9), 1, %s4600_s15  }
  0x3a   : > { %s3763_s7 = sshll.u32 (%p4732_p9), %s4624_s21, 1  ;;  %s3761_s11 = sshll.u32 (%p4732_p9), %s239_s28, 11 }
  0x3b   : > { %s4067_s26 = sshll.u32 (%p4732_p9), %s4620_s20, 10  ;;  %s5815_s1 = sld [smem:[#allocation7_spill]] (%p4732_p9) }
  0x3c   : > { %s245_s27 = sadd.s32 (%p4732_p9), %s4067_s26, %s3763_s7  ;;  %s4838_s6 = scalar_lea.vmem (%p4732_p9), [#allocation3], %s3761_s11 }
  0x3d   : > { %s3765_s29 = sshll.u32 (%p4732_p9), %s245_s27, 2 }
  0x41   : > { %s4833_s25 = scalar_lea.vmem %s5815_s1, %s3765_s29 }
  0x42   : > { %v786_v32 = vld [vmem:[%s4833_s25] sm:$0xff]  ;;  %v788_v33 = vld [vmem:[%s4833_s25 + $0x10] sm:$0xff] }
  0x43   : > { %v790_v34 = vld [vmem:[%s4833_s25 + $0x20] sm:$0xff]  ;;  %787 = vst [vmem:[%s4838_s6] sm:$0xff] %v786_v32  ;;  %789 = vst [vmem:[%s4838_s6 + $0x8] sm:$0xff] %v788_v33  ;;  %v792_v35 = vld [vmem:[%s4833_s25 + $0x30] sm:$0xff] }
  0x44   : > { %791 = vst [vmem:[%s4838_s6 + $0x10] sm:$0xff] %v790_v34  ;;  %v794_v36 = vld [vmem:[%s4833_s25 + $0x40] sm:$0xff]  ;;  %v796_v37 = vld [vmem:[%s4833_s25 + $0x50] sm:$0xff]  ;;  %793 = vst [vmem:[%s4838_s6 + $0x18] sm:$0xff] %v792_v35 }
  0x45   : > { %795 = vst [vmem:[%s4838_s6 + $0x20] sm:$0xff] %v794_v36  ;;  %797 = vst [vmem:[%s4838_s6 + $0x28] sm:$0xff] %v796_v37  ;;  %v798_v38 = vld [vmem:[%s4833_s25 + $0x60] sm:$0xff]  ;;  %v800_v39 = vld [vmem:[%s4833_s25 + $0x70] sm:$0xff] }
  0x46   : > { %v802_v40 = vld [vmem:[%s4833_s25 + $0x80] sm:$0xff]  ;;  %799 = vst [vmem:[%s4838_s6 + $0x30] sm:$0xff] %v798_v38  ;;  %801 = vst [vmem:[%s4838_s6 + $0x38] sm:$0xff] %v800_v39  ;;  %v804_v41 = vld [vmem:[%s4833_s25 + $0x90] sm:$0xff] }
  0x47   : > { %803 = vst [vmem:[%s4838_s6 + $0x40] sm:$0xff] %v802_v40  ;;  %v806_v42 = vld [vmem:[%s4833_s25 + $0xa0] sm:$0xff]  ;;  %v808_v43 = vld [vmem:[%s4833_s25 + $0xb0] sm:$0xff]  ;;  %805 = vst [vmem:[%s4838_s6 + $0x48] sm:$0xff] %v804_v41 }
  0x48   : > { %807 = vst [vmem:[%s4838_s6 + $0x50] sm:$0xff] %v806_v42  ;;  %809 = vst [vmem:[%s4838_s6 + $0x58] sm:$0xff] %v808_v43  ;;  %v810_v44 = vld [vmem:[%s4833_s25 + $0xc0] sm:$0xff]  ;;  %v812_v45 = vld [vmem:[%s4833_s25 + $0xd0] sm:$0xff] }
  0x49   : > { %v814_v46 = vld [vmem:[%s4833_s25 + $0xe0] sm:$0xff]  ;;  %811 = vst [vmem:[%s4838_s6 + $0x60] sm:$0xff] %v810_v44  ;;  %813 = vst [vmem:[%s4838_s6 + $0x68] sm:$0xff] %v812_v45  ;;  %v816_v47 = vld [vmem:[%s4833_s25 + $0xf0] sm:$0xff] }
  0x4a   : > { %815 = vst [vmem:[%s4838_s6 + $0x70] sm:$0xff] %v814_v46  ;;  %v818_v48 = vld [vmem:[%s4833_s25 + $0x100] sm:$0xff]  ;;  %v820_v49 = vld [vmem:[%s4833_s25 + $0x110] sm:$0xff]  ;;  %817 = vst [vmem:[%s4838_s6 + $0x78] sm:$0xff] %v816_v47 }
  0x4b   : > { %819 = vst [vmem:[%s4838_s6 + $0x80] sm:$0xff] %v818_v48  ;;  %821 = vst [vmem:[%s4838_s6 + $0x88] sm:$0xff] %v820_v49  ;;  %v822_v50 = vld [vmem:[%s4833_s25 + $0x120] sm:$0xff]  ;;  %v824_v51 = vld [vmem:[%s4833_s25 + $0x130] sm:$0xff] }
  0x4c   : > { %v826_v52 = vld [vmem:[%s4833_s25 + $0x140] sm:$0xff]  ;;  %823 = vst [vmem:[%s4838_s6 + $0x90] sm:$0xff] %v822_v50  ;;  %825 = vst [vmem:[%s4838_s6 + $0x98] sm:$0xff] %v824_v51  ;;  %v828_v53 = vld [vmem:[%s4833_s25 + $0x150] sm:$0xff] }
  0x4d   : > { %827 = vst [vmem:[%s4838_s6 + $0xa0] sm:$0xff] %v826_v52  ;;  %v830_v54 = vld [vmem:[%s4833_s25 + $0x160] sm:$0xff]  ;;  %v832_v55 = vld [vmem:[%s4833_s25 + $0x170] sm:$0xff]  ;;  %829 = vst [vmem:[%s4838_s6 + $0xa8] sm:$0xff] %v828_v53 }
  0x4e   : > { %831 = vst [vmem:[%s4838_s6 + $0xb0] sm:$0xff] %v830_v54  ;;  %833 = vst [vmem:[%s4838_s6 + $0xb8] sm:$0xff] %v832_v55  ;;  %v834_v56 = vld [vmem:[%s4833_s25 + $0x180] sm:$0xff]  ;;  %v836_v57 = vld [vmem:[%s4833_s25 + $0x190] sm:$0xff] }
  0x4f   : > { %v838_v58 = vld [vmem:[%s4833_s25 + $0x1a0] sm:$0xff]  ;;  %835 = vst [vmem:[%s4838_s6 + $0xc0] sm:$0xff] %v834_v56  ;;  %837 = vst [vmem:[%s4838_s6 + $0xc8] sm:$0xff] %v836_v57  ;;  %v840_v59 = vld [vmem:[%s4833_s25 + $0x1b0] sm:$0xff] }
  0x50   : > { %839 = vst [vmem:[%s4838_s6 + $0xd0] sm:$0xff] %v838_v58  ;;  %v842_v60 = vld [vmem:[%s4833_s25 + $0x1c0] sm:$0xff]  ;;  %v844_v61 = vld [vmem:[%s4833_s25 + $0x1d0] sm:$0xff]  ;;  %841 = vst [vmem:[%s4838_s6 + $0xd8] sm:$0xff] %v840_v59 }
  0x51   : > { %843 = vst [vmem:[%s4838_s6 + $0xe0] sm:$0xff] %v842_v60  ;;  %845 = vst [vmem:[%s4838_s6 + $0xe8] sm:$0xff] %v844_v61  ;;  %v846_v62 = vld [vmem:[%s4833_s25 + $0x1e0] sm:$0xff]  ;;  %v848_v63 = vld [vmem:[%s4833_s25 + $0x1f0] sm:$0xff] }
  0x52   : > { %v850_v0 = vld [vmem:[%s4833_s25 + $0x200] sm:$0xff]  ;;  %847 = vst [vmem:[%s4838_s6 + $0xf0] sm:$0xff] %v846_v62  ;;  %849 = vst [vmem:[%s4838_s6 + $0xf8] sm:$0xff] %v848_v63  ;;  %v852_v1 = vld [vmem:[%s4833_s25 + $0x210] sm:$0xff] }
  0x53   : > { %851 = vst [vmem:[%s4838_s6 + $0x100] sm:$0xff] %v850_v0  ;;  %v854_v2 = vld [vmem:[%s4833_s25 + $0x220] sm:$0xff]  ;;  %v856_v3 = vld [vmem:[%s4833_s25 + $0x230] sm:$0xff]  ;;  %853 = vst [vmem:[%s4838_s6 + $0x108] sm:$0xff] %v852_v1 }
  0x54   : > { %855 = vst [vmem:[%s4838_s6 + $0x110] sm:$0xff] %v854_v2  ;;  %857 = vst [vmem:[%s4838_s6 + $0x118] sm:$0xff] %v856_v3  ;;  %v858_v4 = vld [vmem:[%s4833_s25 + $0x240] sm:$0xff]  ;;  %v860_v5 = vld [vmem:[%s4833_s25 + $0x250] sm:$0xff] }
  0x55   : > { %v862_v6 = vld [vmem:[%s4833_s25 + $0x260] sm:$0xff]  ;;  %859 = vst [vmem:[%s4838_s6 + $0x120] sm:$0xff] %v858_v4  ;;  %861 = vst [vmem:[%s4838_s6 + $0x128] sm:$0xff] %v860_v5  ;;  %v864_v7 = vld [vmem:[%s4833_s25 + $0x270] sm:$0xff] }
  0x56   : > { %863 = vst [vmem:[%s4838_s6 + $0x130] sm:$0xff] %v862_v6  ;;  %v866_v8 = vld [vmem:[%s4833_s25 + $0x280] sm:$0xff]  ;;  %v868_v9 = vld [vmem:[%s4833_s25 + $0x290] sm:$0xff]  ;;  %865 = vst [vmem:[%s4838_s6 + $0x138] sm:$0xff] %v864_v7 }
  0x57   : > { %867 = vst [vmem:[%s4838_s6 + $0x140] sm:$0xff] %v866_v8  ;;  %869 = vst [vmem:[%s4838_s6 + $0x148] sm:$0xff] %v868_v9  ;;  %v870_v10 = vld [vmem:[%s4833_s25 + $0x2a0] sm:$0xff]  ;;  %v872_v11 = vld [vmem:[%s4833_s25 + $0x2b0] sm:$0xff] }
  0x58   : > { %v874_v12 = vld [vmem:[%s4833_s25 + $0x2c0] sm:$0xff]  ;;  %871 = vst [vmem:[%s4838_s6 + $0x150] sm:$0xff] %v870_v10  ;;  %873 = vst [vmem:[%s4838_s6 + $0x158] sm:$0xff] %v872_v11  ;;  %v876_v13 = vld [vmem:[%s4833_s25 + $0x2d0] sm:$0xff] }
  0x59   : > { %875 = vst [vmem:[%s4838_s6 + $0x160] sm:$0xff] %v874_v12  ;;  %v878_v14 = vld [vmem:[%s4833_s25 + $0x2e0] sm:$0xff]  ;;  %v880_v15 = vld [vmem:[%s4833_s25 + $0x2f0] sm:$0xff]  ;;  %877 = vst [vmem:[%s4838_s6 + $0x168] sm:$0xff] %v876_v13 }
  0x5a   : > { %879 = vst [vmem:[%s4838_s6 + $0x170] sm:$0xff] %v878_v14  ;;  %881 = vst [vmem:[%s4838_s6 + $0x178] sm:$0xff] %v880_v15  ;;  %v882_v16 = vld [vmem:[%s4833_s25 + $0x300] sm:$0xff]  ;;  %v884_v17 = vld [vmem:[%s4833_s25 + $0x310] sm:$0xff] }
  0x5b   : > { %v886_v18 = vld [vmem:[%s4833_s25 + $0x320] sm:$0xff]  ;;  %883 = vst [vmem:[%s4838_s6 + $0x180] sm:$0xff] %v882_v16  ;;  %885 = vst [vmem:[%s4838_s6 + $0x188] sm:$0xff] %v884_v17  ;;  %v888_v19 = vld [vmem:[%s4833_s25 + $0x330] sm:$0xff] }
  0x5c   : > { %887 = vst [vmem:[%s4838_s6 + $0x190] sm:$0xff] %v886_v18  ;;  %v890_v20 = vld [vmem:[%s4833_s25 + $0x340] sm:$0xff]  ;;  %v892_v21 = vld [vmem:[%s4833_s25 + $0x350] sm:$0xff]  ;;  %889 = vst [vmem:[%s4838_s6 + $0x198] sm:$0xff] %v888_v19 }
  0x5d   : > { %891 = vst [vmem:[%s4838_s6 + $0x1a0] sm:$0xff] %v890_v20  ;;  %893 = vst [vmem:[%s4838_s6 + $0x1a8] sm:$0xff] %v892_v21  ;;  %v894_v22 = vld [vmem:[%s4833_s25 + $0x360] sm:$0xff]  ;;  %v896_v23 = vld [vmem:[%s4833_s25 + $0x370] sm:$0xff] }
  0x5e   : > { %v898_v24 = vld [vmem:[%s4833_s25 + $0x380] sm:$0xff]  ;;  %895 = vst [vmem:[%s4838_s6 + $0x1b0] sm:$0xff] %v894_v22  ;;  %897 = vst [vmem:[%s4838_s6 + $0x1b8] sm:$0xff] %v896_v23  ;;  %v900_v25 = vld [vmem:[%s4833_s25 + $0x390] sm:$0xff] }
  0x5f   : > { %899 = vst [vmem:[%s4838_s6 + $0x1c0] sm:$0xff] %v898_v24  ;;  %v902_v26 = vld [vmem:[%s4833_s25 + $0x3a0] sm:$0xff]  ;;  %v904_v27 = vld [vmem:[%s4833_s25 + $0x3b0] sm:$0xff]  ;;  %901 = vst [vmem:[%s4838_s6 + $0x1c8] sm:$0xff] %v900_v25 }
  0x60   : > { %903 = vst [vmem:[%s4838_s6 + $0x1d0] sm:$0xff] %v902_v26  ;;  %905 = vst [vmem:[%s4838_s6 + $0x1d8] sm:$0xff] %v904_v27  ;;  %v906_v28 = vld [vmem:[%s4833_s25 + $0x3c0] sm:$0xff]  ;;  %v908_v29 = vld [vmem:[%s4833_s25 + $0x3d0] sm:$0xff] }
  0x61   : > { %v910_v30 = vld [vmem:[%s4833_s25 + $0x3e0] sm:$0xff]  ;;  %907 = vst [vmem:[%s4838_s6 + $0x1e0] sm:$0xff] %v906_v28  ;;  %909 = vst [vmem:[%s4838_s6 + $0x1e8] sm:$0xff] %v908_v29  ;;  %v912_v31 = vld [vmem:[%s4833_s25 + $0x3f0] sm:$0xff] }
  0x62   : > { %911 = vst [vmem:[%s4838_s6 + $0x1f0] sm:$0xff] %v910_v30  ;;  %v914_v32 = vld [vmem:[%s4833_s25 + $0x400] sm:$0xff]  ;;  %v916_v33 = vld [vmem:[%s4833_s25 + $0x410] sm:$0xff]  ;;  %913 = vst [vmem:[%s4838_s6 + $0x1f8] sm:$0xff] %v912_v31 }
  0x63   : > { %915 = vst [vmem:[%s4838_s6 + $0x200] sm:$0xff] %v914_v32  ;;  %917 = vst [vmem:[%s4838_s6 + $0x208] sm:$0xff] %v916_v33  ;;  %v918_v34 = vld [vmem:[%s4833_s25 + $0x420] sm:$0xff]  ;;  %v920_v35 = vld [vmem:[%s4833_s25 + $0x430] sm:$0xff] }
  0x64   : > { %v922_v36 = vld [vmem:[%s4833_s25 + $0x440] sm:$0xff]  ;;  %919 = vst [vmem:[%s4838_s6 + $0x210] sm:$0xff] %v918_v34  ;;  %921 = vst [vmem:[%s4838_s6 + $0x218] sm:$0xff] %v920_v35  ;;  %v924_v37 = vld [vmem:[%s4833_s25 + $0x450] sm:$0xff] }
  0x65   : > { %923 = vst [vmem:[%s4838_s6 + $0x220] sm:$0xff] %v922_v36  ;;  %v926_v38 = vld [vmem:[%s4833_s25 + $0x460] sm:$0xff]  ;;  %v928_v39 = vld [vmem:[%s4833_s25 + $0x470] sm:$0xff]  ;;  %925 = vst [vmem:[%s4838_s6 + $0x228] sm:$0xff] %v924_v37 }
  0x66   : > { %927 = vst [vmem:[%s4838_s6 + $0x230] sm:$0xff] %v926_v38  ;;  %929 = vst [vmem:[%s4838_s6 + $0x238] sm:$0xff] %v928_v39  ;;  %v930_v40 = vld [vmem:[%s4833_s25 + $0x480] sm:$0xff]  ;;  %v932_v41 = vld [vmem:[%s4833_s25 + $0x490] sm:$0xff] }
  0x67   : > { %v934_v42 = vld [vmem:[%s4833_s25 + $0x4a0] sm:$0xff]  ;;  %931 = vst [vmem:[%s4838_s6 + $0x240] sm:$0xff] %v930_v40  ;;  %933 = vst [vmem:[%s4838_s6 + $0x248] sm:$0xff] %v932_v41  ;;  %v936_v43 = vld [vmem:[%s4833_s25 + $0x4b0] sm:$0xff] }
  0x68   : > { %935 = vst [vmem:[%s4838_s6 + $0x250] sm:$0xff] %v934_v42  ;;  %v938_v44 = vld [vmem:[%s4833_s25 + $0x4c0] sm:$0xff]  ;;  %v940_v45 = vld [vmem:[%s4833_s25 + $0x4d0] sm:$0xff]  ;;  %937 = vst [vmem:[%s4838_s6 + $0x258] sm:$0xff] %v936_v43 }
  0x69   : > { %939 = vst [vmem:[%s4838_s6 + $0x260] sm:$0xff] %v938_v44  ;;  %941 = vst [vmem:[%s4838_s6 + $0x268] sm:$0xff] %v940_v45  ;;  %v942_v46 = vld [vmem:[%s4833_s25 + $0x4e0] sm:$0xff]  ;;  %v944_v47 = vld [vmem:[%s4833_s25 + $0x4f0] sm:$0xff] }
  0x6a   : > { %v946_v48 = vld [vmem:[%s4833_s25 + $0x500] sm:$0xff]  ;;  %943 = vst [vmem:[%s4838_s6 + $0x270] sm:$0xff] %v942_v46  ;;  %945 = vst [vmem:[%s4838_s6 + $0x278] sm:$0xff] %v944_v47  ;;  %v948_v49 = vld [vmem:[%s4833_s25 + $0x510] sm:$0xff] }
  0x6b   : > { %947 = vst [vmem:[%s4838_s6 + $0x280] sm:$0xff] %v946_v48  ;;  %v950_v50 = vld [vmem:[%s4833_s25 + $0x520] sm:$0xff]  ;;  %v952_v51 = vld [vmem:[%s4833_s25 + $0x530] sm:$0xff]  ;;  %949 = vst [vmem:[%s4838_s6 + $0x288] sm:$0xff] %v948_v49 }
  0x6c   : > { %951 = vst [vmem:[%s4838_s6 + $0x290] sm:$0xff] %v950_v50  ;;  %953 = vst [vmem:[%s4838_s6 + $0x298] sm:$0xff] %v952_v51  ;;  %v954_v52 = vld [vmem:[%s4833_s25 + $0x540] sm:$0xff]  ;;  %v956_v53 = vld [vmem:[%s4833_s25 + $0x550] sm:$0xff] }
  0x6d   : > { %v958_v54 = vld [vmem:[%s4833_s25 + $0x560] sm:$0xff]  ;;  %955 = vst [vmem:[%s4838_s6 + $0x2a0] sm:$0xff] %v954_v52  ;;  %957 = vst [vmem:[%s4838_s6 + $0x2a8] sm:$0xff] %v956_v53  ;;  %v960_v55 = vld [vmem:[%s4833_s25 + $0x570] sm:$0xff] }
  0x6e   : > { %959 = vst [vmem:[%s4838_s6 + $0x2b0] sm:$0xff] %v958_v54  ;;  %v962_v56 = vld [vmem:[%s4833_s25 + $0x580] sm:$0xff]  ;;  %v964_v57 = vld [vmem:[%s4833_s25 + $0x590] sm:$0xff]  ;;  %961 = vst [vmem:[%s4838_s6 + $0x2b8] sm:$0xff] %v960_v55 }
  0x6f   : > { %963 = vst [vmem:[%s4838_s6 + $0x2c0] sm:$0xff] %v962_v56  ;;  %965 = vst [vmem:[%s4838_s6 + $0x2c8] sm:$0xff] %v964_v57  ;;  %v966_v58 = vld [vmem:[%s4833_s25 + $0x5a0] sm:$0xff]  ;;  %v968_v59 = vld [vmem:[%s4833_s25 + $0x5b0] sm:$0xff] }
  0x70   : > { %v970_v60 = vld [vmem:[%s4833_s25 + $0x5c0] sm:$0xff]  ;;  %967 = vst [vmem:[%s4838_s6 + $0x2d0] sm:$0xff] %v966_v58  ;;  %969 = vst [vmem:[%s4838_s6 + $0x2d8] sm:$0xff] %v968_v59  ;;  %v972_v61 = vld [vmem:[%s4833_s25 + $0x5d0] sm:$0xff] }
  0x71   : > { %971 = vst [vmem:[%s4838_s6 + $0x2e0] sm:$0xff] %v970_v60  ;;  %v974_v62 = vld [vmem:[%s4833_s25 + $0x5e0] sm:$0xff]  ;;  %v976_v63 = vld [vmem:[%s4833_s25 + $0x5f0] sm:$0xff]  ;;  %973 = vst [vmem:[%s4838_s6 + $0x2e8] sm:$0xff] %v972_v61 }
  0x72   : > { %975 = vst [vmem:[%s4838_s6 + $0x2f0] sm:$0xff] %v974_v62  ;;  %977 = vst [vmem:[%s4838_s6 + $0x2f8] sm:$0xff] %v976_v63  ;;  %v978_v0 = vld [vmem:[%s4833_s25 + $0x600] sm:$0xff]  ;;  %v980_v1 = vld [vmem:[%s4833_s25 + $0x610] sm:$0xff] }
  0x73   : > { %v982_v2 = vld [vmem:[%s4833_s25 + $0x620] sm:$0xff]  ;;  %979 = vst [vmem:[%s4838_s6 + $0x300] sm:$0xff] %v978_v0  ;;  %981 = vst [vmem:[%s4838_s6 + $0x308] sm:$0xff] %v980_v1  ;;  %v984_v3 = vld [vmem:[%s4833_s25 + $0x630] sm:$0xff] }
  0x74   : > { %983 = vst [vmem:[%s4838_s6 + $0x310] sm:$0xff] %v982_v2  ;;  %v986_v4 = vld [vmem:[%s4833_s25 + $0x640] sm:$0xff]  ;;  %v988_v5 = vld [vmem:[%s4833_s25 + $0x650] sm:$0xff]  ;;  %985 = vst [vmem:[%s4838_s6 + $0x318] sm:$0xff] %v984_v3 }
  0x75   : > { %987 = vst [vmem:[%s4838_s6 + $0x320] sm:$0xff] %v986_v4  ;;  %989 = vst [vmem:[%s4838_s6 + $0x328] sm:$0xff] %v988_v5  ;;  %v990_v6 = vld [vmem:[%s4833_s25 + $0x660] sm:$0xff]  ;;  %v992_v7 = vld [vmem:[%s4833_s25 + $0x670] sm:$0xff] }
  0x76   : > { %v994_v8 = vld [vmem:[%s4833_s25 + $0x680] sm:$0xff]  ;;  %991 = vst [vmem:[%s4838_s6 + $0x330] sm:$0xff] %v990_v6  ;;  %993 = vst [vmem:[%s4838_s6 + $0x338] sm:$0xff] %v992_v7  ;;  %v996_v9 = vld [vmem:[%s4833_s25 + $0x690] sm:$0xff] }
  0x77   : > { %995 = vst [vmem:[%s4838_s6 + $0x340] sm:$0xff] %v994_v8  ;;  %v998_v10 = vld [vmem:[%s4833_s25 + $0x6a0] sm:$0xff]  ;;  %v1000_v11 = vld [vmem:[%s4833_s25 + $0x6b0] sm:$0xff]  ;;  %997 = vst [vmem:[%s4838_s6 + $0x348] sm:$0xff] %v996_v9 }
  0x78   : > { %999 = vst [vmem:[%s4838_s6 + $0x350] sm:$0xff] %v998_v10  ;;  %1001 = vst [vmem:[%s4838_s6 + $0x358] sm:$0xff] %v1000_v11  ;;  %v1002_v12 = vld [vmem:[%s4833_s25 + $0x6c0] sm:$0xff]  ;;  %v1004_v13 = vld [vmem:[%s4833_s25 + $0x6d0] sm:$0xff] }
  0x79   : > { %v1006_v14 = vld [vmem:[%s4833_s25 + $0x6e0] sm:$0xff]  ;;  %1003 = vst [vmem:[%s4838_s6 + $0x360] sm:$0xff] %v1002_v12  ;;  %1005 = vst [vmem:[%s4838_s6 + $0x368] sm:$0xff] %v1004_v13  ;;  %v1008_v15 = vld [vmem:[%s4833_s25 + $0x6f0] sm:$0xff] }
  0x7a   : > { %1007 = vst [vmem:[%s4838_s6 + $0x370] sm:$0xff] %v1006_v14  ;;  %v1010_v16 = vld [vmem:[%s4833_s25 + $0x700] sm:$0xff]  ;;  %v1012_v17 = vld [vmem:[%s4833_s25 + $0x710] sm:$0xff]  ;;  %1009 = vst [vmem:[%s4838_s6 + $0x378] sm:$0xff] %v1008_v15 }
  0x7b   : > { %1011 = vst [vmem:[%s4838_s6 + $0x380] sm:$0xff] %v1010_v16  ;;  %1013 = vst [vmem:[%s4838_s6 + $0x388] sm:$0xff] %v1012_v17  ;;  %v1014_v18 = vld [vmem:[%s4833_s25 + $0x720] sm:$0xff]  ;;  %v1016_v19 = vld [vmem:[%s4833_s25 + $0x730] sm:$0xff] }
  0x7c   : > { %v1018_v20 = vld [vmem:[%s4833_s25 + $0x740] sm:$0xff]  ;;  %1015 = vst [vmem:[%s4838_s6 + $0x390] sm:$0xff] %v1014_v18  ;;  %1017 = vst [vmem:[%s4838_s6 + $0x398] sm:$0xff] %v1016_v19  ;;  %v1020_v21 = vld [vmem:[%s4833_s25 + $0x750] sm:$0xff] }
  0x7d   : > { %1019 = vst [vmem:[%s4838_s6 + $0x3a0] sm:$0xff] %v1018_v20  ;;  %v1022_v22 = vld [vmem:[%s4833_s25 + $0x760] sm:$0xff]  ;;  %v1024_v23 = vld [vmem:[%s4833_s25 + $0x770] sm:$0xff]  ;;  %1021 = vst [vmem:[%s4838_s6 + $0x3a8] sm:$0xff] %v1020_v21 }
  0x7e   : > { %1023 = vst [vmem:[%s4838_s6 + $0x3b0] sm:$0xff] %v1022_v22  ;;  %1025 = vst [vmem:[%s4838_s6 + $0x3b8] sm:$0xff] %v1024_v23  ;;  %v1026_v24 = vld [vmem:[%s4833_s25 + $0x780] sm:$0xff]  ;;  %v1028_v25 = vld [vmem:[%s4833_s25 + $0x790] sm:$0xff] }
  0x7f   : > { %v1030_v26 = vld [vmem:[%s4833_s25 + $0x7a0] sm:$0xff]  ;;  %1027 = vst [vmem:[%s4838_s6 + $0x3c0] sm:$0xff] %v1026_v24  ;;  %1029 = vst [vmem:[%s4838_s6 + $0x3c8] sm:$0xff] %v1028_v25  ;;  %v1032_v27 = vld [vmem:[%s4833_s25 + $0x7b0] sm:$0xff] }
  0x80   : > { %1031 = vst [vmem:[%s4838_s6 + $0x3d0] sm:$0xff] %v1030_v26  ;;  %v1034_v28 = vld [vmem:[%s4833_s25 + $0x7c0] sm:$0xff]  ;;  %v1036_v29 = vld [vmem:[%s4833_s25 + $0x7d0] sm:$0xff]  ;;  %1033 = vst [vmem:[%s4838_s6 + $0x3d8] sm:$0xff] %v1032_v27 }
  0x81   : > { %1035 = vst [vmem:[%s4838_s6 + $0x3e0] sm:$0xff] %v1034_v28  ;;  %1037 = vst [vmem:[%s4838_s6 + $0x3e8] sm:$0xff] %v1036_v29  ;;  %v1038_v30 = vld [vmem:[%s4833_s25 + $0x7e0] sm:$0xff]  ;;  %v1040_v31 = vld [vmem:[%s4833_s25 + $0x7f0] sm:$0xff] }
  0x82   : > { %v1042_v32 = vld [vmem:[%s4833_s25 + $0x800] sm:$0xff]  ;;  %1039 = vst [vmem:[%s4838_s6 + $0x3f0] sm:$0xff] %v1038_v30  ;;  %1041 = vst [vmem:[%s4838_s6 + $0x3f8] sm:$0xff] %v1040_v31  ;;  %v1044_v33 = vld [vmem:[%s4833_s25 + $0x810] sm:$0xff] }
  0x83   : > { %1043 = vst [vmem:[%s4838_s6 + $0x400] sm:$0xff] %v1042_v32  ;;  %v1046_v34 = vld [vmem:[%s4833_s25 + $0x820] sm:$0xff]  ;;  %v1048_v35 = vld [vmem:[%s4833_s25 + $0x830] sm:$0xff]  ;;  %1045 = vst [vmem:[%s4838_s6 + $0x408] sm:$0xff] %v1044_v33 }
  0x84   : > { %1047 = vst [vmem:[%s4838_s6 + $0x410] sm:$0xff] %v1046_v34  ;;  %1049 = vst [vmem:[%s4838_s6 + $0x418] sm:$0xff] %v1048_v35  ;;  %v1050_v36 = vld [vmem:[%s4833_s25 + $0x840] sm:$0xff]  ;;  %v1052_v37 = vld [vmem:[%s4833_s25 + $0x850] sm:$0xff] }
  0x85   : > { %v1054_v38 = vld [vmem:[%s4833_s25 + $0x860] sm:$0xff]  ;;  %1051 = vst [vmem:[%s4838_s6 + $0x420] sm:$0xff] %v1050_v36  ;;  %1053 = vst [vmem:[%s4838_s6 + $0x428] sm:$0xff] %v1052_v37  ;;  %v1056_v39 = vld [vmem:[%s4833_s25 + $0x870] sm:$0xff] }
  0x86   : > { %1055 = vst [vmem:[%s4838_s6 + $0x430] sm:$0xff] %v1054_v38  ;;  %v1058_v40 = vld [vmem:[%s4833_s25 + $0x880] sm:$0xff]  ;;  %v1060_v41 = vld [vmem:[%s4833_s25 + $0x890] sm:$0xff]  ;;  %1057 = vst [vmem:[%s4838_s6 + $0x438] sm:$0xff] %v1056_v39 }
  0x87   : > { %1059 = vst [vmem:[%s4838_s6 + $0x440] sm:$0xff] %v1058_v40  ;;  %1061 = vst [vmem:[%s4838_s6 + $0x448] sm:$0xff] %v1060_v41  ;;  %v1062_v42 = vld [vmem:[%s4833_s25 + $0x8a0] sm:$0xff]  ;;  %v1064_v43 = vld [vmem:[%s4833_s25 + $0x8b0] sm:$0xff] }
  0x88   : > { %v1066_v44 = vld [vmem:[%s4833_s25 + $0x8c0] sm:$0xff]  ;;  %1063 = vst [vmem:[%s4838_s6 + $0x450] sm:$0xff] %v1062_v42  ;;  %1065 = vst [vmem:[%s4838_s6 + $0x458] sm:$0xff] %v1064_v43  ;;  %v1068_v45 = vld [vmem:[%s4833_s25 + $0x8d0] sm:$0xff] }
  0x89   : > { %1067 = vst [vmem:[%s4838_s6 + $0x460] sm:$0xff] %v1066_v44  ;;  %v1070_v46 = vld [vmem:[%s4833_s25 + $0x8e0] sm:$0xff]  ;;  %v1072_v47 = vld [vmem:[%s4833_s25 + $0x8f0] sm:$0xff]  ;;  %1069 = vst [vmem:[%s4838_s6 + $0x468] sm:$0xff] %v1068_v45 }
  0x8a   : > { %1071 = vst [vmem:[%s4838_s6 + $0x470] sm:$0xff] %v1070_v46  ;;  %1073 = vst [vmem:[%s4838_s6 + $0x478] sm:$0xff] %v1072_v47  ;;  %v1074_v48 = vld [vmem:[%s4833_s25 + $0x900] sm:$0xff]  ;;  %v1076_v49 = vld [vmem:[%s4833_s25 + $0x910] sm:$0xff] }
  0x8b   : > { %v1078_v50 = vld [vmem:[%s4833_s25 + $0x920] sm:$0xff]  ;;  %1075 = vst [vmem:[%s4838_s6 + $0x480] sm:$0xff] %v1074_v48  ;;  %1077 = vst [vmem:[%s4838_s6 + $0x488] sm:$0xff] %v1076_v49  ;;  %v1080_v51 = vld [vmem:[%s4833_s25 + $0x930] sm:$0xff] }
  0x8c   : > { %1079 = vst [vmem:[%s4838_s6 + $0x490] sm:$0xff] %v1078_v50  ;;  %v1082_v52 = vld [vmem:[%s4833_s25 + $0x940] sm:$0xff]  ;;  %v1084_v53 = vld [vmem:[%s4833_s25 + $0x950] sm:$0xff]  ;;  %1081 = vst [vmem:[%s4838_s6 + $0x498] sm:$0xff] %v1080_v51 }
  0x8d   : > { %1083 = vst [vmem:[%s4838_s6 + $0x4a0] sm:$0xff] %v1082_v52  ;;  %1085 = vst [vmem:[%s4838_s6 + $0x4a8] sm:$0xff] %v1084_v53  ;;  %v1086_v54 = vld [vmem:[%s4833_s25 + $0x960] sm:$0xff]  ;;  %v1088_v55 = vld [vmem:[%s4833_s25 + $0x970] sm:$0xff] }
  0x8e   : > { %v1090_v56 = vld [vmem:[%s4833_s25 + $0x980] sm:$0xff]  ;;  %1087 = vst [vmem:[%s4838_s6 + $0x4b0] sm:$0xff] %v1086_v54  ;;  %1089 = vst [vmem:[%s4838_s6 + $0x4b8] sm:$0xff] %v1088_v55  ;;  %v1092_v57 = vld [vmem:[%s4833_s25 + $0x990] sm:$0xff] }
  0x8f   : > { %1091 = vst [vmem:[%s4838_s6 + $0x4c0] sm:$0xff] %v1090_v56  ;;  %v1094_v58 = vld [vmem:[%s4833_s25 + $0x9a0] sm:$0xff]  ;;  %v1096_v59 = vld [vmem:[%s4833_s25 + $0x9b0] sm:$0xff]  ;;  %1093 = vst [vmem:[%s4838_s6 + $0x4c8] sm:$0xff] %v1092_v57 }
  0x90   : > { %1095 = vst [vmem:[%s4838_s6 + $0x4d0] sm:$0xff] %v1094_v58  ;;  %1097 = vst [vmem:[%s4838_s6 + $0x4d8] sm:$0xff] %v1096_v59  ;;  %v1098_v60 = vld [vmem:[%s4833_s25 + $0x9c0] sm:$0xff]  ;;  %v1100_v61 = vld [vmem:[%s4833_s25 + $0x9d0] sm:$0xff] }
  0x91   : > { %v1102_v62 = vld [vmem:[%s4833_s25 + $0x9e0] sm:$0xff]  ;;  %1099 = vst [vmem:[%s4838_s6 + $0x4e0] sm:$0xff] %v1098_v60  ;;  %1101 = vst [vmem:[%s4838_s6 + $0x4e8] sm:$0xff] %v1100_v61  ;;  %v1104_v63 = vld [vmem:[%s4833_s25 + $0x9f0] sm:$0xff] }
  0x92   : > { %1103 = vst [vmem:[%s4838_s6 + $0x4f0] sm:$0xff] %v1102_v62  ;;  %v1106_v0 = vld [vmem:[%s4833_s25 + $0xa00] sm:$0xff]  ;;  %v1108_v1 = vld [vmem:[%s4833_s25 + $0xa10] sm:$0xff]  ;;  %1105 = vst [vmem:[%s4838_s6 + $0x4f8] sm:$0xff] %v1104_v63 }
  0x93   : > { %1107 = vst [vmem:[%s4838_s6 + $0x500] sm:$0xff] %v1106_v0  ;;  %1109 = vst [vmem:[%s4838_s6 + $0x508] sm:$0xff] %v1108_v1  ;;  %v1110_v2 = vld [vmem:[%s4833_s25 + $0xa20] sm:$0xff]  ;;  %v1112_v3 = vld [vmem:[%s4833_s25 + $0xa30] sm:$0xff] }
  0x94   : > { %v1114_v4 = vld [vmem:[%s4833_s25 + $0xa40] sm:$0xff]  ;;  %1111 = vst [vmem:[%s4838_s6 + $0x510] sm:$0xff] %v1110_v2  ;;  %1113 = vst [vmem:[%s4838_s6 + $0x518] sm:$0xff] %v1112_v3  ;;  %v1116_v5 = vld [vmem:[%s4833_s25 + $0xa50] sm:$0xff] }
  0x95   : > { %1115 = vst [vmem:[%s4838_s6 + $0x520] sm:$0xff] %v1114_v4  ;;  %v1118_v6 = vld [vmem:[%s4833_s25 + $0xa60] sm:$0xff]  ;;  %v1120_v7 = vld [vmem:[%s4833_s25 + $0xa70] sm:$0xff]  ;;  %1117 = vst [vmem:[%s4838_s6 + $0x528] sm:$0xff] %v1116_v5 }
  0x96   : > { %1119 = vst [vmem:[%s4838_s6 + $0x530] sm:$0xff] %v1118_v6  ;;  %1121 = vst [vmem:[%s4838_s6 + $0x538] sm:$0xff] %v1120_v7  ;;  %v1122_v8 = vld [vmem:[%s4833_s25 + $0xa80] sm:$0xff]  ;;  %v1124_v9 = vld [vmem:[%s4833_s25 + $0xa90] sm:$0xff] }
  0x97   : > { %v1126_v10 = vld [vmem:[%s4833_s25 + $0xaa0] sm:$0xff]  ;;  %1123 = vst [vmem:[%s4838_s6 + $0x540] sm:$0xff] %v1122_v8  ;;  %1125 = vst [vmem:[%s4838_s6 + $0x548] sm:$0xff] %v1124_v9  ;;  %v1128_v11 = vld [vmem:[%s4833_s25 + $0xab0] sm:$0xff] }
  0x98   : > { %1127 = vst [vmem:[%s4838_s6 + $0x550] sm:$0xff] %v1126_v10  ;;  %v1130_v12 = vld [vmem:[%s4833_s25 + $0xac0] sm:$0xff]  ;;  %v1132_v13 = vld [vmem:[%s4833_s25 + $0xad0] sm:$0xff]  ;;  %1129 = vst [vmem:[%s4838_s6 + $0x558] sm:$0xff] %v1128_v11 }
  0x99   : > { %1131 = vst [vmem:[%s4838_s6 + $0x560] sm:$0xff] %v1130_v12  ;;  %1133 = vst [vmem:[%s4838_s6 + $0x568] sm:$0xff] %v1132_v13  ;;  %v1134_v14 = vld [vmem:[%s4833_s25 + $0xae0] sm:$0xff]  ;;  %v1136_v15 = vld [vmem:[%s4833_s25 + $0xaf0] sm:$0xff] }
  0x9a   : > { %v1138_v16 = vld [vmem:[%s4833_s25 + $0xb00] sm:$0xff]  ;;  %1135 = vst [vmem:[%s4838_s6 + $0x570] sm:$0xff] %v1134_v14  ;;  %1137 = vst [vmem:[%s4838_s6 + $0x578] sm:$0xff] %v1136_v15  ;;  %v1140_v17 = vld [vmem:[%s4833_s25 + $0xb10] sm:$0xff] }
  0x9b   : > { %1139 = vst [vmem:[%s4838_s6 + $0x580] sm:$0xff] %v1138_v16  ;;  %v1142_v18 = vld [vmem:[%s4833_s25 + $0xb20] sm:$0xff]  ;;  %v1144_v19 = vld [vmem:[%s4833_s25 + $0xb30] sm:$0xff]  ;;  %1141 = vst [vmem:[%s4838_s6 + $0x588] sm:$0xff] %v1140_v17 }
  0x9c   : > { %1143 = vst [vmem:[%s4838_s6 + $0x590] sm:$0xff] %v1142_v18  ;;  %1145 = vst [vmem:[%s4838_s6 + $0x598] sm:$0xff] %v1144_v19  ;;  %v1146_v20 = vld [vmem:[%s4833_s25 + $0xb40] sm:$0xff]  ;;  %v1148_v21 = vld [vmem:[%s4833_s25 + $0xb50] sm:$0xff] }
  0x9d   : > { %v1150_v22 = vld [vmem:[%s4833_s25 + $0xb60] sm:$0xff]  ;;  %1147 = vst [vmem:[%s4838_s6 + $0x5a0] sm:$0xff] %v1146_v20  ;;  %1149 = vst [vmem:[%s4838_s6 + $0x5a8] sm:$0xff] %v1148_v21  ;;  %v1152_v23 = vld [vmem:[%s4833_s25 + $0xb70] sm:$0xff] }
  0x9e   : > { %1151 = vst [vmem:[%s4838_s6 + $0x5b0] sm:$0xff] %v1150_v22  ;;  %v1154_v24 = vld [vmem:[%s4833_s25 + $0xb80] sm:$0xff]  ;;  %v1156_v25 = vld [vmem:[%s4833_s25 + $0xb90] sm:$0xff]  ;;  %1153 = vst [vmem:[%s4838_s6 + $0x5b8] sm:$0xff] %v1152_v23 }
  0x9f   : > { %1155 = vst [vmem:[%s4838_s6 + $0x5c0] sm:$0xff] %v1154_v24  ;;  %1157 = vst [vmem:[%s4838_s6 + $0x5c8] sm:$0xff] %v1156_v25  ;;  %v1158_v26 = vld [vmem:[%s4833_s25 + $0xba0] sm:$0xff]  ;;  %v1160_v27 = vld [vmem:[%s4833_s25 + $0xbb0] sm:$0xff] }
  0xa0   : > { %v1162_v28 = vld [vmem:[%s4833_s25 + $0xbc0] sm:$0xff]  ;;  %1159 = vst [vmem:[%s4838_s6 + $0x5d0] sm:$0xff] %v1158_v26  ;;  %1161 = vst [vmem:[%s4838_s6 + $0x5d8] sm:$0xff] %v1160_v27  ;;  %v1164_v29 = vld [vmem:[%s4833_s25 + $0xbd0] sm:$0xff] }
  0xa1   : > { %1163 = vst [vmem:[%s4838_s6 + $0x5e0] sm:$0xff] %v1162_v28  ;;  %v1166_v30 = vld [vmem:[%s4833_s25 + $0xbe0] sm:$0xff]  ;;  %v1168_v31 = vld [vmem:[%s4833_s25 + $0xbf0] sm:$0xff]  ;;  %1165 = vst [vmem:[%s4838_s6 + $0x5e8] sm:$0xff] %v1164_v29 }
  0xa2   : > { %1167 = vst [vmem:[%s4838_s6 + $0x5f0] sm:$0xff] %v1166_v30  ;;  %1169 = vst [vmem:[%s4838_s6 + $0x5f8] sm:$0xff] %v1168_v31  ;;  %v1170_v32 = vld [vmem:[%s4833_s25 + $0xc00] sm:$0xff]  ;;  %v1172_v33 = vld [vmem:[%s4833_s25 + $0xc10] sm:$0xff] }
  0xa3   : > { %v1174_v34 = vld [vmem:[%s4833_s25 + $0xc20] sm:$0xff]  ;;  %1171 = vst [vmem:[%s4838_s6 + $0x600] sm:$0xff] %v1170_v32  ;;  %1173 = vst [vmem:[%s4838_s6 + $0x608] sm:$0xff] %v1172_v33  ;;  %v1176_v35 = vld [vmem:[%s4833_s25 + $0xc30] sm:$0xff] }
  0xa4   : > { %1175 = vst [vmem:[%s4838_s6 + $0x610] sm:$0xff] %v1174_v34  ;;  %v1178_v36 = vld [vmem:[%s4833_s25 + $0xc40] sm:$0xff]  ;;  %v1180_v37 = vld [vmem:[%s4833_s25 + $0xc50] sm:$0xff]  ;;  %1177 = vst [vmem:[%s4838_s6 + $0x618] sm:$0xff] %v1176_v35 }
  0xa5   : > { %1179 = vst [vmem:[%s4838_s6 + $0x620] sm:$0xff] %v1178_v36  ;;  %1181 = vst [vmem:[%s4838_s6 + $0x628] sm:$0xff] %v1180_v37  ;;  %v1182_v38 = vld [vmem:[%s4833_s25 + $0xc60] sm:$0xff]  ;;  %v1184_v39 = vld [vmem:[%s4833_s25 + $0xc70] sm:$0xff] }
  0xa6   : > { %v1186_v40 = vld [vmem:[%s4833_s25 + $0xc80] sm:$0xff]  ;;  %1183 = vst [vmem:[%s4838_s6 + $0x630] sm:$0xff] %v1182_v38  ;;  %1185 = vst [vmem:[%s4838_s6 + $0x638] sm:$0xff] %v1184_v39  ;;  %v1188_v41 = vld [vmem:[%s4833_s25 + $0xc90] sm:$0xff] }
  0xa7   : > { %1187 = vst [vmem:[%s4838_s6 + $0x640] sm:$0xff] %v1186_v40  ;;  %v1190_v42 = vld [vmem:[%s4833_s25 + $0xca0] sm:$0xff]  ;;  %v1192_v43 = vld [vmem:[%s4833_s25 + $0xcb0] sm:$0xff]  ;;  %1189 = vst [vmem:[%s4838_s6 + $0x648] sm:$0xff] %v1188_v41 }
  0xa8   : > { %1191 = vst [vmem:[%s4838_s6 + $0x650] sm:$0xff] %v1190_v42  ;;  %1193 = vst [vmem:[%s4838_s6 + $0x658] sm:$0xff] %v1192_v43  ;;  %v1194_v44 = vld [vmem:[%s4833_s25 + $0xcc0] sm:$0xff]  ;;  %v1196_v45 = vld [vmem:[%s4833_s25 + $0xcd0] sm:$0xff] }
  0xa9   : > { %v1198_v46 = vld [vmem:[%s4833_s25 + $0xce0] sm:$0xff]  ;;  %1195 = vst [vmem:[%s4838_s6 + $0x660] sm:$0xff] %v1194_v44  ;;  %1197 = vst [vmem:[%s4838_s6 + $0x668] sm:$0xff] %v1196_v45  ;;  %v1200_v47 = vld [vmem:[%s4833_s25 + $0xcf0] sm:$0xff] }
  0xaa   : > { %1199 = vst [vmem:[%s4838_s6 + $0x670] sm:$0xff] %v1198_v46  ;;  %v1202_v48 = vld [vmem:[%s4833_s25 + $0xd00] sm:$0xff]  ;;  %v1204_v49 = vld [vmem:[%s4833_s25 + $0xd10] sm:$0xff]  ;;  %1201 = vst [vmem:[%s4838_s6 + $0x678] sm:$0xff] %v1200_v47 }
  0xab   : > { %1203 = vst [vmem:[%s4838_s6 + $0x680] sm:$0xff] %v1202_v48  ;;  %1205 = vst [vmem:[%s4838_s6 + $0x688] sm:$0xff] %v1204_v49  ;;  %v1206_v50 = vld [vmem:[%s4833_s25 + $0xd20] sm:$0xff]  ;;  %v1208_v51 = vld [vmem:[%s4833_s25 + $0xd30] sm:$0xff] }
  0xac   : > { %v1210_v52 = vld [vmem:[%s4833_s25 + $0xd40] sm:$0xff]  ;;  %1207 = vst [vmem:[%s4838_s6 + $0x690] sm:$0xff] %v1206_v50  ;;  %1209 = vst [vmem:[%s4838_s6 + $0x698] sm:$0xff] %v1208_v51  ;;  %v1212_v53 = vld [vmem:[%s4833_s25 + $0xd50] sm:$0xff] }
  0xad   : > { %1211 = vst [vmem:[%s4838_s6 + $0x6a0] sm:$0xff] %v1210_v52  ;;  %v1214_v54 = vld [vmem:[%s4833_s25 + $0xd60] sm:$0xff]  ;;  %v1216_v55 = vld [vmem:[%s4833_s25 + $0xd70] sm:$0xff]  ;;  %1213 = vst [vmem:[%s4838_s6 + $0x6a8] sm:$0xff] %v1212_v53 }
  0xae   : > { %1215 = vst [vmem:[%s4838_s6 + $0x6b0] sm:$0xff] %v1214_v54  ;;  %1217 = vst [vmem:[%s4838_s6 + $0x6b8] sm:$0xff] %v1216_v55  ;;  %v1218_v56 = vld [vmem:[%s4833_s25 + $0xd80] sm:$0xff]  ;;  %v1220_v57 = vld [vmem:[%s4833_s25 + $0xd90] sm:$0xff] }
  0xaf   : > { %v1222_v58 = vld [vmem:[%s4833_s25 + $0xda0] sm:$0xff]  ;;  %1219 = vst [vmem:[%s4838_s6 + $0x6c0] sm:$0xff] %v1218_v56  ;;  %1221 = vst [vmem:[%s4838_s6 + $0x6c8] sm:$0xff] %v1220_v57  ;;  %v1224_v59 = vld [vmem:[%s4833_s25 + $0xdb0] sm:$0xff] }
  0xb0   : > { %1223 = vst [vmem:[%s4838_s6 + $0x6d0] sm:$0xff] %v1222_v58  ;;  %v1226_v60 = vld [vmem:[%s4833_s25 + $0xdc0] sm:$0xff]  ;;  %v1228_v61 = vld [vmem:[%s4833_s25 + $0xdd0] sm:$0xff]  ;;  %1225 = vst [vmem:[%s4838_s6 + $0x6d8] sm:$0xff] %v1224_v59 }
  0xb1   : > { %1227 = vst [vmem:[%s4838_s6 + $0x6e0] sm:$0xff] %v1226_v60  ;;  %1229 = vst [vmem:[%s4838_s6 + $0x6e8] sm:$0xff] %v1228_v61  ;;  %v1230_v62 = vld [vmem:[%s4833_s25 + $0xde0] sm:$0xff]  ;;  %v1232_v63 = vld [vmem:[%s4833_s25 + $0xdf0] sm:$0xff] }
  0xb2   : > { %v1234_v0 = vld [vmem:[%s4833_s25 + $0xe00] sm:$0xff]  ;;  %1231 = vst [vmem:[%s4838_s6 + $0x6f0] sm:$0xff] %v1230_v62  ;;  %1233 = vst [vmem:[%s4838_s6 + $0x6f8] sm:$0xff] %v1232_v63  ;;  %v1236_v1 = vld [vmem:[%s4833_s25 + $0xe10] sm:$0xff] }
  0xb3   : > { %1235 = vst [vmem:[%s4838_s6 + $0x700] sm:$0xff] %v1234_v0  ;;  %v1238_v2 = vld [vmem:[%s4833_s25 + $0xe20] sm:$0xff]  ;;  %v1240_v3 = vld [vmem:[%s4833_s25 + $0xe30] sm:$0xff]  ;;  %1237 = vst [vmem:[%s4838_s6 + $0x708] sm:$0xff] %v1236_v1 }
  0xb4   : > { %1239 = vst [vmem:[%s4838_s6 + $0x710] sm:$0xff] %v1238_v2  ;;  %1241 = vst [vmem:[%s4838_s6 + $0x718] sm:$0xff] %v1240_v3  ;;  %v1242_v4 = vld [vmem:[%s4833_s25 + $0xe40] sm:$0xff]  ;;  %v1244_v5 = vld [vmem:[%s4833_s25 + $0xe50] sm:$0xff] }
  0xb5   : > { %v1246_v6 = vld [vmem:[%s4833_s25 + $0xe60] sm:$0xff]  ;;  %1243 = vst [vmem:[%s4838_s6 + $0x720] sm:$0xff] %v1242_v4  ;;  %1245 = vst [vmem:[%s4838_s6 + $0x728] sm:$0xff] %v1244_v5  ;;  %v1248_v7 = vld [vmem:[%s4833_s25 + $0xe70] sm:$0xff] }
  0xb6   : > { %1247 = vst [vmem:[%s4838_s6 + $0x730] sm:$0xff] %v1246_v6  ;;  %v1250_v8 = vld [vmem:[%s4833_s25 + $0xe80] sm:$0xff]  ;;  %v1252_v9 = vld [vmem:[%s4833_s25 + $0xe90] sm:$0xff]  ;;  %1249 = vst [vmem:[%s4838_s6 + $0x738] sm:$0xff] %v1248_v7 }
  0xb7   : > { %1251 = vst [vmem:[%s4838_s6 + $0x740] sm:$0xff] %v1250_v8  ;;  %1253 = vst [vmem:[%s4838_s6 + $0x748] sm:$0xff] %v1252_v9  ;;  %v1254_v10 = vld [vmem:[%s4833_s25 + $0xea0] sm:$0xff]  ;;  %v1256_v11 = vld [vmem:[%s4833_s25 + $0xeb0] sm:$0xff] }
  0xb8   : > { %v1258_v12 = vld [vmem:[%s4833_s25 + $0xec0] sm:$0xff]  ;;  %1255 = vst [vmem:[%s4838_s6 + $0x750] sm:$0xff] %v1254_v10  ;;  %1257 = vst [vmem:[%s4838_s6 + $0x758] sm:$0xff] %v1256_v11  ;;  %v1260_v13 = vld [vmem:[%s4833_s25 + $0xed0] sm:$0xff] }
  0xb9   : > { %1259 = vst [vmem:[%s4838_s6 + $0x760] sm:$0xff] %v1258_v12  ;;  %v1262_v14 = vld [vmem:[%s4833_s25 + $0xee0] sm:$0xff]  ;;  %v1264_v15 = vld [vmem:[%s4833_s25 + $0xef0] sm:$0xff]  ;;  %1261 = vst [vmem:[%s4838_s6 + $0x768] sm:$0xff] %v1260_v13 }
  0xba   : > { %1263 = vst [vmem:[%s4838_s6 + $0x770] sm:$0xff] %v1262_v14  ;;  %1265 = vst [vmem:[%s4838_s6 + $0x778] sm:$0xff] %v1264_v15  ;;  %v1266_v16 = vld [vmem:[%s4833_s25 + $0xf00] sm:$0xff]  ;;  %v1268_v17 = vld [vmem:[%s4833_s25 + $0xf10] sm:$0xff] }
  0xbb   : > { %v1270_v18 = vld [vmem:[%s4833_s25 + $0xf20] sm:$0xff]  ;;  %1267 = vst [vmem:[%s4838_s6 + $0x780] sm:$0xff] %v1266_v16  ;;  %1269 = vst [vmem:[%s4838_s6 + $0x788] sm:$0xff] %v1268_v17  ;;  %v1272_v19 = vld [vmem:[%s4833_s25 + $0xf30] sm:$0xff] }
  0xbc   : > { %1271 = vst [vmem:[%s4838_s6 + $0x790] sm:$0xff] %v1270_v18  ;;  %v1274_v20 = vld [vmem:[%s4833_s25 + $0xf40] sm:$0xff]  ;;  %v1276_v21 = vld [vmem:[%s4833_s25 + $0xf50] sm:$0xff]  ;;  %1273 = vst [vmem:[%s4838_s6 + $0x798] sm:$0xff] %v1272_v19 }
  0xbd   : > { %1275 = vst [vmem:[%s4838_s6 + $0x7a0] sm:$0xff] %v1274_v20  ;;  %1277 = vst [vmem:[%s4838_s6 + $0x7a8] sm:$0xff] %v1276_v21  ;;  %v1278_v22 = vld [vmem:[%s4833_s25 + $0xf60] sm:$0xff]  ;;  %v1280_v23 = vld [vmem:[%s4833_s25 + $0xf70] sm:$0xff] }
  0xbe   : > { %v1282_v24 = vld [vmem:[%s4833_s25 + $0xf80] sm:$0xff]  ;;  %1279 = vst [vmem:[%s4838_s6 + $0x7b0] sm:$0xff] %v1278_v22  ;;  %1281 = vst [vmem:[%s4838_s6 + $0x7b8] sm:$0xff] %v1280_v23  ;;  %v1284_v25 = vld [vmem:[%s4833_s25 + $0xf90] sm:$0xff] }
  0xbf   : > { %1283 = vst [vmem:[%s4838_s6 + $0x7c0] sm:$0xff] %v1282_v24  ;;  %v1286_v26 = vld [vmem:[%s4833_s25 + $0xfa0] sm:$0xff]  ;;  %v1288_v27 = vld [vmem:[%s4833_s25 + $0xfb0] sm:$0xff]  ;;  %1285 = vst [vmem:[%s4838_s6 + $0x7c8] sm:$0xff] %v1284_v25 }
  0xc0   : > { %1287 = vst [vmem:[%s4838_s6 + $0x7d0] sm:$0xff] %v1286_v26  ;;  %1289 = vst [vmem:[%s4838_s6 + $0x7d8] sm:$0xff] %v1288_v27  ;;  %v1290_v28 = vld [vmem:[%s4833_s25 + $0xfc0] sm:$0xff]  ;;  %v1292_v29 = vld [vmem:[%s4833_s25 + $0xfd0] sm:$0xff] }
  0xc1   : > { %v1294_v30 = vld [vmem:[%s4833_s25 + $0xfe0] sm:$0xff]  ;;  %1291 = vst [vmem:[%s4838_s6 + $0x7e0] sm:$0xff] %v1290_v28  ;;  %1293 = vst [vmem:[%s4838_s6 + $0x7e8] sm:$0xff] %v1292_v29  ;;  %v1296_v31 = vld [vmem:[%s4833_s25 + $0xff0] sm:$0xff] }
  0xc2   : > { %1295 = vst [vmem:[%s4838_s6 + $0x7f0] sm:$0xff] %v1294_v30  ;;  %1297 = vst [vmem:[%s4838_s6 + $0x7f8] sm:$0xff] %v1296_v31 }
  0xc3 PF: > { %p3766_p0 = scmp.ge.s32.totalorder %s4628_s22, 1  ;;  %p1310_p1 = scmp.lt.s32.totalorder %s4628_s22, 5 }
  0xc5   : > { %p1311_p2 = pnand %p3766_p0, %p1310_p1 }
  0xc6   : > { %s1317_s0 = sand.u32 (!%p1311_p2), 1, %s4604_s16   ;;  %s1324_s5 = sand.u32 (!%p1311_p2), 1, %s4596_s14  }
  0xc7   : > { %1314 = sbr.rel (%p1311_p2) target bundleno = 714 (0x2ca), region = 85  ;;  %s3767_s23 = sshll.u32 (!%p1311_p2), %s1317_s0, 8 }
  0xc8   : > { %s3768_s28 = sshll.u32 (!%p1311_p2), %s1324_s5, 11  ;;  %s1351_s7 = sand.u32 (!%p1311_p2), 1, %s4588_s12  }
  0xc9   : > { %s3770_s11 = sshll.u32 (!%p1311_p2), %s4616_s19, 1  ;;  %s3769_s25 = sshll.u32 (!%p1311_p2), %s1351_s7, 6 }
  0xca   : > { %p1358_p3 = scmp.lt.s32.totalorder (!%p1311_p2), %s3770_s11, 3  ;;  %s5361_s4 = scalar_lea.vmem (!%p1311_p2), [#allocation2], %s3767_s23 }
  0xcb   : > { %s5363_s6 = scalar_lea.vmem (!%p1311_p2), [#allocation3], %s3768_s28  ;;  %s5365_s1 = scalar_lea.vmem (!%p1311_p2), [#allocation4], %s3769_s25 }
  0xcc   : > { %s5834_s11 = smov (!%p1358_p3, %s3770_s11), 3  ;;  %p3771_p4 = scmp.ne.s32.totalorder %s4612_s18, 0 }
  0xcd   : > { %s1360_s29 = scalar_lea.vmem %s5805_s2, %s5834_s11 }
  0xce   : > { %1366 = sbr.rel (%p3771_p4) target bundleno = 216 (0xd8), region = 97 }
  0xd3   : > { %v4630_v32 = vmov 0.0  }
  0xd4   : > { %1367 = vst [vmem:[%s5365_s1] sm:$0xff] %v4630_v32  ;;  %1368 = vst [vmem:[%s5365_s1 + $0x8] sm:$0xff] %v4630_v32 }
  0xd5   : > { %1369 = vst [vmem:[%s5365_s1 + $0x10] sm:$0xff] %v4630_v32  ;;  %1370 = vst [vmem:[%s5365_s1 + $0x18] sm:$0xff] %v4630_v32 }
  0xd6   : > { %1371 = vst [vmem:[%s5365_s1 + $0x20] sm:$0xff] %v4630_v32  ;;  %1372 = vst [vmem:[%s5365_s1 + $0x28] sm:$0xff] %v4630_v32 }
  0xd7   : > { %1373 = vst [vmem:[%s5365_s1 + $0x30] sm:$0xff] %v4630_v32  ;;  %1374 = vst [vmem:[%s5365_s1 + $0x38] sm:$0xff] %v4630_v32 }
  0xd8 PF: > { %v4158_v33 = vld [vmem:[%s5363_s6 + $0x74] ss:$8 sps:$4 sm:$0xff]   ;;  %v4162_v35 = vld [vmem:[%s5363_s6 + $0x70] ss:$8 sps:$4 sm:$0xff]   ;;  %v4164_v37 = vld [vmem:[%s5363_s6 + $0x64] ss:$8 sps:$4 sm:$0xff]  }
  0xd9   : > { %v4160_v34 = vld [vmem:[%s5363_s6 + $0x174] ss:$8 sps:$4 sm:$0xff]   ;;  %3111 = vmatprep.subr.bf16.mxu0 %v4158_v33  ;;  %v4163_v36 = vld [vmem:[%s5363_s6 + $0x170] ss:$8 sps:$4 sm:$0xff]   ;;  %v4166_v38 = vld [vmem:[%s5363_s6 + $0x164] ss:$8 sps:$4 sm:$0xff]  }
  0xda   : > { %3164 = vmatprep.subr.bf16.mxu1 %v4160_v34  ;;  %3112 = vmatpush1.bf16.msra.mxu0 %v4162_v35  ;;  %v4168_v39 = vld [vmem:[%s5363_s6 + $0x60] ss:$8 sps:$4 sm:$0xff]   ;;  %v4170_v41 = vld [vmem:[%s5363_s6 + $0x54] ss:$8 sps:$4 sm:$0xff]   ;;  %v4174_v43 = vld [vmem:[%s5363_s6 + $0x50] ss:$8 sps:$4 sm:$0xff]  }
  0xdb   : > { %3165 = vmatpush1.bf16.msra.mxu1 %v4163_v36  ;;  %3113 = vmatprep.subr.bf16.mxu0 %v4164_v37  ;;  %v4169_v40 = vld [vmem:[%s5363_s6 + $0x160] ss:$8 sps:$4 sm:$0xff]   ;;  %v4172_v42 = vld [vmem:[%s5363_s6 + $0x154] ss:$8 sps:$4 sm:$0xff]   ;;  %v4175_v44 = vld [vmem:[%s5363_s6 + $0x150] ss:$8 sps:$4 sm:$0xff]  }
  0xdc   : > { %3166 = vmatprep.subr.bf16.mxu1 %v4166_v38  ;;  %v4176_v45 = vld [vmem:[%s5363_s6 + $0x44] ss:$8 sps:$4 sm:$0xff]   ;;  %v4180_v47 = vld [vmem:[%s5363_s6 + $0x40] ss:$8 sps:$4 sm:$0xff]   ;;  %v4182_v49 = vld [vmem:[%s5363_s6 + $0x34] ss:$8 sps:$4 sm:$0xff]  }
  0xdd   : > { %v4178_v46 = vld [vmem:[%s5363_s6 + $0x144] ss:$8 sps:$4 sm:$0xff]   ;;  %v4181_v48 = vld [vmem:[%s5363_s6 + $0x140] ss:$8 sps:$4 sm:$0xff]   ;;  %v4184_v50 = vld [vmem:[%s5363_s6 + $0x134] ss:$8 sps:$4 sm:$0xff]  }
  0xde   : > { %3114 = vmatpush1.bf16.msra.mxu0 %v4168_v39  ;;  %v4186_v51 = vld [vmem:[%s5363_s6 + $0x30] ss:$8 sps:$4 sm:$0xff]   ;;  %v4188_v53 = vld [vmem:[%s5363_s6 + $0x24] ss:$8 sps:$4 sm:$0xff]   ;;  %v4192_v55 = vld [vmem:[%s5363_s6 + $0x20] ss:$8 sps:$4 sm:$0xff]  }
  0xdf   : > { %3167 = vmatpush1.bf16.msra.mxu1 %v4169_v40  ;;  %3115 = vmatprep.subr.bf16.mxu0 %v4170_v41  ;;  %v4187_v52 = vld [vmem:[%s5363_s6 + $0x130] ss:$8 sps:$4 sm:$0xff]   ;;  %v4190_v54 = vld [vmem:[%s5363_s6 + $0x124] ss:$8 sps:$4 sm:$0xff]   ;;  %v4193_v56 = vld [vmem:[%s5363_s6 + $0x120] ss:$8 sps:$4 sm:$0xff]  }
  0xe0   : > { %3168 = vmatprep.subr.bf16.mxu1 %v4172_v42  ;;  %v4194_v57 = vld [vmem:[%s5363_s6 + $0x14] ss:$8 sps:$4 sm:$0xff]   ;;  %v4198_v59 = vld [vmem:[%s5363_s6 + $0x10] ss:$8 sps:$4 sm:$0xff]   ;;  %v4200_v61 = vld [vmem:[%s5363_s6 + $0x4] ss:$8 sps:$4 sm:$0xff]  }
  0xe1   : > { %v4196_v58 = vld [vmem:[%s5363_s6 + $0x114] ss:$8 sps:$4 sm:$0xff]   ;;  %v4199_v60 = vld [vmem:[%s5363_s6 + $0x110] ss:$8 sps:$4 sm:$0xff]   ;;  %v4202_v62 = vld [vmem:[%s5363_s6 + $0x104] ss:$8 sps:$4 sm:$0xff]  }
  0xe2   : > { %3116 = vmatpush1.bf16.msra.mxu0 %v4174_v43  ;;  %v4204_v63 = vld [vmem:[%s5363_s6] ss:$8 sps:$4 sm:$0xff]   ;;  %v4206_v1 = vld [vmem:[%s5363_s6 + $0xf4] ss:$8 sps:$4 sm:$0xff]   ;;  %v4210_v3 = vld [vmem:[%s5363_s6 + $0xf0] ss:$8 sps:$4 sm:$0xff]  }
  0xe3   : > { %3169 = vmatpush1.bf16.msra.mxu1 %v4175_v44  ;;  %3117 = vmatprep.subr.bf16.mxu0 %v4176_v45  ;;  %v4205_v0 = vld [vmem:[%s5363_s6 + $0x100] ss:$8 sps:$4 sm:$0xff]   ;;  %v4208_v2 = vld [vmem:[%s5363_s6 + $0x1f4] ss:$8 sps:$4 sm:$0xff]   ;;  %v4211_v4 = vld [vmem:[%s5363_s6 + $0x1f0] ss:$8 sps:$4 sm:$0xff]  }
  0xe4   : > { %3170 = vmatprep.subr.bf16.mxu1 %v4178_v46  ;;  %v4212_v5 = vld [vmem:[%s5363_s6 + $0xe4] ss:$8 sps:$4 sm:$0xff]   ;;  %v4216_v7 = vld [vmem:[%s5363_s6 + $0xe0] ss:$8 sps:$4 sm:$0xff]   ;;  %v4218_v9 = vld [vmem:[%s5363_s6 + $0xd4] ss:$8 sps:$4 sm:$0xff]  }
  0xe5   : > { %v4214_v6 = vld [vmem:[%s5363_s6 + $0x1e4] ss:$8 sps:$4 sm:$0xff]   ;;  %v4217_v8 = vld [vmem:[%s5363_s6 + $0x1e0] ss:$8 sps:$4 sm:$0xff]   ;;  %v4220_v10 = vld [vmem:[%s5363_s6 + $0x1d4] ss:$8 sps:$4 sm:$0xff]  }
  0xe6   : > { %3118 = vmatpush1.bf16.msra.mxu0 %v4180_v47  ;;  %v4222_v11 = vld [vmem:[%s5363_s6 + $0xd0] ss:$8 sps:$4 sm:$0xff]   ;;  %v4224_v13 = vld [vmem:[%s5363_s6 + $0xc4] ss:$8 sps:$4 sm:$0xff]   ;;  %v4228_v15 = vld [vmem:[%s5363_s6 + $0xc0] ss:$8 sps:$4 sm:$0xff]  }
  0xe7   : > { %3171 = vmatpush1.bf16.msra.mxu1 %v4181_v48  ;;  %3119 = vmatprep.subr.bf16.mxu0 %v4182_v49  ;;  %v4223_v12 = vld [vmem:[%s5363_s6 + $0x1d0] ss:$8 sps:$4 sm:$0xff]   ;;  %v4226_v14 = vld [vmem:[%s5363_s6 + $0x1c4] ss:$8 sps:$4 sm:$0xff]   ;;  %v4229_v16 = vld [vmem:[%s5363_s6 + $0x1c0] ss:$8 sps:$4 sm:$0xff]  }
  0xe8   : > { %3172 = vmatprep.subr.bf16.mxu1 %v4184_v50  ;;  %v1383_v17 = vld [vmem:[%s5361_s4] sm:$0xff]  ;;  %v1384_v19 = vld [vmem:[%s5361_s4 + $0x8] sm:$0xff]  ;;  %v4230_v21 = vld [vmem:[%s5363_s6 + $0xb4] ss:$8 sps:$4 sm:$0xff]   ;;  %p4060_p5 = scmp.ne.s32.totalorder %s4612_s18, 1 }
  0xe9   : > { %v1391_v18 = vld [vmem:[%s5361_s4 + $0x40] sm:$0xff]  ;;  %v1392_v20 = vld [vmem:[%s5361_s4 + $0x48] sm:$0xff]  ;;  %v4232_v23 = vld [vmem:[%s5363_s6 + $0x1b4] ss:$8 sps:$4 sm:$0xff]  }
  0xea   : > { %3120 = vmatpush1.bf16.msra.mxu0 %v4186_v51  ;;  %v3773_v22 = vcombine.high %v1383_v17, %v1391_v18  ;;  %v3775_v24 = vcombine.high %v1384_v19, %v1392_v20  ;;  %v4234_v25 = vld [vmem:[%s5363_s6 + $0xb0] ss:$8 sps:$4 sm:$0xff]   ;;  %v4236_v27 = vld [vmem:[%s5363_s6 + $0xa4] ss:$8 sps:$4 sm:$0xff]   ;;  %v4240_v29 = vld [vmem:[%s5363_s6 + $0xa0] ss:$8 sps:$4 sm:$0xff]   ;;  %v3772_v41 = vcombine.low %v1383_v17, %v1391_v18  ;;  %v3774_v42 = vcombine.low %v1384_v19, %v1392_v20 }
  0xeb   : > { %3173 = vmatpush1.bf16.msra.mxu1 %v4187_v52  ;;  %3121 = vmatprep.subr.bf16.mxu0 %v4188_v53  ;;  %v4235_v26 = vld [vmem:[%s5363_s6 + $0x1b0] ss:$8 sps:$4 sm:$0xff]   ;;  %v4238_v28 = vld [vmem:[%s5363_s6 + $0x1a4] ss:$8 sps:$4 sm:$0xff]   ;;  %v4241_v30 = vld [vmem:[%s5363_s6 + $0x1a0] ss:$8 sps:$4 sm:$0xff]  }
  0xec   : > { %3174 = vmatprep.subr.bf16.mxu1 %v4190_v54  ;;  %3143 = vmatprep.mubr.bf16.mxu0 %v3773_v22  ;;  %v4242_v31 = vld [vmem:[%s5363_s6 + $0x94] ss:$8 sps:$4 sm:$0xff]   ;;  %v4246_v33 = vld [vmem:[%s5363_s6 + $0x90] ss:$8 sps:$4 sm:$0xff]   ;;  %v4248_v35 = vld [vmem:[%s5363_s6 + $0x84] ss:$8 sps:$4 sm:$0xff]  }
  0xed   : > { %3196 = vmatprep.mubr.bf16.mxu1 %v3775_v24  ;;  %v4244_v32 = vld [vmem:[%s5363_s6 + $0x194] ss:$8 sps:$4 sm:$0xff]   ;;  %v4247_v34 = vld [vmem:[%s5363_s6 + $0x190] ss:$8 sps:$4 sm:$0xff]   ;;  %v4250_v36 = vld [vmem:[%s5363_s6 + $0x184] ss:$8 sps:$4 sm:$0xff]  }
  0xee   : > { %3122 = vmatpush1.bf16.msra.mxu0 %v4192_v55  ;;  %v4252_v37 = vld [vmem:[%s5363_s6 + $0x80] ss:$8 sps:$4 sm:$0xff]   ;;  %v4256_v39 = vld [vmem:[%s5363_s6 + $0x274] ss:$8 sps:$4 sm:$0xff]   ;;  %v4254_v43 = vld [vmem:[%s5363_s6 + $0x270] ss:$8 sps:$4 sm:$0xff]  }
  0xef   : > { %3175 = vmatpush1.bf16.msra.mxu1 %v4193_v56  ;;  %3123 = vmatprep.subr.bf16.mxu0 %v4194_v57  ;;  %v4253_v38 = vld [vmem:[%s5363_s6 + $0x180] ss:$8 sps:$4 sm:$0xff]   ;;  %v4259_v40 = vld [vmem:[%s5363_s6 + $0x374] ss:$8 sps:$4 sm:$0xff]   ;;  %v4257_v44 = vld [vmem:[%s5363_s6 + $0x370] ss:$8 sps:$4 sm:$0xff]  }
  0xf0   : > { %3176 = vmatprep.subr.bf16.mxu1 %v4196_v58  ;;  %v4262_v45 = vld [vmem:[%s5363_s6 + $0x264] ss:$8 sps:$4 sm:$0xff]   ;;  %v4260_v47 = vld [vmem:[%s5363_s6 + $0x260] ss:$8 sps:$4 sm:$0xff]   ;;  %v4268_v49 = vld [vmem:[%s5363_s6 + $0x254] ss:$8 sps:$4 sm:$0xff]  }
  0xf1   : > { %v4265_v46 = vld [vmem:[%s5363_s6 + $0x364] ss:$8 sps:$4 sm:$0xff]   ;;  %v4263_v48 = vld [vmem:[%s5363_s6 + $0x360] ss:$8 sps:$4 sm:$0xff]   ;;  %v4271_v50 = vld [vmem:[%s5363_s6 + $0x354] ss:$8 sps:$4 sm:$0xff]  }
  0xf2   : > { %3124 = vmatpush1.bf16.msra.mxu0 %v4198_v59  ;;  %v4266_v51 = vld [vmem:[%s5363_s6 + $0x250] ss:$8 sps:$4 sm:$0xff]   ;;  %v4274_v53 = vld [vmem:[%s5363_s6 + $0x244] ss:$8 sps:$4 sm:$0xff]   ;;  %v4272_v55 = vld [vmem:[%s5363_s6 + $0x240] ss:$8 sps:$4 sm:$0xff]  }
  0xf3   : > { %3177 = vmatpush1.bf16.msra.mxu1 %v4199_v60  ;;  %3125 = vmatprep.subr.bf16.mxu0 %v4200_v61  ;;  %v4269_v52 = vld [vmem:[%s5363_s6 + $0x350] ss:$8 sps:$4 sm:$0xff]   ;;  %v4277_v54 = vld [vmem:[%s5363_s6 + $0x344] ss:$8 sps:$4 sm:$0xff]   ;;  %v4275_v56 = vld [vmem:[%s5363_s6 + $0x340] ss:$8 sps:$4 sm:$0xff]  }
  0xf4   : > { %3178 = vmatprep.subr.bf16.mxu1 %v4202_v62  ;;  %v4280_v57 = vld [vmem:[%s5363_s6 + $0x234] ss:$8 sps:$4 sm:$0xff]   ;;  %v4278_v59 = vld [vmem:[%s5363_s6 + $0x230] ss:$8 sps:$4 sm:$0xff]   ;;  %v1399_v61 = vld [vmem:[%s5361_s4 + $0x80] sm:$0xff] }
  0xf5   : > { %v4283_v58 = vld [vmem:[%s5363_s6 + $0x334] ss:$8 sps:$4 sm:$0xff]   ;;  %v4281_v60 = vld [vmem:[%s5363_s6 + $0x330] ss:$8 sps:$4 sm:$0xff]   ;;  %v1407_v62 = vld [vmem:[%s5361_s4 + $0xc0] sm:$0xff] }
  0xf6   : > { %3126 = vmatpush1.bf16.msra.mxu0 %v4204_v63  ;;  %v1400_v63 = vld [vmem:[%s5361_s4 + $0x88] sm:$0xff]  ;;  %v5485_v17 = vld [vmem:[%s5361_s4 + $0x18] sm:$0xff] }
  0xf7   : > { %3179 = vmatpush1.bf16.msra.mxu1 %v4205_v0  ;;  %3127 = vmatprep.subr.bf16.mxu0 %v4206_v1  ;;  %v1408_v0 = vld [vmem:[%s5361_s4 + $0xc8] sm:$0xff]  ;;  %v5490_v19 = vld [vmem:[%s5361_s4 + $0x58] sm:$0xff] }
  0xf8   : > { %3180 = vmatprep.subr.bf16.mxu1 %v4208_v2  ;;  %v4286_v1 = vld [vmem:[%s5363_s6 + $0x224] ss:$8 sps:$4 sm:$0xff]   ;;  %v3789_v2 = vcombine.high %v1399_v61, %v1407_v62  ;;  %v3779_v20 = vcombine.high %v5485_v17, %v5490_v19  ;;  %v4299_v22 = vld [vmem:[%s5363_s6 + $0x300] ss:$8 sps:$4 sm:$0xff]   ;;  %v4307_v24 = vld [vmem:[%s5363_s6 + $0x3f4] ss:$8 sps:$4 sm:$0xff]  }
  0xfa   : > { %3128 = vmatpush2.bf16.msra.mxu0 %v4210_v3  ;;  %v3791_v3 = vcombine.high %v1400_v63, %v1408_v0 }
  0xfb   : > { %3181 = vmatpush2.bf16.msra.mxu1 %v4211_v4  ;;  %3129 = vmatprep.subr.bf16.mxu0 %v4212_v5  ;;  %v3788_v4 = vcombine.low %v1399_v61, %v1407_v62  ;;  %v4289_v5 = vld [vmem:[%s5363_s6 + $0x324] ss:$8 sps:$4 sm:$0xff]   ;;  %v3778_v62 = vcombine.low %v5485_v17, %v5490_v19 }
  0xfc   : > { %3182 = vmatprep.subr.bf16.mxu1 %v4214_v6  ;;  %v3790_v6 = vcombine.low %v1400_v63, %v1408_v0  ;;  %v1402_v63 = vld [vmem:[%s5361_s4 + $0x98] sm:$0xff]  ;;  %v4370_v17 = vld [vmem:[%s5363_s6 + $0x444] ss:$8 sps:$4 sm:$0xff]  }
  0xfd   : > { %v1410_v0 = vld [vmem:[%s5361_s4 + $0xd8] sm:$0xff] }
  0xfe   : > { %3130 = vmatpush2.bf16.msra.mxu0 %v4216_v7  ;;  %v4284_v7 = vld [vmem:[%s5363_s6 + $0x220] ss:$8 sps:$4 sm:$0xff]  }
  0xff   : > { %3183 = vmatpush2.bf16.msra.mxu1 %v4217_v8  ;;  %3131 = vmatprep.subr.bf16.mxu0 %v4218_v9  ;;  %v4287_v8 = vld [vmem:[%s5363_s6 + $0x320] ss:$8 sps:$4 sm:$0xff]   ;;  %v4292_v9 = vld [vmem:[%s5363_s6 + $0x214] ss:$8 sps:$4 sm:$0xff]  }
 0x100   : > { %3184 = vmatprep.subr.bf16.mxu1 %v4220_v10  ;;  %v4295_v10 = vld [vmem:[%s5363_s6 + $0x314] ss:$8 sps:$4 sm:$0xff]  }
 0x102   : > { %3132 = vmatpush2.bf16.msra.mxu0 %v4222_v11  ;;  %v4290_v11 = vld [vmem:[%s5363_s6 + $0x210] ss:$8 sps:$4 sm:$0xff]  }
 0x103   : > { %3185 = vmatpush2.bf16.msra.mxu1 %v4223_v12  ;;  %3133 = vmatprep.subr.bf16.mxu0 %v4224_v13  ;;  %v4293_v12 = vld [vmem:[%s5363_s6 + $0x310] ss:$8 sps:$4 sm:$0xff]   ;;  %v4298_v13 = vld [vmem:[%s5363_s6 + $0x204] ss:$8 sps:$4 sm:$0xff]  }
 0x104   : > { %3186 = vmatprep.subr.bf16.mxu1 %v4226_v14  ;;  %v4301_v14 = vld [vmem:[%s5363_s6 + $0x304] ss:$8 sps:$4 sm:$0xff]  }
 0x106   : > { %3134 = vmatpush2.bf16.msra.mxu0 %v4228_v15  ;;  %v5479_v15 = vld [vmem:[%s5361_s4 + $0x10] sm:$0xff] }
 0x107   : > { %3187 = vmatpush2.bf16.msra.mxu1 %v4229_v16  ;;  %3135 = vmatprep.subr.bf16.mxu0 %v4230_v21  ;;  %v5482_v16 = vld [vmem:[%s5361_s4 + $0x50] sm:$0xff]  ;;  %v4296_v21 = vld [vmem:[%s5363_s6 + $0x200] ss:$8 sps:$4 sm:$0xff]  }
 0x108   : > { %3188 = vmatprep.subr.bf16.mxu1 %v4232_v23  ;;  %v3777_v18 = vcombine.high %v5479_v15, %v5482_v16  ;;  %v4304_v23 = vld [vmem:[%s5363_s6 + $0x2f4] ss:$8 sps:$4 sm:$0xff]   ;;  %v3776_v61 = vcombine.low %v5479_v15, %v5482_v16  ;;  %v5555_v15 = vld [vmem:[%s5361_s4 + $0x28] sm:$0xff] }
 0x109   : > { %v5558_v16 = vld [vmem:[%s5361_s4 + $0x68] sm:$0xff] }
 0x10a   : > { %3136 = vmatpush2.bf16.msra.mxu0 %v4234_v25  ;;  %v4302_v25 = vld [vmem:[%s5363_s6 + $0x2f0] ss:$8 sps:$4 sm:$0xff]  }
 0x10b   : > { %3189 = vmatpush2.bf16.msra.mxu1 %v4235_v26  ;;  %3137 = vmatprep.subr.bf16.mxu0 %v4236_v27  ;;  %v4305_v26 = vld [vmem:[%s5363_s6 + $0x3f0] ss:$8 sps:$4 sm:$0xff]   ;;  %v4310_v27 = vld [vmem:[%s5363_s6 + $0x2e4] ss:$8 sps:$4 sm:$0xff]  }
 0x10c   : > { %3190 = vmatprep.subr.bf16.mxu1 %v4238_v28  ;;  %v4313_v28 = vld [vmem:[%s5363_s6 + $0x3e4] ss:$8 sps:$4 sm:$0xff]  }
 0x10e   : > { %3138 = vmatpush2.bf16.msra.mxu0 %v4240_v29  ;;  %v4308_v29 = vld [vmem:[%s5363_s6 + $0x2e0] ss:$8 sps:$4 sm:$0xff]  }
 0x10f   : > { %3191 = vmatpush2.bf16.msra.mxu1 %v4241_v30  ;;  %3139 = vmatprep.subr.bf16.mxu0 %v4242_v31  ;;  %v4311_v30 = vld [vmem:[%s5363_s6 + $0x3e0] ss:$8 sps:$4 sm:$0xff]   ;;  %v4316_v31 = vld [vmem:[%s5363_s6 + $0x2d4] ss:$8 sps:$4 sm:$0xff]  }
 0x110   : > { %3192 = vmatprep.subr.bf16.mxu1 %v4244_v32  ;;  %v4319_v32 = vld [vmem:[%s5363_s6 + $0x3d4] ss:$8 sps:$4 sm:$0xff]  }
 0x112   : > { %3140 = vmatpush2.bf16.msra.mxu0 %v4246_v33  ;;  %v4314_v33 = vld [vmem:[%s5363_s6 + $0x2d0] ss:$8 sps:$4 sm:$0xff]  }
 0x113   : > { %3193 = vmatpush2.bf16.msra.mxu1 %v4247_v34  ;;  %3141 = vmatprep.subr.bf16.mxu0 %v4248_v35  ;;  %v4317_v34 = vld [vmem:[%s5363_s6 + $0x3d0] ss:$8 sps:$4 sm:$0xff]   ;;  %v4322_v35 = vld [vmem:[%s5363_s6 + $0x2c4] ss:$8 sps:$4 sm:$0xff]  }
 0x114   : > { %3194 = vmatprep.subr.bf16.mxu1 %v4250_v36  ;;  %v4325_v36 = vld [vmem:[%s5363_s6 + $0x3c4] ss:$8 sps:$4 sm:$0xff]  }
 0x116   : > { %3142 = vmatpush2.bf16.msra.mxu0 %v4252_v37  ;;  %v4320_v37 = vld [vmem:[%s5363_s6 + $0x2c0] ss:$8 sps:$4 sm:$0xff]  }
 0x117   : > { %3195 = vmatpush2.bf16.msra.mxu1 %v4253_v38  ;;  %3217 = vmatprep.subr.bf16.mxu0 %v4256_v39  ;;  %v4323_v38 = vld [vmem:[%s5363_s6 + $0x3c0] ss:$8 sps:$4 sm:$0xff]   ;;  %v4328_v39 = vld [vmem:[%s5363_s6 + $0x2b4] ss:$8 sps:$4 sm:$0xff]  }
 0x118   : > { %3270 = vmatprep.subr.bf16.mxu1 %v4259_v40  ;;  %v4331_v40 = vld [vmem:[%s5363_s6 + $0x3b4] ss:$8 sps:$4 sm:$0xff]  }
 0x119   : > { %3144 = vmatmul.mubr.bf16.vlgmr.msra.gmra.mxu0 %v3772_v41  ;;  %v4326_v41 = vld [vmem:[%s5363_s6 + $0x2b0] ss:$8 sps:$4 sm:$0xff]  }
 0x11a   : > { %3197 = vmatmul.mubr.bf16.vlgmr.msra.gmra.mxu1 %v3774_v42  ;;  %3218 = vmatpush1.bf16.msra.mxu0 %v4254_v43  ;;  %v4329_v42 = vld [vmem:[%s5363_s6 + $0x3b0] ss:$8 sps:$4 sm:$0xff]   ;;  %v4334_v43 = vld [vmem:[%s5363_s6 + $0x2a4] ss:$8 sps:$4 sm:$0xff]  }
 0x11b   : > { %3271 = vmatpush1.bf16.msra.mxu1 %v4257_v44  ;;  %3219 = vmatprep.subr.bf16.mxu0 %v4262_v45  ;;  %v4337_v44 = vld [vmem:[%s5363_s6 + $0x3a4] ss:$8 sps:$4 sm:$0xff]   ;;  %v4332_v45 = vld [vmem:[%s5363_s6 + $0x2a0] ss:$8 sps:$4 sm:$0xff]  }
 0x11c   : > { %3272 = vmatprep.subr.bf16.mxu1 %v4265_v46  ;;  %3153 = vmatprep.mubr.bf16.mxu0 %v3789_v2  ;;  %v4335_v46 = vld [vmem:[%s5363_s6 + $0x3a0] ss:$8 sps:$4 sm:$0xff]   ;;  %v4361_v2 = vld [vmem:[%s5363_s6 + $0x564] ss:$8 sps:$4 sm:$0xff]  }
 0x11d   : > { %3206 = vmatprep.mubr.bf16.mxu1 %v3791_v3 }
 0x11e   : > { %3220 = vmatpush1.bf16.msra.mxu0 %v4260_v47  ;;  %v4340_v47 = vld [vmem:[%s5363_s6 + $0x294] ss:$8 sps:$4 sm:$0xff]  }
 0x11f   : > { %3273 = vmatpush1.bf16.msra.mxu1 %v4263_v48  ;;  %3221 = vmatprep.subr.bf16.mxu0 %v4268_v49  ;;  %v4343_v48 = vld [vmem:[%s5363_s6 + $0x394] ss:$8 sps:$4 sm:$0xff]   ;;  %v4338_v49 = vld [vmem:[%s5363_s6 + $0x290] ss:$8 sps:$4 sm:$0xff]  }
 0x120   : > { %3274 = vmatprep.subr.bf16.mxu1 %v4271_v50  ;;  %v4341_v50 = vld [vmem:[%s5363_s6 + $0x390] ss:$8 sps:$4 sm:$0xff]  }
 0x121   : > { %3154 = vmatmul.mubr.bf16.gmra.mxu0 %v3788_v4  ;;  %v3795_v4 = vcombine.high %v1402_v63, %v1410_v0 }
 0x122   : > { %3222 = vmatpush1.bf16.msra.mxu0 %v4266_v51  ;;  %3207 = vmatmul.mubr.bf16.gmra.mxu1 %v3790_v6  ;;  %v4346_v51 = vld [vmem:[%s5363_s6 + $0x284] ss:$8 sps:$4 sm:$0xff]   ;;  %v4359_v6 = vld [vmem:[%s5363_s6 + $0x560] ss:$8 sps:$4 sm:$0xff]  }
 0x123   : > { %3275 = vmatpush1.bf16.msra.mxu1 %v4269_v52  ;;  %3223 = vmatprep.subr.bf16.mxu0 %v4274_v53  ;;  %v4349_v52 = vld [vmem:[%s5363_s6 + $0x384] ss:$8 sps:$4 sm:$0xff]   ;;  %v4344_v53 = vld [vmem:[%s5363_s6 + $0x280] ss:$8 sps:$4 sm:$0xff]  }
 0x124   : > { %3276 = vmatprep.subr.bf16.mxu1 %v4277_v54  ;;  %3249 = vmatprep.mubr.bf16.mxu0 %v3777_v18  ;;  %v4347_v54 = vld [vmem:[%s5363_s6 + $0x380] ss:$8 sps:$4 sm:$0xff]   ;;  %v4373_v18 = vld [vmem:[%s5363_s6 + $0x544] ss:$8 sps:$4 sm:$0xff]  }
 0x125   : > { %3302 = vmatprep.mubr.bf16.mxu1 %v3779_v20  ;;  %v3783_v20 = vcombine.high %v5555_v15, %v5558_v16 }
 0x126   : > { %3224 = vmatpush1.bf16.msra.mxu0 %v4272_v55  ;;  %v4352_v55 = vld [vmem:[%s5363_s6 + $0x474] ss:$8 sps:$4 sm:$0xff]  }
 0x127   : > { %3277 = vmatpush1.bf16.msra.mxu1 %v4275_v56  ;;  %3225 = vmatprep.subr.bf16.mxu0 %v4280_v57  ;;  %v4355_v56 = vld [vmem:[%s5363_s6 + $0x574] ss:$8 sps:$4 sm:$0xff]   ;;  %v4350_v57 = vld [vmem:[%s5363_s6 + $0x470] ss:$8 sps:$4 sm:$0xff]  }
 0x128   : > { %3278 = vmatprep.subr.bf16.mxu1 %v4283_v58  ;;  %v4353_v58 = vld [vmem:[%s5363_s6 + $0x570] ss:$8 sps:$4 sm:$0xff]  }
 0x12a   : > { %3226 = vmatpush1.bf16.msra.mxu0 %v4278_v59  ;;  %v1401_v59 = vld [vmem:[%s5361_s4 + $0x90] sm:$0xff] }
 0x12b   : > { %3279 = vmatpush1.bf16.msra.mxu1 %v4281_v60  ;;  %3227 = vmatprep.subr.bf16.mxu0 %v4286_v1  ;;  %v1409_v60 = vld [vmem:[%s5361_s4 + $0xd0] sm:$0xff]  ;;  %v4358_v1 = vld [vmem:[%s5363_s6 + $0x464] ss:$8 sps:$4 sm:$0xff]  }
 0x12c   : > { %3280 = vmatprep.subr.bf16.mxu1 %v4289_v5  ;;  %v3793_v3 = vcombine.high %v1401_v59, %v1409_v60  ;;  %v4356_v5 = vld [vmem:[%s5363_s6 + $0x460] ss:$8 sps:$4 sm:$0xff]  }
 0x12e   : > { %3228 = vmatpush1.bf16.msra.mxu0 %v4284_v7  ;;  %v4364_v7 = vld [vmem:[%s5363_s6 + $0x454] ss:$8 sps:$4 sm:$0xff]  }
 0x12f   : > { %3281 = vmatpush1.bf16.msra.mxu1 %v4287_v8  ;;  %3229 = vmatprep.subr.bf16.mxu0 %v4292_v9  ;;  %v4367_v8 = vld [vmem:[%s5363_s6 + $0x554] ss:$8 sps:$4 sm:$0xff]   ;;  %v4362_v9 = vld [vmem:[%s5363_s6 + $0x450] ss:$8 sps:$4 sm:$0xff]  }
 0x130   : > { %3282 = vmatprep.subr.bf16.mxu1 %v4295_v10  ;;  %v4365_v10 = vld [vmem:[%s5363_s6 + $0x550] ss:$8 sps:$4 sm:$0xff]  }
 0x132   : > { %3230 = vmatpush1.bf16.msra.mxu0 %v4290_v11  ;;  %v5549_v11 = vld [vmem:[%s5361_s4 + $0x20] sm:$0xff] }
 0x133   : > { %3283 = vmatpush1.bf16.msra.mxu1 %v4293_v12  ;;  %3231 = vmatprep.subr.bf16.mxu0 %v4298_v13  ;;  %v5552_v12 = vld [vmem:[%s5361_s4 + $0x60] sm:$0xff]  ;;  %v3792_v13 = vcombine.low %v1401_v59, %v1409_v60 }
 0x134   : > { %3284 = vmatprep.subr.bf16.mxu1 %v4301_v14  ;;  %v3794_v14 = vcombine.low %v1402_v63, %v1410_v0  ;;  %v3781_v19 = vcombine.high %v5549_v11, %v5552_v12  ;;  %v4430_v59 = vld [vmem:[%s5363_s6 + $0x4a4] ss:$8 sps:$4 sm:$0xff]   ;;  %v4436_v63 = vld [vmem:[%s5363_s6 + $0x494] ss:$8 sps:$4 sm:$0xff]  }
 0x135   : > { %v4433_v60 = vld [vmem:[%s5363_s6 + $0x5a4] ss:$8 sps:$4 sm:$0xff]   ;;  %v4439_v0 = vld [vmem:[%s5363_s6 + $0x594] ss:$8 sps:$4 sm:$0xff]  }
 0x136   : > { %3232 = vmatpush1.bf16.msra.mxu0 %v4296_v21  ;;  %v4368_v21 = vld [vmem:[%s5363_s6 + $0x440] ss:$8 sps:$4 sm:$0xff]  }
 0x137   : > { %3285 = vmatpush1.bf16.msra.mxu1 %v4299_v22  ;;  %3233 = vmatprep.subr.bf16.mxu0 %v4304_v23  ;;  %v4371_v22 = vld [vmem:[%s5363_s6 + $0x540] ss:$8 sps:$4 sm:$0xff]   ;;  %v4376_v23 = vld [vmem:[%s5363_s6 + $0x434] ss:$8 sps:$4 sm:$0xff]  }
 0x138   : > { %3286 = vmatprep.subr.bf16.mxu1 %v4307_v24  ;;  %v4379_v24 = vld [vmem:[%s5363_s6 + $0x534] ss:$8 sps:$4 sm:$0xff]  }
 0x13a   : > { %3234 = vmatpush2.bf16.msra.mxu0 %v4302_v25  ;;  %v4374_v25 = vld [vmem:[%s5363_s6 + $0x430] ss:$8 sps:$4 sm:$0xff]  }
 0x13b   : > { %3287 = vmatpush2.bf16.msra.mxu1 %v4305_v26  ;;  %3235 = vmatprep.subr.bf16.mxu0 %v4310_v27  ;;  %v4377_v26 = vld [vmem:[%s5363_s6 + $0x530] ss:$8 sps:$4 sm:$0xff]   ;;  %v4382_v27 = vld [vmem:[%s5363_s6 + $0x424] ss:$8 sps:$4 sm:$0xff]  }
 0x13c   : > { %3288 = vmatprep.subr.bf16.mxu1 %v4313_v28  ;;  %v4385_v28 = vld [vmem:[%s5363_s6 + $0x524] ss:$8 sps:$4 sm:$0xff]  }
 0x13e   : > { %3236 = vmatpush2.bf16.msra.mxu0 %v4308_v29  ;;  %v4380_v29 = vld [vmem:[%s5363_s6 + $0x420] ss:$8 sps:$4 sm:$0xff]  }
 0x13f   : > { %3289 = vmatpush2.bf16.msra.mxu1 %v4311_v30  ;;  %3237 = vmatprep.subr.bf16.mxu0 %v4316_v31  ;;  %v4383_v30 = vld [vmem:[%s5363_s6 + $0x520] ss:$8 sps:$4 sm:$0xff]   ;;  %v4388_v31 = vld [vmem:[%s5363_s6 + $0x414] ss:$8 sps:$4 sm:$0xff]  }
 0x140   : > { %3290 = vmatprep.subr.bf16.mxu1 %v4319_v32  ;;  %v4391_v32 = vld [vmem:[%s5363_s6 + $0x514] ss:$8 sps:$4 sm:$0xff]  }
 0x142   : > { %3238 = vmatpush2.bf16.msra.mxu0 %v4314_v33  ;;  %v4386_v33 = vld [vmem:[%s5363_s6 + $0x410] ss:$8 sps:$4 sm:$0xff]  }
 0x143   : > { %3291 = vmatpush2.bf16.msra.mxu1 %v4317_v34  ;;  %3239 = vmatprep.subr.bf16.mxu0 %v4322_v35  ;;  %v4389_v34 = vld [vmem:[%s5363_s6 + $0x510] ss:$8 sps:$4 sm:$0xff]   ;;  %v4394_v35 = vld [vmem:[%s5363_s6 + $0x404] ss:$8 sps:$4 sm:$0xff]  }
 0x144   : > { %3292 = vmatprep.subr.bf16.mxu1 %v4325_v36  ;;  %v4397_v36 = vld [vmem:[%s5363_s6 + $0x504] ss:$8 sps:$4 sm:$0xff]  }
 0x146   : > { %3240 = vmatpush2.bf16.msra.mxu0 %v4320_v37  ;;  %v4392_v37 = vld [vmem:[%s5363_s6 + $0x400] ss:$8 sps:$4 sm:$0xff]  }
 0x147   : > { %3293 = vmatpush2.bf16.msra.mxu1 %v4323_v38  ;;  %3241 = vmatprep.subr.bf16.mxu0 %v4328_v39  ;;  %v4395_v38 = vld [vmem:[%s5363_s6 + $0x500] ss:$8 sps:$4 sm:$0xff]   ;;  %v4400_v39 = vld [vmem:[%s5363_s6 + $0x4f4] ss:$8 sps:$4 sm:$0xff]  }
 0x148   : > { %3294 = vmatprep.subr.bf16.mxu1 %v4331_v40  ;;  %v4403_v40 = vld [vmem:[%s5363_s6 + $0x5f4] ss:$8 sps:$4 sm:$0xff]  }
 0x14a   : > { %3242 = vmatpush2.bf16.msra.mxu0 %v4326_v41  ;;  %v4398_v41 = vld [vmem:[%s5363_s6 + $0x4f0] ss:$8 sps:$4 sm:$0xff]  }
 0x14b   : > { %3295 = vmatpush2.bf16.msra.mxu1 %v4329_v42  ;;  %3243 = vmatprep.subr.bf16.mxu0 %v4334_v43  ;;  %v4401_v42 = vld [vmem:[%s5363_s6 + $0x5f0] ss:$8 sps:$4 sm:$0xff]   ;;  %v4406_v43 = vld [vmem:[%s5363_s6 + $0x4e4] ss:$8 sps:$4 sm:$0xff]  }
 0x14c   : > { %3296 = vmatprep.subr.bf16.mxu1 %v4337_v44  ;;  %v4409_v44 = vld [vmem:[%s5363_s6 + $0x5e4] ss:$8 sps:$4 sm:$0xff]  }
 0x14e   : > { %3244 = vmatpush2.bf16.msra.mxu0 %v4332_v45  ;;  %v4404_v45 = vld [vmem:[%s5363_s6 + $0x4e0] ss:$8 sps:$4 sm:$0xff]  }
 0x14f   : > { %3297 = vmatpush2.bf16.msra.mxu1 %v4335_v46  ;;  %3245 = vmatprep.subr.bf16.mxu0 %v4340_v47  ;;  %v4407_v46 = vld [vmem:[%s5363_s6 + $0x5e0] ss:$8 sps:$4 sm:$0xff]   ;;  %v4412_v47 = vld [vmem:[%s5363_s6 + $0x4d4] ss:$8 sps:$4 sm:$0xff]  }
 0x150   : > { %3298 = vmatprep.subr.bf16.mxu1 %v4343_v48  ;;  %v4415_v48 = vld [vmem:[%s5363_s6 + $0x5d4] ss:$8 sps:$4 sm:$0xff]  }
 0x152   : > { %3246 = vmatpush2.bf16.msra.mxu0 %v4338_v49  ;;  %v4410_v49 = vld [vmem:[%s5363_s6 + $0x4d0] ss:$8 sps:$4 sm:$0xff]  }
 0x153   : > { %3299 = vmatpush2.bf16.msra.mxu1 %v4341_v50  ;;  %3247 = vmatprep.subr.bf16.mxu0 %v4346_v51  ;;  %v4413_v50 = vld [vmem:[%s5363_s6 + $0x5d0] ss:$8 sps:$4 sm:$0xff]   ;;  %v4418_v51 = vld [vmem:[%s5363_s6 + $0x4c4] ss:$8 sps:$4 sm:$0xff]  }
 0x154   : > { %3300 = vmatprep.subr.bf16.mxu1 %v4349_v52  ;;  %v4421_v52 = vld [vmem:[%s5363_s6 + $0x5c4] ss:$8 sps:$4 sm:$0xff]  }
 0x156   : > { %3248 = vmatpush2.bf16.msra.mxu0 %v4344_v53  ;;  %v4416_v53 = vld [vmem:[%s5363_s6 + $0x4c0] ss:$8 sps:$4 sm:$0xff]  }
 0x157   : > { %3301 = vmatpush2.bf16.msra.mxu1 %v4347_v54  ;;  %3323 = vmatprep.subr.bf16.mxu0 %v4352_v55  ;;  %v4419_v54 = vld [vmem:[%s5363_s6 + $0x5c0] ss:$8 sps:$4 sm:$0xff]   ;;  %v4424_v55 = vld [vmem:[%s5363_s6 + $0x4b4] ss:$8 sps:$4 sm:$0xff]  }
 0x158   : > { %3376 = vmatprep.subr.bf16.mxu1 %v4355_v56  ;;  %v4427_v56 = vld [vmem:[%s5363_s6 + $0x5b4] ss:$8 sps:$4 sm:$0xff]  }
 0x159   : > { %3250 = vmatmul.mubr.bf16.vlgmr.msra.gmra.mxu0 %v3776_v61  ;;  %v4428_v61 = vld [vmem:[%s5363_s6 + $0x4a0] ss:$8 sps:$4 sm:$0xff]  }
 0x15a   : > { %3303 = vmatmul.mubr.bf16.vlgmr.msra.gmra.mxu1 %v3778_v62  ;;  %3324 = vmatpush1.bf16.msra.mxu0 %v4350_v57  ;;  %v4422_v57 = vld [vmem:[%s5363_s6 + $0x4b0] ss:$8 sps:$4 sm:$0xff]   ;;  %v4431_v62 = vld [vmem:[%s5363_s6 + $0x5a0] ss:$8 sps:$4 sm:$0xff]  }
 0x15b   : > { %3377 = vmatpush1.bf16.msra.mxu1 %v4353_v58  ;;  %3325 = vmatprep.subr.bf16.mxu0 %v4358_v1  ;;  %v4425_v58 = vld [vmem:[%s5363_s6 + $0x5b0] ss:$8 sps:$4 sm:$0xff]  }
 0x15c   : > { %3378 = vmatprep.subr.bf16.mxu1 %v4361_v2  ;;  %3259 = vmatprep.mubr.bf16.mxu0 %v3793_v3  ;;  %v4434_v1 = vld [vmem:[%s5363_s6 + $0x490] ss:$8 sps:$4 sm:$0xff]   ;;  %v4442_v3 = vld [vmem:[%s5363_s6 + $0x484] ss:$8 sps:$4 sm:$0xff]  }
 0x15d   : > { %3312 = vmatprep.mubr.bf16.mxu1 %v3795_v4  ;;  %v4437_v2 = vld [vmem:[%s5363_s6 + $0x590] ss:$8 sps:$4 sm:$0xff]   ;;  %v4445_v4 = vld [vmem:[%s5363_s6 + $0x584] ss:$8 sps:$4 sm:$0xff]  }
 0x15e   : > { %3326 = vmatpush1.bf16.msra.mxu0 %v4356_v5  ;;  %v4440_v5 = vld [vmem:[%s5363_s6 + $0x480] ss:$8 sps:$4 sm:$0xff]  }
 0x15f   : > { %3379 = vmatpush1.bf16.msra.mxu1 %v4359_v6  ;;  %3327 = vmatprep.subr.bf16.mxu0 %v4364_v7  ;;  %v4443_v6 = vld [vmem:[%s5363_s6 + $0x580] ss:$8 sps:$4 sm:$0xff]   ;;  %v4448_v7 = vld [vmem:[%s5363_s6 + $0x674] ss:$8 sps:$4 sm:$0xff]  }
 0x160   : > { %3380 = vmatprep.subr.bf16.mxu1 %v4367_v8  ;;  %v4451_v8 = vld [vmem:[%s5363_s6 + $0x774] ss:$8 sps:$4 sm:$0xff]  }
 0x161   : > { %3260 = vmatmul.mubr.bf16.gmra.mxu0 %v3792_v13  ;;  %v3782_v13 = vcombine.low %v5555_v15, %v5558_v16  ;;  %v4452_v15 = vld [vmem:[%s5363_s6 + $0x660] ss:$8 sps:$4 sm:$0xff]  }
 0x162   : > { %3313 = vmatmul.mubr.bf16.gmra.mxu1 %v3794_v14  ;;  %3328 = vmatpush1.bf16.msra.mxu0 %v4362_v9  ;;  %v1403_v9 = vld [vmem:[%s5361_s4 + $0xa0] sm:$0xff] }
 0x163   : > { %3381 = vmatpush1.bf16.msra.mxu1 %v4365_v10  ;;  %3329 = vmatprep.subr.bf16.mxu0 %v4370_v17  ;;  %v3780_v10 = vcombine.low %v5549_v11, %v5552_v12  ;;  %v1411_v14 = vld [vmem:[%s5361_s4 + $0xe0] sm:$0xff]  ;;  %v1404_v17 = vld [vmem:[%s5361_s4 + $0xa8] sm:$0xff] }
 0x164   : > { %3382 = vmatprep.subr.bf16.mxu1 %v4373_v18  ;;  %3355 = vmatprep.mubr.bf16.mxu0 %v3781_v19  ;;  %v1412_v18 = vld [vmem:[%s5361_s4 + $0xe8] sm:$0xff]  ;;  %v4446_v19 = vld [vmem:[%s5363_s6 + $0x670] ss:$8 sps:$4 sm:$0xff]   ;;  %v3797_v11 = vcombine.high %v1403_v9, %v1411_v14 }
 0x165   : > { %3408 = vmatprep.mubr.bf16.mxu1 %v3783_v20  ;;  %v4449_v20 = vld [vmem:[%s5363_s6 + $0x770] ss:$8 sps:$4 sm:$0xff]   ;;  %v3799_v12 = vcombine.high %v1404_v17, %v1412_v18  ;;  %v4455_v16 = vld [vmem:[%s5363_s6 + $0x760] ss:$8 sps:$4 sm:$0xff]  }
 0x166   : > { %3330 = vmatpush1.bf16.msra.mxu0 %v4368_v21  ;;  %v4454_v21 = vld [vmem:[%s5363_s6 + $0x664] ss:$8 sps:$4 sm:$0xff]  }
 0x167   : > { %3383 = vmatpush1.bf16.msra.mxu1 %v4371_v22  ;;  %3331 = vmatprep.subr.bf16.mxu0 %v4376_v23  ;;  %v4457_v22 = vld [vmem:[%s5363_s6 + $0x764] ss:$8 sps:$4 sm:$0xff]   ;;  %v4460_v23 = vld [vmem:[%s5363_s6 + $0x654] ss:$8 sps:$4 sm:$0xff]  }
 0x168   : > { %3384 = vmatprep.subr.bf16.mxu1 %v4379_v24  ;;  %v4463_v24 = vld [vmem:[%s5363_s6 + $0x754] ss:$8 sps:$4 sm:$0xff]  }
 0x16a   : > { %3332 = vmatpush1.bf16.msra.mxu0 %v4374_v25  ;;  %v5635_v25 = vld [vmem:[%s5361_s4 + $0x30] sm:$0xff] }
 0x16b   : > { %3385 = vmatpush1.bf16.msra.mxu1 %v4377_v26  ;;  %3333 = vmatprep.subr.bf16.mxu0 %v4382_v27  ;;  %v3796_v26 = vcombine.low %v1403_v9, %v1411_v14  ;;  %v3798_v27 = vcombine.low %v1404_v17, %v1412_v18  ;;  %v4518_v9 = vld [vmem:[%s5363_s6 + $0x6b0] ss:$8 sps:$4 sm:$0xff]   ;;  %v4529_v14 = vld [vmem:[%s5363_s6 + $0x7a4] ss:$8 sps:$4 sm:$0xff]   ;;  %v4524_v17 = vld [vmem:[%s5363_s6 + $0x6a0] ss:$8 sps:$4 sm:$0xff]  }
 0x16c   : > { %3386 = vmatprep.subr.bf16.mxu1 %v4385_v28  ;;  %v5638_v28 = vld [vmem:[%s5361_s4 + $0x70] sm:$0xff]  ;;  %v4527_v18 = vld [vmem:[%s5363_s6 + $0x7a0] ss:$8 sps:$4 sm:$0xff]  }
 0x16e   : > { %3334 = vmatpush1.bf16.msra.mxu0 %v4380_v29  ;;  %v5641_v29 = vld [vmem:[%s5361_s4 + $0x38] sm:$0xff] }
 0x16f   : > { %3387 = vmatpush1.bf16.msra.mxu1 %v4383_v30  ;;  %3335 = vmatprep.subr.bf16.mxu0 %v4388_v31  ;;  %v5644_v30 = vld [vmem:[%s5361_s4 + $0x78] sm:$0xff] }
 0x170   : > { %3388 = vmatprep.subr.bf16.mxu1 %v4391_v32  ;;  %v4458_v31 = vld [vmem:[%s5363_s6 + $0x650] ss:$8 sps:$4 sm:$0xff]  }
 0x171   : > { %v4461_v32 = vld [vmem:[%s5363_s6 + $0x750] ss:$8 sps:$4 sm:$0xff]  }
 0x172   : > { %3336 = vmatpush1.bf16.msra.mxu0 %v4386_v33  ;;  %v4466_v33 = vld [vmem:[%s5363_s6 + $0x644] ss:$8 sps:$4 sm:$0xff]  }
 0x173   : > { %3389 = vmatpush1.bf16.msra.mxu1 %v4389_v34  ;;  %3337 = vmatprep.subr.bf16.mxu0 %v4394_v35  ;;  %v4469_v34 = vld [vmem:[%s5363_s6 + $0x744] ss:$8 sps:$4 sm:$0xff]   ;;  %v3785_v35 = vcombine.high %v5635_v25, %v5638_v28 }
 0x174   : > { %3390 = vmatprep.subr.bf16.mxu1 %v4397_v36  ;;  %v3787_v36 = vcombine.high %v5641_v29, %v5644_v30 }
 0x176   : > { %3338 = vmatpush1.bf16.msra.mxu0 %v4392_v37  ;;  %v4464_v37 = vld [vmem:[%s5363_s6 + $0x640] ss:$8 sps:$4 sm:$0xff]  }
 0x177   : > { %3391 = vmatpush1.bf16.msra.mxu1 %v4395_v38  ;;  %3339 = vmatprep.subr.bf16.mxu0 %v4400_v39  ;;  %v4467_v38 = vld [vmem:[%s5363_s6 + $0x740] ss:$8 sps:$4 sm:$0xff]   ;;  %v4472_v39 = vld [vmem:[%s5363_s6 + $0x634] ss:$8 sps:$4 sm:$0xff]  }
 0x178   : > { %3392 = vmatprep.subr.bf16.mxu1 %v4403_v40  ;;  %v4475_v40 = vld [vmem:[%s5363_s6 + $0x734] ss:$8 sps:$4 sm:$0xff]  }
 0x17a   : > { %3340 = vmatpush2.bf16.msra.mxu0 %v4398_v41  ;;  %v4470_v41 = vld [vmem:[%s5363_s6 + $0x630] ss:$8 sps:$4 sm:$0xff]  }
 0x17b   : > { %3393 = vmatpush2.bf16.msra.mxu1 %v4401_v42  ;;  %3341 = vmatprep.subr.bf16.mxu0 %v4406_v43  ;;  %v4473_v42 = vld [vmem:[%s5363_s6 + $0x730] ss:$8 sps:$4 sm:$0xff]   ;;  %v4478_v43 = vld [vmem:[%s5363_s6 + $0x624] ss:$8 sps:$4 sm:$0xff]  }
 0x17c   : > { %3394 = vmatprep.subr.bf16.mxu1 %v4409_v44  ;;  %v4481_v44 = vld [vmem:[%s5363_s6 + $0x724] ss:$8 sps:$4 sm:$0xff]  }
 0x17e   : > { %3342 = vmatpush2.bf16.msra.mxu0 %v4404_v45  ;;  %v4476_v45 = vld [vmem:[%s5363_s6 + $0x620] ss:$8 sps:$4 sm:$0xff]  }
 0x17f   : > { %3395 = vmatpush2.bf16.msra.mxu1 %v4407_v46  ;;  %3343 = vmatprep.subr.bf16.mxu0 %v4412_v47  ;;  %v4479_v46 = vld [vmem:[%s5363_s6 + $0x720] ss:$8 sps:$4 sm:$0xff]   ;;  %v4484_v47 = vld [vmem:[%s5363_s6 + $0x614] ss:$8 sps:$4 sm:$0xff]  }
 0x180   : > { %3396 = vmatprep.subr.bf16.mxu1 %v4415_v48  ;;  %v4487_v48 = vld [vmem:[%s5363_s6 + $0x714] ss:$8 sps:$4 sm:$0xff]  }
 0x182   : > { %3344 = vmatpush2.bf16.msra.mxu0 %v4410_v49  ;;  %v4482_v49 = vld [vmem:[%s5363_s6 + $0x610] ss:$8 sps:$4 sm:$0xff]  }
 0x183   : > { %3397 = vmatpush2.bf16.msra.mxu1 %v4413_v50  ;;  %3345 = vmatprep.subr.bf16.mxu0 %v4418_v51  ;;  %v4485_v50 = vld [vmem:[%s5363_s6 + $0x710] ss:$8 sps:$4 sm:$0xff]   ;;  %v4490_v51 = vld [vmem:[%s5363_s6 + $0x604] ss:$8 sps:$4 sm:$0xff]  }
 0x184   : > { %3398 = vmatprep.subr.bf16.mxu1 %v4421_v52  ;;  %v4493_v52 = vld [vmem:[%s5363_s6 + $0x704] ss:$8 sps:$4 sm:$0xff]  }
 0x186   : > { %3346 = vmatpush2.bf16.msra.mxu0 %v4416_v53  ;;  %v4488_v53 = vld [vmem:[%s5363_s6 + $0x600] ss:$8 sps:$4 sm:$0xff]  }
 0x187   : > { %3399 = vmatpush2.bf16.msra.mxu1 %v4419_v54  ;;  %3347 = vmatprep.subr.bf16.mxu0 %v4424_v55  ;;  %v4491_v54 = vld [vmem:[%s5363_s6 + $0x700] ss:$8 sps:$4 sm:$0xff]   ;;  %v4496_v55 = vld [vmem:[%s5363_s6 + $0x6f4] ss:$8 sps:$4 sm:$0xff]  }
 0x188   : > { %3400 = vmatprep.subr.bf16.mxu1 %v4427_v56  ;;  %v4499_v56 = vld [vmem:[%s5363_s6 + $0x7f4] ss:$8 sps:$4 sm:$0xff]  }
 0x18a   : > { %3348 = vmatpush2.bf16.msra.mxu0 %v4422_v57  ;;  %v4494_v57 = vld [vmem:[%s5363_s6 + $0x6f0] ss:$8 sps:$4 sm:$0xff]  }
 0x18b   : > { %3401 = vmatpush2.bf16.msra.mxu1 %v4425_v58  ;;  %3349 = vmatprep.subr.bf16.mxu0 %v4430_v59  ;;  %v4497_v58 = vld [vmem:[%s5363_s6 + $0x7f0] ss:$8 sps:$4 sm:$0xff]   ;;  %v4502_v59 = vld [vmem:[%s5363_s6 + $0x6e4] ss:$8 sps:$4 sm:$0xff]  }
 0x18c   : > { %3402 = vmatprep.subr.bf16.mxu1 %v4433_v60  ;;  %v4505_v60 = vld [vmem:[%s5363_s6 + $0x7e4] ss:$8 sps:$4 sm:$0xff]  }
 0x18e   : > { %3350 = vmatpush2.bf16.msra.mxu0 %v4428_v61  ;;  %v4500_v61 = vld [vmem:[%s5363_s6 + $0x6e0] ss:$8 sps:$4 sm:$0xff]  }
 0x18f   : > { %3403 = vmatpush2.bf16.msra.mxu1 %v4431_v62  ;;  %3351 = vmatprep.subr.bf16.mxu0 %v4436_v63  ;;  %v4503_v62 = vld [vmem:[%s5363_s6 + $0x7e0] ss:$8 sps:$4 sm:$0xff]   ;;  %v4508_v63 = vld [vmem:[%s5363_s6 + $0x6d4] ss:$8 sps:$4 sm:$0xff]  }
 0x190   : > { %3404 = vmatprep.subr.bf16.mxu1 %v4439_v0  ;;  %v4511_v0 = vld [vmem:[%s5363_s6 + $0x7d4] ss:$8 sps:$4 sm:$0xff]  }
 0x192   : > { %3352 = vmatpush2.bf16.msra.mxu0 %v4434_v1  ;;  %v4506_v1 = vld [vmem:[%s5363_s6 + $0x6d0] ss:$8 sps:$4 sm:$0xff]  }
 0x193   : > { %3405 = vmatpush2.bf16.msra.mxu1 %v4437_v2  ;;  %3353 = vmatprep.subr.bf16.mxu0 %v4442_v3  ;;  %v4509_v2 = vld [vmem:[%s5363_s6 + $0x7d0] ss:$8 sps:$4 sm:$0xff]   ;;  %v4514_v3 = vld [vmem:[%s5363_s6 + $0x6c4] ss:$8 sps:$4 sm:$0xff]  }
 0x194   : > { %3406 = vmatprep.subr.bf16.mxu1 %v4445_v4  ;;  %v4517_v4 = vld [vmem:[%s5363_s6 + $0x7c4] ss:$8 sps:$4 sm:$0xff]  }
 0x196   : > { %3354 = vmatpush2.bf16.msra.mxu0 %v4440_v5  ;;  %v4512_v5 = vld [vmem:[%s5363_s6 + $0x6c0] ss:$8 sps:$4 sm:$0xff]  }
 0x197   : > { %3407 = vmatpush2.bf16.msra.mxu1 %v4443_v6  ;;  %3429 = vmatprep.subr.bf16.mxu0 %v4448_v7  ;;  %v4515_v6 = vld [vmem:[%s5363_s6 + $0x7c0] ss:$8 sps:$4 sm:$0xff]   ;;  %v4520_v7 = vld [vmem:[%s5363_s6 + $0x6b4] ss:$8 sps:$4 sm:$0xff]  }
 0x198   : > { %3482 = vmatprep.subr.bf16.mxu1 %v4451_v8  ;;  %v4523_v8 = vld [vmem:[%s5363_s6 + $0x7b4] ss:$8 sps:$4 sm:$0xff]  }
 0x199   : > { %3356 = vmatmul.mubr.bf16.vlgmr.msra.gmra.mxu0 %v3780_v10  ;;  %v4521_v10 = vld [vmem:[%s5363_s6 + $0x7b0] ss:$8 sps:$4 sm:$0xff]  }
 0x19a   : > { %3409 = vmatmul.mubr.bf16.vlgmr.msra.gmra.mxu1 %v3782_v13  ;;  %3430 = vmatpush1.bf16.msra.mxu0 %v4446_v19  ;;  %v4526_v13 = vld [vmem:[%s5363_s6 + $0x6a4] ss:$8 sps:$4 sm:$0xff]   ;;  %v4532_v19 = vld [vmem:[%s5363_s6 + $0x694] ss:$8 sps:$4 sm:$0xff]  }
 0x19b   : > { %3483 = vmatpush1.bf16.msra.mxu1 %v4449_v20  ;;  %3431 = vmatprep.subr.bf16.mxu0 %v4454_v21  ;;  %v4535_v20 = vld [vmem:[%s5363_s6 + $0x794] ss:$8 sps:$4 sm:$0xff]   ;;  %v4530_v21 = vld [vmem:[%s5363_s6 + $0x690] ss:$8 sps:$4 sm:$0xff]  }
 0x19c   : > { %3484 = vmatprep.subr.bf16.mxu1 %v4457_v22  ;;  %3365 = vmatprep.mubr.bf16.mxu0 %v3797_v11  ;;  %v4533_v22 = vld [vmem:[%s5363_s6 + $0x790] ss:$8 sps:$4 sm:$0xff]   ;;  %v4538_v11 = vld [vmem:[%s5363_s6 + $0x684] ss:$8 sps:$4 sm:$0xff]  }
 0x19d   : > { %3418 = vmatprep.mubr.bf16.mxu1 %v3799_v12  ;;  %v4541_v12 = vld [vmem:[%s5363_s6 + $0x784] ss:$8 sps:$4 sm:$0xff]  }
 0x19e   : > { %3432 = vmatpush1.bf16.msra.mxu0 %v4452_v15  ;;  %v4536_v15 = vld [vmem:[%s5363_s6 + $0x680] ss:$8 sps:$4 sm:$0xff]  }
 0x19f   : > { %3485 = vmatpush1.bf16.msra.mxu1 %v4455_v16  ;;  %3433 = vmatprep.subr.bf16.mxu0 %v4460_v23  ;;  %v4539_v16 = vld [vmem:[%s5363_s6 + $0x780] ss:$8 sps:$4 sm:$0xff]   ;;  %v1405_v23 = vld [vmem:[%s5361_s4 + $0xb0] sm:$0xff] }
 0x1a0   : > { %3486 = vmatprep.subr.bf16.mxu1 %v4463_v24  ;;  %v1413_v24 = vld [vmem:[%s5361_s4 + $0xf0] sm:$0xff] }
 0x1a1   : > { %3366 = vmatmul.mubr.bf16.gmra.mxu0 %v3796_v26  ;;  %v1406_v26 = vld [vmem:[%s5361_s4 + $0xb8] sm:$0xff] }
 0x1a2   : > { %3419 = vmatmul.mubr.bf16.gmra.mxu1 %v3798_v27  ;;  %3434 = vmatpush1.bf16.msra.mxu0 %v4458_v31  ;;  %v1414_v27 = vld [vmem:[%s5361_s4 + $0xf8] sm:$0xff]  ;;  %v3784_v31 = vcombine.low %v5635_v25, %v5638_v28 }
 0x1a3   : > { %3487 = vmatpush1.bf16.msra.mxu1 %v4461_v32  ;;  %3435 = vmatprep.subr.bf16.mxu0 %v4466_v33  ;;  %v3786_v32 = vcombine.low %v5641_v29, %v5644_v30  ;;  %v3801_v33 = vcombine.high %v1405_v23, %v1413_v24 }
 0x1a4   : > { %3488 = vmatprep.subr.bf16.mxu1 %v4469_v34  ;;  %3461 = vmatprep.mubr.bf16.mxu0 %v3785_v35  ;;  %v3803_v34 = vcombine.high %v1406_v26, %v1414_v27  ;;  %v3800_v35 = vcombine.low %v1405_v23, %v1413_v24 }
 0x1a5   : > { %3514 = vmatprep.mubr.bf16.mxu1 %v3787_v36  ;;  %v3802_v36 = vcombine.low %v1406_v26, %v1414_v27 }
 0x1a6   : > { %3436 = vmatpush1.bf16.msra.mxu0 %v4464_v37 }
 0x1a7   : > { %3489 = vmatpush1.bf16.msra.mxu1 %v4467_v38  ;;  %3437 = vmatprep.subr.bf16.mxu0 %v4472_v39 }
 0x1a8   : > { %3490 = vmatprep.subr.bf16.mxu1 %v4475_v40 }
 0x1aa   : > { %3438 = vmatpush1.bf16.msra.mxu0 %v4470_v41 }
 0x1ab   : > { %3491 = vmatpush1.bf16.msra.mxu1 %v4473_v42  ;;  %3439 = vmatprep.subr.bf16.mxu0 %v4478_v43 }
 0x1ac   : > { %3492 = vmatprep.subr.bf16.mxu1 %v4481_v44 }
 0x1ae   : > { %3440 = vmatpush1.bf16.msra.mxu0 %v4476_v45 }
 0x1af   : > { %3493 = vmatpush1.bf16.msra.mxu1 %v4479_v46  ;;  %3441 = vmatprep.subr.bf16.mxu0 %v4484_v47 }
 0x1b0   : > { %3494 = vmatprep.subr.bf16.mxu1 %v4487_v48 }
 0x1b2   : > { %3442 = vmatpush1.bf16.msra.mxu0 %v4482_v49 }
 0x1b3   : > { %3495 = vmatpush1.bf16.msra.mxu1 %v4485_v50  ;;  %3443 = vmatprep.subr.bf16.mxu0 %v4490_v51 }
 0x1b4   : > { %3496 = vmatprep.subr.bf16.mxu1 %v4493_v52 }
 0x1b6   : > { %3444 = vmatpush1.bf16.msra.mxu0 %v4488_v53 }
 0x1b7   : > { %3497 = vmatpush1.bf16.msra.mxu1 %v4491_v54  ;;  %3445 = vmatprep.subr.bf16.mxu0 %v4496_v55 }
 0x1b8   : > { %3498 = vmatprep.subr.bf16.mxu1 %v4499_v56 }
 0x1ba   : > { %3446 = vmatpush2.bf16.msra.mxu0 %v4494_v57 }
 0x1bb   : > { %3499 = vmatpush2.bf16.msra.mxu1 %v4497_v58  ;;  %3447 = vmatprep.subr.bf16.mxu0 %v4502_v59 }
 0x1bc   : > { %3500 = vmatprep.subr.bf16.mxu1 %v4505_v60 }
 0x1be   : > { %3448 = vmatpush2.bf16.msra.mxu0 %v4500_v61 }
 0x1bf   : > { %3501 = vmatpush2.bf16.msra.mxu1 %v4503_v62  ;;  %3449 = vmatprep.subr.bf16.mxu0 %v4508_v63 }
 0x1c0   : > { %3502 = vmatprep.subr.bf16.mxu1 %v4511_v0 }
 0x1c2   : > { %3450 = vmatpush2.bf16.msra.mxu0 %v4506_v1 }
 0x1c3   : > { %3503 = vmatpush2.bf16.msra.mxu1 %v4509_v2  ;;  %3451 = vmatprep.subr.bf16.mxu0 %v4514_v3 }
 0x1c4   : > { %3504 = vmatprep.subr.bf16.mxu1 %v4517_v4 }
 0x1c6   : > { %3452 = vmatpush2.bf16.msra.mxu0 %v4512_v5 }
 0x1c7   : > { %3505 = vmatpush2.bf16.msra.mxu1 %v4515_v6  ;;  %3453 = vmatprep.subr.bf16.mxu0 %v4520_v7 }
 0x1c8   : > { %3506 = vmatprep.subr.bf16.mxu1 %v4523_v8 }
 0x1ca   : > { %3454 = vmatpush2.bf16.msra.mxu0 %v4518_v9 }
 0x1cb   : > { %3507 = vmatpush2.bf16.msra.mxu1 %v4521_v10  ;;  %3455 = vmatprep.subr.bf16.mxu0 %v4526_v13 }
 0x1cc   : > { %3508 = vmatprep.subr.bf16.mxu1 %v4529_v14 }
 0x1ce   : > { %3456 = vmatpush2.bf16.msra.mxu0 %v4524_v17 }
 0x1cf   : > { %3509 = vmatpush2.bf16.msra.mxu1 %v4527_v18  ;;  %3457 = vmatprep.subr.bf16.mxu0 %v4532_v19 }
 0x1d0   : > { %3510 = vmatprep.subr.bf16.mxu1 %v4535_v20 }
 0x1d2   : > { %3458 = vmatpush2.bf16.msra.mxu0 %v4530_v21 }
 0x1d3   : > { %3511 = vmatpush2.bf16.msra.mxu1 %v4533_v22  ;;  %3459 = vmatprep.subr.bf16.mxu0 %v4538_v11 }
 0x1d4   : > { %3512 = vmatprep.subr.bf16.mxu1 %v4541_v12 }
 0x1d6   : > { %3460 = vmatpush2.bf16.msra.mxu0 %v4536_v15 }
 0x1d7   : > { %3513 = vmatpush2.bf16.msra.mxu1 %v4539_v16 }
 0x1d9   : > { %3462 = vmatmul.mubr.bf16.vlgmr.msra.gmra.mxu0 %v3784_v31  ;;  %v3145_v37 = vpop.f32.mrf.mxu0 }
 0x1da   : > { %3515 = vmatmul.mubr.bf16.vlgmr.msra.gmra.mxu1 %v3786_v32  ;;  %3471 = vmatprep.mubr.bf16.mxu0 %v3801_v33  ;;  %v3198_v38 = vpop.f32.mrf.mxu1 }
 0x1db   : > { %3524 = vmatprep.mubr.bf16.mxu1 %v3803_v34  ;;  %v3147_v39 = vpop.f32.mrf.mxu0  ;;  %v3199_v13 = vadd.f32 %v3198_v38, %v3145_v37 }
 0x1dc   : > { %v3200_v40 = vpop.f32.mrf.mxu1 }
 0x1dd   : > { %v3149_v25 = vpop.f32.mrf.mxu0  ;;  %v3201_v14 = vadd.f32 %v3200_v40, %v3147_v39 }
 0x1de   : > { %v3202_v28 = vpop.f32.mrf.mxu1 }
 0x1df   : > { %v3151_v41 = vpop.f32.mrf.mxu0  ;;  %v3203_v20 = vadd.f32 %v3202_v28, %v3149_v25 }
 0x1e0   : > { %v3204_v30 = vpop.f32.mrf.mxu1 }
 0x1e1   : > { %3472 = vmatmul.mubr.bf16.gmra.mxu0 %v3800_v35  ;;  %v3155_v29 = vpop.f32.mrf.mxu0  ;;  %v3205_v22 = vadd.f32 %v3204_v30, %v3151_v41 }
 0x1e2   : > { %3525 = vmatmul.mubr.bf16.gmra.mxu1 %v3802_v36  ;;  %v3208_v42 = vpop.f32.mrf.mxu1 }
 0x1e3   : > { %v3157_v43 = vpop.f32.mrf.mxu0  ;;  %v3209_v15 = vadd.f32 %v3208_v42, %v3155_v29 }
 0x1e4   : > { %v3210_v44 = vpop.f32.mrf.mxu1 }
 0x1e5   : > { %v3159_v45 = vpop.f32.mrf.mxu0  ;;  %v3211_v31 = vadd.f32 %v3210_v44, %v3157_v43 }
 0x1e6   : > { %v3212_v46 = vpop.f32.mrf.mxu1 }
 0x1e7   : > { %v3161_v47 = vpop.f32.mrf.mxu0  ;;  %v3213_v35 = vadd.f32 %v3212_v46, %v3159_v45  ;;  %v1375_v45 = vld [vmem:[%s5365_s1] sm:$0xff] }
 0x1e8   : > { %v3214_v49 = vpop.f32.mrf.mxu1 }
 0x1e9   : > { %v3215_v28 = vadd.f32 %v3214_v49, %v3161_v47 }
 0x219   : > { %v3251_v48 = vpop.f32.mrf.mxu0 }
 0x21a   : > { %v3304_v50 = vpop.f32.mrf.mxu1  ;;  %v3252_v17 = vadd.f32 %v3251_v48, %v3199_v13 }
 0x21b   : > { %v3253_v51 = vpop.f32.mrf.mxu0 }
 0x21c   : > { %v3306_v52 = vpop.f32.mrf.mxu1  ;;  %v3254_v21 = vadd.f32 %v3253_v51, %v3201_v14  ;;  %v3305_v11 = vadd.f32 %v3304_v50, %v3252_v17  ;;  %v1378_v17 = vld [vmem:[%s5365_s1 + $0x18] sm:$0xff] }
 0x21d   : > { %v3255_v53 = vpop.f32.mrf.mxu0 }
 0x21e   : > { %v3308_v54 = vpop.f32.mrf.mxu1  ;;  %v3256_v12 = vadd.f32 %v3255_v53, %v3203_v20  ;;  %v3307_v24 = vadd.f32 %v3306_v52, %v3254_v21 }
 0x21f   : > { %v3257_v55 = vpop.f32.mrf.mxu0 }
 0x220   : > { %v3310_v56 = vpop.f32.mrf.mxu1  ;;  %v3258_v26 = vadd.f32 %v3257_v55, %v3205_v22  ;;  %v3309_v33 = vadd.f32 %v3308_v54, %v3256_v12  ;;  %v1379_v22 = vld [vmem:[%s5365_s1 + $0x20] sm:$0xff] }
 0x221   : > { %v3261_v57 = vpop.f32.mrf.mxu0 }
 0x222   : > { %v3314_v58 = vpop.f32.mrf.mxu1  ;;  %v3262_v32 = vadd.f32 %v3261_v57, %v3209_v15  ;;  %v3311_v39 = vadd.f32 %v3310_v56, %v3258_v26  ;;  %v1376_v57 = vld [vmem:[%s5365_s1 + $0x8] sm:$0xff] }
 0x223   : > { %v3263_v59 = vpop.f32.mrf.mxu0  ;;  %v1380_v26 = vld [vmem:[%s5365_s1 + $0x28] sm:$0xff] }
 0x224   : > { %v3316_v60 = vpop.f32.mrf.mxu1  ;;  %v3264_v36 = vadd.f32 %v3263_v59, %v3211_v31  ;;  %v3315_v41 = vadd.f32 %v3314_v58, %v3262_v32 }
 0x225   : > { %v3265_v61 = vpop.f32.mrf.mxu0 }
 0x226   : > { %v3318_v62 = vpop.f32.mrf.mxu1  ;;  %v3266_v29 = vadd.f32 %v3265_v61, %v3213_v35  ;;  %v3317_v44 = vadd.f32 %v3316_v60, %v3264_v36  ;;  %v1381_v36 = vld [vmem:[%s5365_s1 + $0x30] sm:$0xff] }
 0x227   : > { %v3267_v63 = vpop.f32.mrf.mxu0 }
 0x228   : > { %v5712_v0 = vpop.f32.mrf.mxu1  ;;  %v3268_v51 = vadd.f32 %v3267_v63, %v3215_v28  ;;  %v3319_v47 = vadd.f32 %v3318_v62, %v3266_v29 }
 0x22a   : > { %v3321_v63 = vadd.f32 %v5712_v0, %v3268_v51 }
 0x259   : > { %v3357_v1 = vpop.f32.mrf.mxu0 }
 0x25a   : > { %v3410_v2 = vpop.f32.mrf.mxu1  ;;  %v3358_v27 = vadd.f32 %v3357_v1, %v3305_v11 }
 0x25b   : > { %v3359_v3 = vpop.f32.mrf.mxu0 }
 0x25c   : > { %v3412_v4 = vpop.f32.mrf.mxu1  ;;  %v3360_v34 = vadd.f32 %v3359_v3, %v3307_v24  ;;  %v3411_v40 = vadd.f32 %v3410_v2, %v3358_v27 }
 0x25d   : > { %v3361_v5 = vpop.f32.mrf.mxu0 }
 0x25e   : > { %v3414_v6 = vpop.f32.mrf.mxu1  ;;  %v3362_v25 = vadd.f32 %v3361_v5, %v3309_v33  ;;  %v3413_v48 = vadd.f32 %v3412_v4, %v3360_v34  ;;  %v1377_v4 = vld [vmem:[%s5365_s1 + $0x10] sm:$0xff] }
 0x25f   : > { %v3363_v7 = vpop.f32.mrf.mxu0 }
 0x260   : > { %v3416_v8 = vpop.f32.mrf.mxu1  ;;  %v3364_v50 = vadd.f32 %v3363_v7, %v3311_v39  ;;  %v3415_v54 = vadd.f32 %v3414_v6, %v3362_v25  ;;  %v1382_v25 = vld [vmem:[%s5365_s1 + $0x38] sm:$0xff] }
 0x261   : > { %v3367_v9 = vpop.f32.mrf.mxu0 }
 0x262   : > { %v3420_v10 = vpop.f32.mrf.mxu1  ;;  %v3368_v52 = vadd.f32 %v3367_v9, %v3315_v41  ;;  %v3417_v61 = vadd.f32 %v3416_v8, %v3364_v50 }
 0x263   : > { %v3369_v18 = vpop.f32.mrf.mxu0 }
 0x264   : > { %v3422_v19 = vpop.f32.mrf.mxu1  ;;  %v3370_v49 = vadd.f32 %v3369_v18, %v3317_v44  ;;  %v3421_v3 = vadd.f32 %v3420_v10, %v3368_v52 }
 0x265   : > { %v3371_v16 = vpop.f32.mrf.mxu0 }
 0x266   : > { %v5714_v23 = vpop.f32.mrf.mxu1  ;;  %v3372_v7 = vadd.f32 %v3371_v16, %v3319_v47  ;;  %v3423_v14 = vadd.f32 %v3422_v19, %v3370_v49 }
 0x267   : > { %v3373_v37 = vpop.f32.mrf.mxu0 }
 0x268   : > { %v3426_v38 = vpop.f32.mrf.mxu1  ;;  %v3374_v20 = vadd.f32 %v3373_v37, %v3321_v63  ;;  %v3425_v15 = vadd.f32 %v5714_v23, %v3372_v7 }
 0x26a   : > { %v3427_v32 = vadd.f32 %v3426_v38, %v3374_v20 }
 0x299   : > { %v3463_v30 = vpop.f32.mrf.mxu0 }
 0x29a   : > { %v3516_v42 = vpop.f32.mrf.mxu1  ;;  %v3464_v43 = vadd.f32 %v3463_v30, %v3411_v40 }
 0x29b   : > { %v3465_v46 = vpop.f32.mrf.mxu0 }
 0x29c   : > { %v3518_v53 = vpop.f32.mrf.mxu1  ;;  %v3517_v55 = vadd.f32 %v3516_v42, %v3464_v43  ;;  %v3466_v56 = vadd.f32 %v3465_v46, %v3413_v48 }
 0x29d   : > { %v3467_v58 = vpop.f32.mrf.mxu0 }
 0x29e   : > { %v3520_v59 = vpop.f32.mrf.mxu1  ;;  %v3535_v1 = vadd.f32 %v3517_v55, %v1375_v45  ;;  %v3519_v2 = vadd.f32 %v3518_v53, %v3466_v56  ;;  %v3468_v60 = vadd.f32 %v3467_v58, %v3415_v54 }
 0x29f   : > { %v3469_v5 = vpop.f32.mrf.mxu0 }
 0x2a0   : > { %v3522_v6 = vpop.f32.mrf.mxu1  ;;  %3543 = vst [vmem:[%s5365_s1] sm:$0xff] %v3535_v1  ;;  %v3536_v62 = vadd.f32 %v3519_v2, %v1376_v57  ;;  %v3521_v9 = vadd.f32 %v3520_v59, %v3468_v60  ;;  %v3470_v13 = vadd.f32 %v3469_v5, %v3417_v61 }
 0x2a1   : > { %v3473_v8 = vpop.f32.mrf.mxu0 }
 0x2a2   : > { %v3526_v18 = vpop.f32.mrf.mxu1  ;;  %3544 = vst [vmem:[%s5365_s1 + $0x8] sm:$0xff] %v3536_v62  ;;  %v3537_v0 = vadd.f32 %v3521_v9, %v1377_v4  ;;  %v3523_v10 = vadd.f32 %v3522_v6, %v3470_v13  ;;  %v3474_v21 = vadd.f32 %v3473_v8, %v3421_v3 }
 0x2a3   : > { %v3475_v11 = vpop.f32.mrf.mxu0 }
 0x2a4   : > { %v3528_v12 = vpop.f32.mrf.mxu1  ;;  %3545 = vst [vmem:[%s5365_s1 + $0x10] sm:$0xff] %v3537_v0  ;;  %v3538_v16 = vadd.f32 %v3523_v10, %v1378_v17  ;;  %v3527_v19 = vadd.f32 %v3526_v18, %v3474_v21  ;;  %v3476_v24 = vadd.f32 %v3475_v11, %v3423_v14 }
 0x2a5   : > { %v3477_v27 = vpop.f32.mrf.mxu0 }
 0x2a6   : > { %v3530_v31 = vpop.f32.mrf.mxu1  ;;  %3546 = vst [vmem:[%s5365_s1 + $0x18] sm:$0xff] %v3538_v16  ;;  %v3539_v33 = vadd.f32 %v3527_v19, %v1379_v22  ;;  %v3529_v34 = vadd.f32 %v3528_v12, %v3476_v24  ;;  %v3478_v35 = vadd.f32 %v3477_v27, %v3425_v15 }
 0x2a7   : > { %v3479_v37 = vpop.f32.mrf.mxu0 }
 0x2a8   : > { %3547 = vst [vmem:[%s5365_s1 + $0x20] sm:$0xff] %v3539_v33  ;;  %v3540_v23 = vadd.f32 %v3529_v34, %v1380_v26  ;;  %v3531_v39 = vadd.f32 %v3530_v31, %v3478_v35  ;;  %v3480_v40 = vadd.f32 %v3479_v37, %v3427_v32  ;;  %v3532_v28 = vpop.f32.mrf.mxu1 }
 0x2aa   : > { %3548 = vst [vmem:[%s5365_s1 + $0x28] sm:$0xff] %v3540_v23  ;;  %v3541_v41 = vadd.f32 %v3531_v39, %v1381_v36  ;;  %v3533_v29 = vadd.f32 %v3532_v28, %v3480_v40  ;;  %3554 = sbr.rel (%p4060_p5) target bundleno = 706 (0x2c2), region = 101 }
 0x2ac   : > { %3549 = vst [vmem:[%s5365_s1 + $0x30] sm:$0xff] %v3541_v41  ;;  %v3542_v30 = vadd.f32 %v3533_v29, %v1382_v25 }
 0x2ae   : > { %3550 = vst [vmem:[%s5365_s1 + $0x38] sm:$0xff] %v3542_v30 }
 0x2af   : > { %v3565_v38 = vlaneseq  ;;  %v3563_v48 = vld [vmem:[%s1360_s29] sm:$0x3]  ;;  %v3556_v44 = vld [vmem:[%s5365_s1 + $0x8] sm:$0xff]  ;;  %v3557_v52 = vld [vmem:[%s5365_s1 + $0x10] sm:$0xff] }
 0x2b0   : > { %v3555_v50 = vld [vmem:[%s5365_s1] sm:$0xff]  ;;  %v3558_v45 = vld [vmem:[%s5365_s1 + $0x18] sm:$0xff] }
 0x2b1   : > { %v3566_v42 = vshrl.u32 %v3565_v38, 7  ;;  %v3559_v46 = vld [vmem:[%s5365_s1 + $0x20] sm:$0xff]  ;;  %v3560_v55 = vld [vmem:[%s5365_s1 + $0x28] sm:$0xff] }
 0x2b3   : > { %v3567_v43 = vsub.s32 0, %v3566_v42  ;;  %v3571_v51 = vsub.s32 1, %v3566_v42  ;;  %v3561_v56 = vld [vmem:[%s5365_s1 + $0x30] sm:$0xff] }
 0x2b5   : > { %v3568_v53 = vrot.slane %v3563_v48, %v3567_v43  ;;  %v3572_v54 = vrot.slane %v3563_v48, %v3571_v51  ;;  %v3562_v47 = vld [vmem:[%s5365_s1 + $0x38] sm:$0xff] }
 0x2b7   : > { %v3575_v49 = vadd.f32 %v3568_v53, %v3555_v50  ;;  %v3576_v57 = vadd.f32 %v3572_v54, %v3556_v44  ;;  %v3577_v58 = vadd.f32 %v3568_v53, %v3557_v52  ;;  %v3578_v59 = vadd.f32 %v3572_v54, %v3558_v45 }
 0x2b8   : > { %v3579_v61 = vadd.f32 %v3568_v53, %v3559_v46  ;;  %v3580_v1 = vadd.f32 %v3572_v54, %v3560_v55  ;;  %v3581_v2 = vadd.f32 %v3568_v53, %v3561_v56  ;;  %v3582_v60 = vadd.f32 %v3572_v54, %v3562_v47 }
 0x2b9   : > { %vm3583_vm0 = vcmp.gt.f32.partialorder %v3575_v49, 0.0  ;;  %v3591_v63 = vmul.f32 0.2, %v3575_v49  ;;  %vm3584_vm1 = vcmp.gt.f32.partialorder %v3576_v57, 0.0  ;;  %v3592_v3 = vmul.f32 0.2, %v3576_v57 }
 0x2ba   : > { %vm3585_vm2 = vcmp.gt.f32.partialorder %v3577_v58, 0.0  ;;  %v3593_v4 = vmul.f32 0.2, %v3577_v58  ;;  %vm3586_vm3 = vcmp.gt.f32.partialorder %v3578_v59, 0.0  ;;  %v3594_v5 = vmul.f32 0.2, %v3578_v59 }
 0x2bb   : > { %v3599_v6 = vsel %vm3583_vm0, %v3575_v49, %v3591_v63  ;;  %v3600_v7 = vsel %vm3584_vm1, %v3576_v57, %v3592_v3  ;;  %vm3587_vm4 = vcmp.gt.f32.partialorder %v3579_v61, 0.0  ;;  %v3595_v62 = vmul.f32 0.2, %v3579_v61 }
 0x2bc   : > { %3607 = vst [vmem:[%s5365_s1] sm:$0xff] %v3599_v6  ;;  %3608 = vst [vmem:[%s5365_s1 + $0x8] sm:$0xff] %v3600_v7  ;;  %v3601_v9 = vsel %vm3585_vm2, %v3577_v58, %v3593_v4  ;;  %v3602_v13 = vsel %vm3586_vm3, %v3578_v59, %v3594_v5  ;;  %vm3588_vm5 = vcmp.gt.f32.partialorder %v3580_v1, 0.0  ;;  %v3596_v14 = vmul.f32 0.2, %v3580_v1 }
 0x2bd   : > { %3609 = vst [vmem:[%s5365_s1 + $0x10] sm:$0xff] %v3601_v9  ;;  %3610 = vst [vmem:[%s5365_s1 + $0x18] sm:$0xff] %v3602_v13  ;;  %v3603_v17 = vsel %vm3587_vm4, %v3579_v61, %v3595_v62  ;;  %vm3589_vm6 = vcmp.gt.f32.partialorder %v3581_v2, 0.0  ;;  %v3597_v8 = vmul.f32 0.2, %v3581_v2  ;;  %vm3590_vm7 = vcmp.gt.f32.partialorder %v3582_v60, 0.0 }
 0x2be   : > { %3611 = vst [vmem:[%s5365_s1 + $0x20] sm:$0xff] %v3603_v17  ;;  %v3604_v18 = vsel %vm3588_vm5, %v3580_v1, %v3596_v14  ;;  %v3598_v20 = vmul.f32 0.2, %v3582_v60 }
 0x2bf   : > { %3612 = vst [vmem:[%s5365_s1 + $0x28] sm:$0xff] %v3604_v18  ;;  %v3605_v0 = vsel %vm3589_vm6, %v3581_v2, %v3597_v8 }
 0x2c0   : > { %3613 = vst [vmem:[%s5365_s1 + $0x30] sm:$0xff] %v3605_v0  ;;  %v3606_v10 = vsel %vm3590_vm7, %v3582_v60, %v3598_v20 }
 0x2c1   : > { %3614 = vst [vmem:[%s5365_s1 + $0x38] sm:$0xff] %v3606_v10 }
 0x2c2 PF: > { %3621 = sbr.rel (!%p4745_p12) target bundleno = 714 (0x2ca), region = 105  ;;  %s4068_s16 = sshll.u32 (%p4745_p12), %s4616_s19, 4 }
 0x2c3   : > { %v3637_v21 = vld [vmem:[%s5365_s1] sm:$0xff] (%p4745_p12)  ;;  %v3639_v22 = vld [vmem:[%s5365_s1 + $0x8] sm:$0xff] (%p4745_p12)  ;;  %s3624_s5 = scalar_lea.vmem (%p4745_p12), %s5806_s3, %s4068_s16 }
 0x2c4   : > { %v3641_v11 = vld [vmem:[%s5365_s1 + $0x10] sm:$0xff] (%p4745_p12)  ;;  %v3643_v12 = vld [vmem:[%s5365_s1 + $0x18] sm:$0xff] (%p4745_p12)  ;;  %3638 = vst [vmem:[%s3624_s5] sm:$0xff] (%p4745_p12), %v3637_v21  ;;  %3640 = vst [vmem:[%s3624_s5 + $0x8] sm:$0xff] (%p4745_p12), %v3639_v22 }
 0x2c5   : > { %v3645_v15 = vld [vmem:[%s5365_s1 + $0x20] sm:$0xff] (%p4745_p12)  ;;  %3642 = vst [vmem:[%s3624_s5 + $0x20] sm:$0xff] (%p4745_p12), %v3641_v11  ;;  %3644 = vst [vmem:[%s3624_s5 + $0x28] sm:$0xff] (%p4745_p12), %v3643_v12 }
 0x2c6   : > { %v3647_v16 = vld [vmem:[%s5365_s1 + $0x28] sm:$0xff] (%p4745_p12)  ;;  %3646 = vst [vmem:[%s3624_s5 + $0x40] sm:$0xff] (%p4745_p12), %v3645_v15 }
 0x2c7   : > { %3648 = vst [vmem:[%s3624_s5 + $0x48] sm:$0xff] %v3647_v16  ;;  %v3649_v19 = vld [vmem:[%s5365_s1 + $0x30] sm:$0xff] }
 0x2c8   : > { %v3651_v24 = vld [vmem:[%s5365_s1 + $0x38] sm:$0xff]  ;;  %3650 = vst [vmem:[%s3624_s5 + $0x60] sm:$0xff] %v3649_v19 }
 0x2c9   : > { %3652 = vst [vmem:[%s3624_s5 + $0x68] sm:$0xff] %v3651_v24 }
 0x2ca PF: > { %s13_s22 = sadd.s32 1, %s4628_s22   ;;  %s5816_s10 = sld [smem:[#allocation5_spill]] }
 0x2cb   : > { %p10_p6 = scmp.ge.s32.totalorder %s13_s22, 6   ;;  %s5817_s12 = smov %s4592_s13 }
 0x2cc   : > { %s5818_s13 = smov %s4743_s9  ;;  %s5819_s14 = smov %s4600_s15 }
 0x2cd   : > { %s5820_s15 = smov %s4740_s8  ;;  %s5821_s16 = smov %s4608_s17 }
 0x2ce   : > { %s5822_s17 = smov %s4726_s30  ;;  %s5823_s18 = smov %s4620_s20 }
 0x2cf   : > { %s5824_s19 = smov %s4624_s21  ;;  %s5825_s20 = smov %s5828_s24 }
 0x2d0   : > { %s5826_s21 = smov %s5816_s10  ;;  %12 = sbr.rel (!%p10_p6) target bundleno = 9 (0x9), region = 170 }

// kernel: discriminator_forward.5
= control target key start
LH: loop header
LB: loop body
LE: loop exit
PB: predicated region body
PF: predicated region fallthrough
CT: control target
= control target key end

     0   :  { %s4181_s12 = smov 0   ;;  %s4183_s13 = smov 0   ;;  %s5119_s0 = inlined_call_operand.vmem [shape: bf16[8,8192], index: 0, kind: input, shape index: {}]   ;;  %s5120_s1 = inlined_call_operand.vmem [shape: bf16[8192,1024], index: 1, kind: input, shape index: {}]   ;;  %s5121_s2 = inlined_call_operand.vmem [shape: f32[1,1024], index: 2, kind: input, shape index: {}]   ;;  %s5122_s3 = inlined_call_operand.vmem [shape: f32[8,1024], index: 3, kind: output, shape index: {}]  }
   0x1   :  { %s4185_s14 = smov 0   ;;  %s4187_s15 = smov 0  }
   0x2   :  { %s4189_s16 = smov 0   ;;  %s4191_s17 = smov 0  }
   0x3   :  { %s4193_s18 = smov 0  }
   0x4 LB: > { %s22_s19 = sadd.s32 1, %s4150_s16  ;;  %s25_s20 = sadd.s32 1, %s4154_s17  ;;  %s4158_s18 = sphi %s4193_s18, %s13_s18   ;;  %s4154_s17 = sphi %s4191_s17, %s5128_s17   ;;  %s4150_s16 = sphi %s4189_s16, %s5127_s16   ;;  %s4146_s15 = sphi %s4187_s15, %s5126_s15   ;;  %s4142_s14 = sphi %s4185_s14, %s5125_s14   ;;  %s4138_s13 = sphi %s4183_s13, %s5124_s13   ;;  %s4134_s12 = sphi %s4181_s12, %s5123_s12  }
   0x5   : > { %p23_p0 = scmp.ge.s32.totalorder %s22_s19, 4  ;;  %p67_p1 = scmp.ne.s32.totalorder %s4138_s13, %s4134_s12 }
   0x6   : > { %p68_p2 = scmp.eq.s32.totalorder %s4158_s18, 0  ;;  %s60_s24 = sadd.s32 1, %s4138_s13 }
   0x7   : > { %s5130_s19 = smov (%p23_p0, %s22_s19), 0  ;;  %s5132_s20 = smov (!%p23_p0, %s25_s20), %s4154_s17 }
   0x8   : > { %p69_p3 = por %p68_p2, %p67_p1  ;;  %p27_p4 = scmp.ge.s32.totalorder %s5132_s20, 4 }
   0x9   : > { %s55_s21 = ssub.s32 %s4150_s16, %s5130_s19  ;;  %p3357_p6 = scmp.ge.s32.totalorder %s4158_s18, 16 }
   0xa   : > { %s5134_s20 = smov (%p27_p4, %s5132_s20), 0 }
   0xb   : > { %s56_s22 = ssub.s32 %s4154_s17, %s5134_s20  ;;  %145 = sbr.rel (%p3357_p6) target bundleno = 279 (0x117), region = 16 }
   0xc   : > { %s57_s23 = sor.u32 %s56_s22, %s55_s21 }
   0xd   : > { %p58_p5 = scmp.eq.s32.totalorder %s57_s23, 0 }
   0xf   : > { %s4232_s25 = scalar_select %p58_p5, %s4138_s13, %s60_s24  }
  0x10   : > { %157 = sbr.rel (!%p69_p3) target bundleno = 279 (0x117), region = 24  ;;  %s159_s26 = sand.u32 (%p69_p3), 1, %s4138_s13  }
  0x11   : > { %s3360_s27 = sshll.u32 (%p69_p3), %s4154_s17, 1  ;;  %s3358_s28 = sshll.u32 (%p69_p3), %s159_s26, 11 }
  0x12   : > { %s3646_s29 = sshll.u32 (%p69_p3), %s4150_s16, 11  ;;  %s4246_s8 = scalar_lea.vmem (%p69_p3), [#allocation2], %s3358_s28 }
  0x13   : > { %s165_s30 = sadd.s32 (%p69_p3), %s3646_s29, %s3360_s27 }
  0x14   : > { %s3362_s4 = sshll.u32 (%p69_p3), %s165_s30, 2 }
  0x15   : > { %s4241_s7 = scalar_lea.vmem %s5120_s1, %s3362_s4 }
  0x16   : > { %v706_v0 = vld [vmem:[%s4241_s7] sm:$0xff] }
  0x17   : > { %v708_v1 = vld [vmem:[%s4241_s7 + $0x20] sm:$0xff]  ;;  %707 = vst [vmem:[%s4246_s8] sm:$0xff] %v706_v0 }
  0x18   : > { %v710_v2 = vld [vmem:[%s4241_s7 + $0x40] sm:$0xff]  ;;  %709 = vst [vmem:[%s4246_s8 + $0x8] sm:$0xff] %v708_v1 }
  0x19   : > { %711 = vst [vmem:[%s4246_s8 + $0x10] sm:$0xff] %v710_v2  ;;  %v712_v3 = vld [vmem:[%s4241_s7 + $0x60] sm:$0xff] }
  0x1a   : > { %v714_v4 = vld [vmem:[%s4241_s7 + $0x80] sm:$0xff]  ;;  %713 = vst [vmem:[%s4246_s8 + $0x18] sm:$0xff] %v712_v3 }
  0x1b   : > { %v716_v5 = vld [vmem:[%s4241_s7 + $0xa0] sm:$0xff]  ;;  %715 = vst [vmem:[%s4246_s8 + $0x20] sm:$0xff] %v714_v4 }
  0x1c   : > { %717 = vst [vmem:[%s4246_s8 + $0x28] sm:$0xff] %v716_v5  ;;  %v718_v6 = vld [vmem:[%s4241_s7 + $0xc0] sm:$0xff] }
  0x1d   : > { %v720_v7 = vld [vmem:[%s4241_s7 + $0xe0] sm:$0xff]  ;;  %719 = vst [vmem:[%s4246_s8 + $0x30] sm:$0xff] %v718_v6 }
  0x1e   : > { %v722_v8 = vld [vmem:[%s4241_s7 + $0x100] sm:$0xff]  ;;  %721 = vst [vmem:[%s4246_s8 + $0x38] sm:$0xff] %v720_v7 }
  0x1f   : > { %723 = vst [vmem:[%s4246_s8 + $0x40] sm:$0xff] %v722_v8  ;;  %v724_v9 = vld [vmem:[%s4241_s7 + $0x120] sm:$0xff] }
  0x20   : > { %v726_v10 = vld [vmem:[%s4241_s7 + $0x140] sm:$0xff]  ;;  %725 = vst [vmem:[%s4246_s8 + $0x48] sm:$0xff] %v724_v9 }
  0x21   : > { %v728_v11 = vld [vmem:[%s4241_s7 + $0x160] sm:$0xff]  ;;  %727 = vst [vmem:[%s4246_s8 + $0x50] sm:$0xff] %v726_v10 }
  0x22   : > { %729 = vst [vmem:[%s4246_s8 + $0x58] sm:$0xff] %v728_v11  ;;  %v730_v12 = vld [vmem:[%s4241_s7 + $0x180] sm:$0xff] }
  0x23   : > { %v732_v13 = vld [vmem:[%s4241_s7 + $0x1a0] sm:$0xff]  ;;  %731 = vst [vmem:[%s4246_s8 + $0x60] sm:$0xff] %v730_v12 }
  0x24   : > { %v734_v14 = vld [vmem:[%s4241_s7 + $0x1c0] sm:$0xff]  ;;  %733 = vst [vmem:[%s4246_s8 + $0x68] sm:$0xff] %v732_v13 }
  0x25   : > { %735 = vst [vmem:[%s4246_s8 + $0x70] sm:$0xff] %v734_v14  ;;  %v736_v15 = vld [vmem:[%s4241_s7 + $0x1e0] sm:$0xff] }
  0x26   : > { %v738_v16 = vld [vmem:[%s4241_s7 + $0x200] sm:$0xff]  ;;  %737 = vst [vmem:[%s4246_s8 + $0x78] sm:$0xff] %v736_v15 }
  0x27   : > { %v740_v17 = vld [vmem:[%s4241_s7 + $0x220] sm:$0xff]  ;;  %739 = vst [vmem:[%s4246_s8 + $0x80] sm:$0xff] %v738_v16 }
  0x28   : > { %741 = vst [vmem:[%s4246_s8 + $0x88] sm:$0xff] %v740_v17  ;;  %v742_v18 = vld [vmem:[%s4241_s7 + $0x240] sm:$0xff] }
  0x29   : > { %v744_v19 = vld [vmem:[%s4241_s7 + $0x260] sm:$0xff]  ;;  %743 = vst [vmem:[%s4246_s8 + $0x90] sm:$0xff] %v742_v18 }
  0x2a   : > { %v746_v20 = vld [vmem:[%s4241_s7 + $0x280] sm:$0xff]  ;;  %745 = vst [vmem:[%s4246_s8 + $0x98] sm:$0xff] %v744_v19 }
  0x2b   : > { %747 = vst [vmem:[%s4246_s8 + $0xa0] sm:$0xff] %v746_v20  ;;  %v748_v21 = vld [vmem:[%s4241_s7 + $0x2a0] sm:$0xff] }
  0x2c   : > { %v750_v22 = vld [vmem:[%s4241_s7 + $0x2c0] sm:$0xff]  ;;  %749 = vst [vmem:[%s4246_s8 + $0xa8] sm:$0xff] %v748_v21 }
  0x2d   : > { %v752_v23 = vld [vmem:[%s4241_s7 + $0x2e0] sm:$0xff]  ;;  %751 = vst [vmem:[%s4246_s8 + $0xb0] sm:$0xff] %v750_v22 }
  0x2e   : > { %753 = vst [vmem:[%s4246_s8 + $0xb8] sm:$0xff] %v752_v23  ;;  %v754_v24 = vld [vmem:[%s4241_s7 + $0x300] sm:$0xff] }
  0x2f   : > { %v756_v25 = vld [vmem:[%s4241_s7 + $0x320] sm:$0xff]  ;;  %755 = vst [vmem:[%s4246_s8 + $0xc0] sm:$0xff] %v754_v24 }
  0x30   : > { %v758_v26 = vld [vmem:[%s4241_s7 + $0x340] sm:$0xff]  ;;  %757 = vst [vmem:[%s4246_s8 + $0xc8] sm:$0xff] %v756_v25 }
  0x31   : > { %759 = vst [vmem:[%s4246_s8 + $0xd0] sm:$0xff] %v758_v26  ;;  %v760_v27 = vld [vmem:[%s4241_s7 + $0x360] sm:$0xff] }
  0x32   : > { %v762_v28 = vld [vmem:[%s4241_s7 + $0x380] sm:$0xff]  ;;  %761 = vst [vmem:[%s4246_s8 + $0xd8] sm:$0xff] %v760_v27 }
  0x33   : > { %v764_v29 = vld [vmem:[%s4241_s7 + $0x3a0] sm:$0xff]  ;;  %763 = vst [vmem:[%s4246_s8 + $0xe0] sm:$0xff] %v762_v28 }
  0x34   : > { %765 = vst [vmem:[%s4246_s8 + $0xe8] sm:$0xff] %v764_v29  ;;  %v766_v30 = vld [vmem:[%s4241_s7 + $0x3c0] sm:$0xff] }
  0x35   : > { %v768_v31 = vld [vmem:[%s4241_s7 + $0x3e0] sm:$0xff]  ;;  %767 = vst [vmem:[%s4246_s8 + $0xf0] sm:$0xff] %v766_v30 }
  0x36   : > { %v770_v32 = vld [vmem:[%s4241_s7 + $0x400] sm:$0xff]  ;;  %769 = vst [vmem:[%s4246_s8 + $0xf8] sm:$0xff] %v768_v31 }
  0x37   : > { %771 = vst [vmem:[%s4246_s8 + $0x100] sm:$0xff] %v770_v32  ;;  %v772_v33 = vld [vmem:[%s4241_s7 + $0x420] sm:$0xff] }
  0x38   : > { %v774_v34 = vld [vmem:[%s4241_s7 + $0x440] sm:$0xff]  ;;  %773 = vst [vmem:[%s4246_s8 + $0x108] sm:$0xff] %v772_v33 }
  0x39   : > { %v776_v35 = vld [vmem:[%s4241_s7 + $0x460] sm:$0xff]  ;;  %775 = vst [vmem:[%s4246_s8 + $0x110] sm:$0xff] %v774_v34 }
  0x3a   : > { %777 = vst [vmem:[%s4246_s8 + $0x118] sm:$0xff] %v776_v35  ;;  %v778_v36 = vld [vmem:[%s4241_s7 + $0x480] sm:$0xff] }
  0x3b   : > { %v780_v37 = vld [vmem:[%s4241_s7 + $0x4a0] sm:$0xff]  ;;  %779 = vst [vmem:[%s4246_s8 + $0x120] sm:$0xff] %v778_v36 }
  0x3c   : > { %v782_v38 = vld [vmem:[%s4241_s7 + $0x4c0] sm:$0xff]  ;;  %781 = vst [vmem:[%s4246_s8 + $0x128] sm:$0xff] %v780_v37 }
  0x3d   : > { %783 = vst [vmem:[%s4246_s8 + $0x130] sm:$0xff] %v782_v38  ;;  %v784_v39 = vld [vmem:[%s4241_s7 + $0x4e0] sm:$0xff] }
  0x3e   : > { %v786_v40 = vld [vmem:[%s4241_s7 + $0x500] sm:$0xff]  ;;  %785 = vst [vmem:[%s4246_s8 + $0x138] sm:$0xff] %v784_v39 }
  0x3f   : > { %v788_v41 = vld [vmem:[%s4241_s7 + $0x520] sm:$0xff]  ;;  %787 = vst [vmem:[%s4246_s8 + $0x140] sm:$0xff] %v786_v40 }
  0x40   : > { %789 = vst [vmem:[%s4246_s8 + $0x148] sm:$0xff] %v788_v41  ;;  %v790_v42 = vld [vmem:[%s4241_s7 + $0x540] sm:$0xff] }
  0x41   : > { %v792_v43 = vld [vmem:[%s4241_s7 + $0x560] sm:$0xff]  ;;  %791 = vst [vmem:[%s4246_s8 + $0x150] sm:$0xff] %v790_v42 }
  0x42   : > { %v794_v44 = vld [vmem:[%s4241_s7 + $0x580] sm:$0xff]  ;;  %793 = vst [vmem:[%s4246_s8 + $0x158] sm:$0xff] %v792_v43 }
  0x43   : > { %795 = vst [vmem:[%s4246_s8 + $0x160] sm:$0xff] %v794_v44  ;;  %v796_v45 = vld [vmem:[%s4241_s7 + $0x5a0] sm:$0xff] }
  0x44   : > { %v798_v46 = vld [vmem:[%s4241_s7 + $0x5c0] sm:$0xff]  ;;  %797 = vst [vmem:[%s4246_s8 + $0x168] sm:$0xff] %v796_v45 }
  0x45   : > { %v800_v47 = vld [vmem:[%s4241_s7 + $0x5e0] sm:$0xff]  ;;  %799 = vst [vmem:[%s4246_s8 + $0x170] sm:$0xff] %v798_v46 }
  0x46   : > { %801 = vst [vmem:[%s4246_s8 + $0x178] sm:$0xff] %v800_v47  ;;  %v802_v48 = vld [vmem:[%s4241_s7 + $0x600] sm:$0xff] }
  0x47   : > { %v804_v49 = vld [vmem:[%s4241_s7 + $0x620] sm:$0xff]  ;;  %803 = vst [vmem:[%s4246_s8 + $0x180] sm:$0xff] %v802_v48 }
  0x48   : > { %v806_v50 = vld [vmem:[%s4241_s7 + $0x640] sm:$0xff]  ;;  %805 = vst [vmem:[%s4246_s8 + $0x188] sm:$0xff] %v804_v49 }
  0x49   : > { %807 = vst [vmem:[%s4246_s8 + $0x190] sm:$0xff] %v806_v50  ;;  %v808_v51 = vld [vmem:[%s4241_s7 + $0x660] sm:$0xff] }
  0x4a   : > { %v810_v52 = vld [vmem:[%s4241_s7 + $0x680] sm:$0xff]  ;;  %809 = vst [vmem:[%s4246_s8 + $0x198] sm:$0xff] %v808_v51 }
  0x4b   : > { %v812_v53 = vld [vmem:[%s4241_s7 + $0x6a0] sm:$0xff]  ;;  %811 = vst [vmem:[%s4246_s8 + $0x1a0] sm:$0xff] %v810_v52 }
  0x4c   : > { %813 = vst [vmem:[%s4246_s8 + $0x1a8] sm:$0xff] %v812_v53  ;;  %v814_v54 = vld [vmem:[%s4241_s7 + $0x6c0] sm:$0xff] }
  0x4d   : > { %v816_v55 = vld [vmem:[%s4241_s7 + $0x6e0] sm:$0xff]  ;;  %815 = vst [vmem:[%s4246_s8 + $0x1b0] sm:$0xff] %v814_v54 }
  0x4e   : > { %v818_v56 = vld [vmem:[%s4241_s7 + $0x700] sm:$0xff]  ;;  %817 = vst [vmem:[%s4246_s8 + $0x1b8] sm:$0xff] %v816_v55 }
  0x4f   : > { %819 = vst [vmem:[%s4246_s8 + $0x1c0] sm:$0xff] %v818_v56  ;;  %v820_v57 = vld [vmem:[%s4241_s7 + $0x720] sm:$0xff] }
  0x50   : > { %v822_v58 = vld [vmem:[%s4241_s7 + $0x740] sm:$0xff]  ;;  %821 = vst [vmem:[%s4246_s8 + $0x1c8] sm:$0xff] %v820_v57 }
  0x51   : > { %v824_v59 = vld [vmem:[%s4241_s7 + $0x760] sm:$0xff]  ;;  %823 = vst [vmem:[%s4246_s8 + $0x1d0] sm:$0xff] %v822_v58 }
  0x52   : > { %825 = vst [vmem:[%s4246_s8 + $0x1d8] sm:$0xff] %v824_v59  ;;  %v826_v60 = vld [vmem:[%s4241_s7 + $0x780] sm:$0xff] }
  0x53   : > { %v828_v61 = vld [vmem:[%s4241_s7 + $0x7a0] sm:$0xff]  ;;  %827 = vst [vmem:[%s4246_s8 + $0x1e0] sm:$0xff] %v826_v60 }
  0x54   : > { %v830_v62 = vld [vmem:[%s4241_s7 + $0x7c0] sm:$0xff]  ;;  %829 = vst [vmem:[%s4246_s8 + $0x1e8] sm:$0xff] %v828_v61 }
  0x55   : > { %831 = vst [vmem:[%s4246_s8 + $0x1f0] sm:$0xff] %v830_v62  ;;  %v832_v63 = vld [vmem:[%s4241_s7 + $0x7e0] sm:$0xff] }
  0x56   : > { %v834_v0 = vld [vmem:[%s4241_s7 + $0x800] sm:$0xff]  ;;  %833 = vst [vmem:[%s4246_s8 + $0x1f8] sm:$0xff] %v832_v63 }
  0x57   : > { %v836_v1 = vld [vmem:[%s4241_s7 + $0x820] sm:$0xff]  ;;  %835 = vst [vmem:[%s4246_s8 + $0x200] sm:$0xff] %v834_v0 }
  0x58   : > { %837 = vst [vmem:[%s4246_s8 + $0x208] sm:$0xff] %v836_v1  ;;  %v838_v2 = vld [vmem:[%s4241_s7 + $0x840] sm:$0xff] }
  0x59   : > { %v840_v3 = vld [vmem:[%s4241_s7 + $0x860] sm:$0xff]  ;;  %839 = vst [vmem:[%s4246_s8 + $0x210] sm:$0xff] %v838_v2 }
  0x5a   : > { %v842_v4 = vld [vmem:[%s4241_s7 + $0x880] sm:$0xff]  ;;  %841 = vst [vmem:[%s4246_s8 + $0x218] sm:$0xff] %v840_v3 }
  0x5b   : > { %843 = vst [vmem:[%s4246_s8 + $0x220] sm:$0xff] %v842_v4  ;;  %v844_v5 = vld [vmem:[%s4241_s7 + $0x8a0] sm:$0xff] }
  0x5c   : > { %v846_v6 = vld [vmem:[%s4241_s7 + $0x8c0] sm:$0xff]  ;;  %845 = vst [vmem:[%s4246_s8 + $0x228] sm:$0xff] %v844_v5 }
  0x5d   : > { %v848_v7 = vld [vmem:[%s4241_s7 + $0x8e0] sm:$0xff]  ;;  %847 = vst [vmem:[%s4246_s8 + $0x230] sm:$0xff] %v846_v6 }
  0x5e   : > { %849 = vst [vmem:[%s4246_s8 + $0x238] sm:$0xff] %v848_v7  ;;  %v850_v8 = vld [vmem:[%s4241_s7 + $0x900] sm:$0xff] }
  0x5f   : > { %v852_v9 = vld [vmem:[%s4241_s7 + $0x920] sm:$0xff]  ;;  %851 = vst [vmem:[%s4246_s8 + $0x240] sm:$0xff] %v850_v8 }
  0x60   : > { %v854_v10 = vld [vmem:[%s4241_s7 + $0x940] sm:$0xff]  ;;  %853 = vst [vmem:[%s4246_s8 + $0x248] sm:$0xff] %v852_v9 }
  0x61   : > { %855 = vst [vmem:[%s4246_s8 + $0x250] sm:$0xff] %v854_v10  ;;  %v856_v11 = vld [vmem:[%s4241_s7 + $0x960] sm:$0xff] }
  0x62   : > { %v858_v12 = vld [vmem:[%s4241_s7 + $0x980] sm:$0xff]  ;;  %857 = vst [vmem:[%s4246_s8 + $0x258] sm:$0xff] %v856_v11 }
  0x63   : > { %v860_v13 = vld [vmem:[%s4241_s7 + $0x9a0] sm:$0xff]  ;;  %859 = vst [vmem:[%s4246_s8 + $0x260] sm:$0xff] %v858_v12 }
  0x64   : > { %861 = vst [vmem:[%s4246_s8 + $0x268] sm:$0xff] %v860_v13  ;;  %v862_v14 = vld [vmem:[%s4241_s7 + $0x9c0] sm:$0xff] }
  0x65   : > { %v864_v15 = vld [vmem:[%s4241_s7 + $0x9e0] sm:$0xff]  ;;  %863 = vst [vmem:[%s4246_s8 + $0x270] sm:$0xff] %v862_v14 }
  0x66   : > { %v866_v16 = vld [vmem:[%s4241_s7 + $0xa00] sm:$0xff]  ;;  %865 = vst [vmem:[%s4246_s8 + $0x278] sm:$0xff] %v864_v15 }
  0x67   : > { %867 = vst [vmem:[%s4246_s8 + $0x280] sm:$0xff] %v866_v16  ;;  %v868_v17 = vld [vmem:[%s4241_s7 + $0xa20] sm:$0xff] }
  0x68   : > { %v870_v18 = vld [vmem:[%s4241_s7 + $0xa40] sm:$0xff]  ;;  %869 = vst [vmem:[%s4246_s8 + $0x288] sm:$0xff] %v868_v17 }
  0x69   : > { %v872_v19 = vld [vmem:[%s4241_s7 + $0xa60] sm:$0xff]  ;;  %871 = vst [vmem:[%s4246_s8 + $0x290] sm:$0xff] %v870_v18 }
  0x6a   : > { %873 = vst [vmem:[%s4246_s8 + $0x298] sm:$0xff] %v872_v19  ;;  %v874_v20 = vld [vmem:[%s4241_s7 + $0xa80] sm:$0xff] }
  0x6b   : > { %v876_v21 = vld [vmem:[%s4241_s7 + $0xaa0] sm:$0xff]  ;;  %875 = vst [vmem:[%s4246_s8 + $0x2a0] sm:$0xff] %v874_v20 }
  0x6c   : > { %v878_v22 = vld [vmem:[%s4241_s7 + $0xac0] sm:$0xff]  ;;  %877 = vst [vmem:[%s4246_s8 + $0x2a8] sm:$0xff] %v876_v21 }
  0x6d   : > { %879 = vst [vmem:[%s4246_s8 + $0x2b0] sm:$0xff] %v878_v22  ;;  %v880_v23 = vld [vmem:[%s4241_s7 + $0xae0] sm:$0xff] }
  0x6e   : > { %v882_v24 = vld [vmem:[%s4241_s7 + $0xb00] sm:$0xff]  ;;  %881 = vst [vmem:[%s4246_s8 + $0x2b8] sm:$0xff] %v880_v23 }
  0x6f   : > { %v884_v25 = vld [vmem:[%s4241_s7 + $0xb20] sm:$0xff]  ;;  %883 = vst [vmem:[%s4246_s8 + $0x2c0] sm:$0xff] %v882_v24 }
  0x70   : > { %885 = vst [vmem:[%s4246_s8 + $0x2c8] sm:$0xff] %v884_v25  ;;  %v886_v26 = vld [vmem:[%s4241_s7 + $0xb40] sm:$0xff] }
  0x71   : > { %v888_v27 = vld [vmem:[%s4241_s7 + $0xb60] sm:$0xff]  ;;  %887 = vst [vmem:[%s4246_s8 + $0x2d0] sm:$0xff] %v886_v26 }
  0x72   : > { %v890_v28 = vld [vmem:[%s4241_s7 + $0xb80] sm:$0xff]  ;;  %889 = vst [vmem:[%s4246_s8 + $0x2d8] sm:$0xff] %v888_v27 }
  0x73   : > { %891 = vst [vmem:[%s4246_s8 + $0x2e0] sm:$0xff] %v890_v28  ;;  %v892_v29 = vld [vmem:[%s4241_s7 + $0xba0] sm:$0xff] }
  0x74   : > { %v894_v30 = vld [vmem:[%s4241_s7 + $0xbc0] sm:$0xff]  ;;  %893 = vst [vmem:[%s4246_s8 + $0x2e8] sm:$0xff] %v892_v29 }
  0x75   : > { %v896_v31 = vld [vmem:[%s4241_s7 + $0xbe0] sm:$0xff]  ;;  %895 = vst [vmem:[%s4246_s8 + $0x2f0] sm:$0xff] %v894_v30 }
  0x76   : > { %897 = vst [vmem:[%s4246_s8 + $0x2f8] sm:$0xff] %v896_v31  ;;  %v898_v32 = vld [vmem:[%s4241_s7 + $0xc00] sm:$0xff] }
  0x77   : > { %v900_v33 = vld [vmem:[%s4241_s7 + $0xc20] sm:$0xff]  ;;  %899 = vst [vmem:[%s4246_s8 + $0x300] sm:$0xff] %v898_v32 }
  0x78   : > { %v902_v34 = vld [vmem:[%s4241_s7 + $0xc40] sm:$0xff]  ;;  %901 = vst [vmem:[%s4246_s8 + $0x308] sm:$0xff] %v900_v33 }
  0x79   : > { %903 = vst [vmem:[%s4246_s8 + $0x310] sm:$0xff] %v902_v34  ;;  %v904_v35 = vld [vmem:[%s4241_s7 + $0xc60] sm:$0xff] }
  0x7a   : > { %v906_v36 = vld [vmem:[%s4241_s7 + $0xc80] sm:$0xff]  ;;  %905 = vst [vmem:[%s4246_s8 + $0x318] sm:$0xff] %v904_v35 }
  0x7b   : > { %v908_v37 = vld [vmem:[%s4241_s7 + $0xca0] sm:$0xff]  ;;  %907 = vst [vmem:[%s4246_s8 + $0x320] sm:$0xff] %v906_v36 }
  0x7c   : > { %909 = vst [vmem:[%s4246_s8 + $0x328] sm:$0xff] %v908_v37  ;;  %v910_v38 = vld [vmem:[%s4241_s7 + $0xcc0] sm:$0xff] }
  0x7d   : > { %v912_v39 = vld [vmem:[%s4241_s7 + $0xce0] sm:$0xff]  ;;  %911 = vst [vmem:[%s4246_s8 + $0x330] sm:$0xff] %v910_v38 }
  0x7e   : > { %v914_v40 = vld [vmem:[%s4241_s7 + $0xd00] sm:$0xff]  ;;  %913 = vst [vmem:[%s4246_s8 + $0x338] sm:$0xff] %v912_v39 }
  0x7f   : > { %915 = vst [vmem:[%s4246_s8 + $0x340] sm:$0xff] %v914_v40  ;;  %v916_v41 = vld [vmem:[%s4241_s7 + $0xd20] sm:$0xff] }
  0x80   : > { %v918_v42 = vld [vmem:[%s4241_s7 + $0xd40] sm:$0xff]  ;;  %917 = vst [vmem:[%s4246_s8 + $0x348] sm:$0xff] %v916_v41 }
  0x81   : > { %v920_v43 = vld [vmem:[%s4241_s7 + $0xd60] sm:$0xff]  ;;  %919 = vst [vmem:[%s4246_s8 + $0x350] sm:$0xff] %v918_v42 }
  0x82   : > { %921 = vst [vmem:[%s4246_s8 + $0x358] sm:$0xff] %v920_v43  ;;  %v922_v44 = vld [vmem:[%s4241_s7 + $0xd80] sm:$0xff] }
  0x83   : > { %v924_v45 = vld [vmem:[%s4241_s7 + $0xda0] sm:$0xff]  ;;  %923 = vst [vmem:[%s4246_s8 + $0x360] sm:$0xff] %v922_v44 }
  0x84   : > { %v926_v46 = vld [vmem:[%s4241_s7 + $0xdc0] sm:$0xff]  ;;  %925 = vst [vmem:[%s4246_s8 + $0x368] sm:$0xff] %v924_v45 }
  0x85   : > { %927 = vst [vmem:[%s4246_s8 + $0x370] sm:$0xff] %v926_v46  ;;  %v928_v47 = vld [vmem:[%s4241_s7 + $0xde0] sm:$0xff] }
  0x86   : > { %v930_v48 = vld [vmem:[%s4241_s7 + $0xe00] sm:$0xff]  ;;  %929 = vst [vmem:[%s4246_s8 + $0x378] sm:$0xff] %v928_v47 }
  0x87   : > { %v932_v49 = vld [vmem:[%s4241_s7 + $0xe20] sm:$0xff]  ;;  %931 = vst [vmem:[%s4246_s8 + $0x380] sm:$0xff] %v930_v48 }
  0x88   : > { %933 = vst [vmem:[%s4246_s8 + $0x388] sm:$0xff] %v932_v49  ;;  %v934_v50 = vld [vmem:[%s4241_s7 + $0xe40] sm:$0xff] }
  0x89   : > { %v936_v51 = vld [vmem:[%s4241_s7 + $0xe60] sm:$0xff]  ;;  %935 = vst [vmem:[%s4246_s8 + $0x390] sm:$0xff] %v934_v50 }
  0x8a   : > { %v938_v52 = vld [vmem:[%s4241_s7 + $0xe80] sm:$0xff]  ;;  %937 = vst [vmem:[%s4246_s8 + $0x398] sm:$0xff] %v936_v51 }
  0x8b   : > { %939 = vst [vmem:[%s4246_s8 + $0x3a0] sm:$0xff] %v938_v52  ;;  %v940_v53 = vld [vmem:[%s4241_s7 + $0xea0] sm:$0xff] }
  0x8c   : > { %v942_v54 = vld [vmem:[%s4241_s7 + $0xec0] sm:$0xff]  ;;  %941 = vst [vmem:[%s4246_s8 + $0x3a8] sm:$0xff] %v940_v53 }
  0x8d   : > { %v944_v55 = vld [vmem:[%s4241_s7 + $0xee0] sm:$0xff]  ;;  %943 = vst [vmem:[%s4246_s8 + $0x3b0] sm:$0xff] %v942_v54 }
  0x8e   : > { %945 = vst [vmem:[%s4246_s8 + $0x3b8] sm:$0xff] %v944_v55  ;;  %v946_v56 = vld [vmem:[%s4241_s7 + $0xf00] sm:$0xff] }
  0x8f   : > { %v948_v57 = vld [vmem:[%s4241_s7 + $0xf20] sm:$0xff]  ;;  %947 = vst [vmem:[%s4246_s8 + $0x3c0] sm:$0xff] %v946_v56 }
  0x90   : > { %v950_v58 = vld [vmem:[%s4241_s7 + $0xf40] sm:$0xff]  ;;  %949 = vst [vmem:[%s4246_s8 + $0x3c8] sm:$0xff] %v948_v57 }
  0x91   : > { %951 = vst [vmem:[%s4246_s8 + $0x3d0] sm:$0xff] %v950_v58  ;;  %v952_v59 = vld [vmem:[%s4241_s7 + $0xf60] sm:$0xff] }
  0x92   : > { %v954_v60 = vld [vmem:[%s4241_s7 + $0xf80] sm:$0xff]  ;;  %953 = vst [vmem:[%s4246_s8 + $0x3d8] sm:$0xff] %v952_v59 }
  0x93   : > { %v956_v61 = vld [vmem:[%s4241_s7 + $0xfa0] sm:$0xff]  ;;  %955 = vst [vmem:[%s4246_s8 + $0x3e0] sm:$0xff] %v954_v60 }
  0x94   : > { %957 = vst [vmem:[%s4246_s8 + $0x3e8] sm:$0xff] %v956_v61  ;;  %v958_v62 = vld [vmem:[%s4241_s7 + $0xfc0] sm:$0xff] }
  0x95   : > { %v960_v63 = vld [vmem:[%s4241_s7 + $0xfe0] sm:$0xff]  ;;  %959 = vst [vmem:[%s4246_s8 + $0x3f0] sm:$0xff] %v958_v62 }
  0x96   : > { %v962_v0 = vld [vmem:[%s4241_s7 + $0x1000] sm:$0xff]  ;;  %961 = vst [vmem:[%s4246_s8 + $0x3f8] sm:$0xff] %v960_v63 }
  0x97   : > { %963 = vst [vmem:[%s4246_s8 + $0x400] sm:$0xff] %v962_v0  ;;  %v964_v1 = vld [vmem:[%s4241_s7 + $0x1020] sm:$0xff] }
  0x98   : > { %v966_v2 = vld [vmem:[%s4241_s7 + $0x1040] sm:$0xff]  ;;  %965 = vst [vmem:[%s4246_s8 + $0x408] sm:$0xff] %v964_v1 }
  0x99   : > { %v968_v3 = vld [vmem:[%s4241_s7 + $0x1060] sm:$0xff]  ;;  %967 = vst [vmem:[%s4246_s8 + $0x410] sm:$0xff] %v966_v2 }
  0x9a   : > { %969 = vst [vmem:[%s4246_s8 + $0x418] sm:$0xff] %v968_v3  ;;  %v970_v4 = vld [vmem:[%s4241_s7 + $0x1080] sm:$0xff] }
  0x9b   : > { %v972_v5 = vld [vmem:[%s4241_s7 + $0x10a0] sm:$0xff]  ;;  %971 = vst [vmem:[%s4246_s8 + $0x420] sm:$0xff] %v970_v4 }
  0x9c   : > { %v974_v6 = vld [vmem:[%s4241_s7 + $0x10c0] sm:$0xff]  ;;  %973 = vst [vmem:[%s4246_s8 + $0x428] sm:$0xff] %v972_v5 }
  0x9d   : > { %975 = vst [vmem:[%s4246_s8 + $0x430] sm:$0xff] %v974_v6  ;;  %v976_v7 = vld [vmem:[%s4241_s7 + $0x10e0] sm:$0xff] }
  0x9e   : > { %v978_v8 = vld [vmem:[%s4241_s7 + $0x1100] sm:$0xff]  ;;  %977 = vst [vmem:[%s4246_s8 + $0x438] sm:$0xff] %v976_v7 }
  0x9f   : > { %v980_v9 = vld [vmem:[%s4241_s7 + $0x1120] sm:$0xff]  ;;  %979 = vst [vmem:[%s4246_s8 + $0x440] sm:$0xff] %v978_v8 }
  0xa0   : > { %981 = vst [vmem:[%s4246_s8 + $0x448] sm:$0xff] %v980_v9  ;;  %v982_v10 = vld [vmem:[%s4241_s7 + $0x1140] sm:$0xff] }
  0xa1   : > { %v984_v11 = vld [vmem:[%s4241_s7 + $0x1160] sm:$0xff]  ;;  %983 = vst [vmem:[%s4246_s8 + $0x450] sm:$0xff] %v982_v10 }
  0xa2   : > { %v986_v12 = vld [vmem:[%s4241_s7 + $0x1180] sm:$0xff]  ;;  %985 = vst [vmem:[%s4246_s8 + $0x458] sm:$0xff] %v984_v11 }
  0xa3   : > { %987 = vst [vmem:[%s4246_s8 + $0x460] sm:$0xff] %v986_v12  ;;  %v988_v13 = vld [vmem:[%s4241_s7 + $0x11a0] sm:$0xff] }
  0xa4   : > { %v990_v14 = vld [vmem:[%s4241_s7 + $0x11c0] sm:$0xff]  ;;  %989 = vst [vmem:[%s4246_s8 + $0x468] sm:$0xff] %v988_v13 }
  0xa5   : > { %v992_v15 = vld [vmem:[%s4241_s7 + $0x11e0] sm:$0xff]  ;;  %991 = vst [vmem:[%s4246_s8 + $0x470] sm:$0xff] %v990_v14 }
  0xa6   : > { %993 = vst [vmem:[%s4246_s8 + $0x478] sm:$0xff] %v992_v15  ;;  %v994_v16 = vld [vmem:[%s4241_s7 + $0x1200] sm:$0xff] }
  0xa7   : > { %v996_v17 = vld [vmem:[%s4241_s7 + $0x1220] sm:$0xff]  ;;  %995 = vst [vmem:[%s4246_s8 + $0x480] sm:$0xff] %v994_v16 }
  0xa8   : > { %v998_v18 = vld [vmem:[%s4241_s7 + $0x1240] sm:$0xff]  ;;  %997 = vst [vmem:[%s4246_s8 + $0x488] sm:$0xff] %v996_v17 }
  0xa9   : > { %999 = vst [vmem:[%s4246_s8 + $0x490] sm:$0xff] %v998_v18  ;;  %v1000_v19 = vld [vmem:[%s4241_s7 + $0x1260] sm:$0xff] }
  0xaa   : > { %v1002_v20 = vld [vmem:[%s4241_s7 + $0x1280] sm:$0xff]  ;;  %1001 = vst [vmem:[%s4246_s8 + $0x498] sm:$0xff] %v1000_v19 }
  0xab   : > { %v1004_v21 = vld [vmem:[%s4241_s7 + $0x12a0] sm:$0xff]  ;;  %1003 = vst [vmem:[%s4246_s8 + $0x4a0] sm:$0xff] %v1002_v20 }
  0xac   : > { %1005 = vst [vmem:[%s4246_s8 + $0x4a8] sm:$0xff] %v1004_v21  ;;  %v1006_v22 = vld [vmem:[%s4241_s7 + $0x12c0] sm:$0xff] }
  0xad   : > { %v1008_v23 = vld [vmem:[%s4241_s7 + $0x12e0] sm:$0xff]  ;;  %1007 = vst [vmem:[%s4246_s8 + $0x4b0] sm:$0xff] %v1006_v22 }
  0xae   : > { %v1010_v24 = vld [vmem:[%s4241_s7 + $0x1300] sm:$0xff]  ;;  %1009 = vst [vmem:[%s4246_s8 + $0x4b8] sm:$0xff] %v1008_v23 }
  0xaf   : > { %1011 = vst [vmem:[%s4246_s8 + $0x4c0] sm:$0xff] %v1010_v24  ;;  %v1012_v25 = vld [vmem:[%s4241_s7 + $0x1320] sm:$0xff] }
  0xb0   : > { %v1014_v26 = vld [vmem:[%s4241_s7 + $0x1340] sm:$0xff]  ;;  %1013 = vst [vmem:[%s4246_s8 + $0x4c8] sm:$0xff] %v1012_v25 }
  0xb1   : > { %v1016_v27 = vld [vmem:[%s4241_s7 + $0x1360] sm:$0xff]  ;;  %1015 = vst [vmem:[%s4246_s8 + $0x4d0] sm:$0xff] %v1014_v26 }
  0xb2   : > { %1017 = vst [vmem:[%s4246_s8 + $0x4d8] sm:$0xff] %v1016_v27  ;;  %v1018_v28 = vld [vmem:[%s4241_s7 + $0x1380] sm:$0xff] }
  0xb3   : > { %v1020_v29 = vld [vmem:[%s4241_s7 + $0x13a0] sm:$0xff]  ;;  %1019 = vst [vmem:[%s4246_s8 + $0x4e0] sm:$0xff] %v1018_v28 }
  0xb4   : > { %v1022_v30 = vld [vmem:[%s4241_s7 + $0x13c0] sm:$0xff]  ;;  %1021 = vst [vmem:[%s4246_s8 + $0x4e8] sm:$0xff] %v1020_v29 }
  0xb5   : > { %1023 = vst [vmem:[%s4246_s8 + $0x4f0] sm:$0xff] %v1022_v30  ;;  %v1024_v31 = vld [vmem:[%s4241_s7 + $0x13e0] sm:$0xff] }
  0xb6   : > { %v1026_v32 = vld [vmem:[%s4241_s7 + $0x1400] sm:$0xff]  ;;  %1025 = vst [vmem:[%s4246_s8 + $0x4f8] sm:$0xff] %v1024_v31 }
  0xb7   : > { %v1028_v33 = vld [vmem:[%s4241_s7 + $0x1420] sm:$0xff]  ;;  %1027 = vst [vmem:[%s4246_s8 + $0x500] sm:$0xff] %v1026_v32 }
  0xb8   : > { %1029 = vst [vmem:[%s4246_s8 + $0x508] sm:$0xff] %v1028_v33  ;;  %v1030_v34 = vld [vmem:[%s4241_s7 + $0x1440] sm:$0xff] }
  0xb9   : > { %v1032_v35 = vld [vmem:[%s4241_s7 + $0x1460] sm:$0xff]  ;;  %1031 = vst [vmem:[%s4246_s8 + $0x510] sm:$0xff] %v1030_v34 }
  0xba   : > { %v1034_v36 = vld [vmem:[%s4241_s7 + $0x1480] sm:$0xff]  ;;  %1033 = vst [vmem:[%s4246_s8 + $0x518] sm:$0xff] %v1032_v35 }
  0xbb   : > { %1035 = vst [vmem:[%s4246_s8 + $0x520] sm:$0xff] %v1034_v36  ;;  %v1036_v37 = vld [vmem:[%s4241_s7 + $0x14a0] sm:$0xff] }
  0xbc   : > { %v1038_v38 = vld [vmem:[%s4241_s7 + $0x14c0] sm:$0xff]  ;;  %1037 = vst [vmem:[%s4246_s8 + $0x528] sm:$0xff] %v1036_v37 }
  0xbd   : > { %v1040_v39 = vld [vmem:[%s4241_s7 + $0x14e0] sm:$0xff]  ;;  %1039 = vst [vmem:[%s4246_s8 + $0x530] sm:$0xff] %v1038_v38 }
  0xbe   : > { %1041 = vst [vmem:[%s4246_s8 + $0x538] sm:$0xff] %v1040_v39  ;;  %v1042_v40 = vld [vmem:[%s4241_s7 + $0x1500] sm:$0xff] }
  0xbf   : > { %v1044_v41 = vld [vmem:[%s4241_s7 + $0x1520] sm:$0xff]  ;;  %1043 = vst [vmem:[%s4246_s8 + $0x540] sm:$0xff] %v1042_v40 }
  0xc0   : > { %v1046_v42 = vld [vmem:[%s4241_s7 + $0x1540] sm:$0xff]  ;;  %1045 = vst [vmem:[%s4246_s8 + $0x548] sm:$0xff] %v1044_v41 }
  0xc1   : > { %1047 = vst [vmem:[%s4246_s8 + $0x550] sm:$0xff] %v1046_v42  ;;  %v1048_v43 = vld [vmem:[%s4241_s7 + $0x1560] sm:$0xff] }
  0xc2   : > { %v1050_v44 = vld [vmem:[%s4241_s7 + $0x1580] sm:$0xff]  ;;  %1049 = vst [vmem:[%s4246_s8 + $0x558] sm:$0xff] %v1048_v43 }
  0xc3   : > { %v1052_v45 = vld [vmem:[%s4241_s7 + $0x15a0] sm:$0xff]  ;;  %1051 = vst [vmem:[%s4246_s8 + $0x560] sm:$0xff] %v1050_v44 }
  0xc4   : > { %1053 = vst [vmem:[%s4246_s8 + $0x568] sm:$0xff] %v1052_v45  ;;  %v1054_v46 = vld [vmem:[%s4241_s7 + $0x15c0] sm:$0xff] }
  0xc5   : > { %v1056_v47 = vld [vmem:[%s4241_s7 + $0x15e0] sm:$0xff]  ;;  %1055 = vst [vmem:[%s4246_s8 + $0x570] sm:$0xff] %v1054_v46 }
  0xc6   : > { %v1058_v48 = vld [vmem:[%s4241_s7 + $0x1600] sm:$0xff]  ;;  %1057 = vst [vmem:[%s4246_s8 + $0x578] sm:$0xff] %v1056_v47 }
  0xc7   : > { %1059 = vst [vmem:[%s4246_s8 + $0x580] sm:$0xff] %v1058_v48  ;;  %v1060_v49 = vld [vmem:[%s4241_s7 + $0x1620] sm:$0xff] }
  0xc8   : > { %v1062_v50 = vld [vmem:[%s4241_s7 + $0x1640] sm:$0xff]  ;;  %1061 = vst [vmem:[%s4246_s8 + $0x588] sm:$0xff] %v1060_v49 }
  0xc9   : > { %v1064_v51 = vld [vmem:[%s4241_s7 + $0x1660] sm:$0xff]  ;;  %1063 = vst [vmem:[%s4246_s8 + $0x590] sm:$0xff] %v1062_v50 }
  0xca   : > { %1065 = vst [vmem:[%s4246_s8 + $0x598] sm:$0xff] %v1064_v51  ;;  %v1066_v52 = vld [vmem:[%s4241_s7 + $0x1680] sm:$0xff] }
  0xcb   : > { %v1068_v53 = vld [vmem:[%s4241_s7 + $0x16a0] sm:$0xff]  ;;  %1067 = vst [vmem:[%s4246_s8 + $0x5a0] sm:$0xff] %v1066_v52 }
  0xcc   : > { %v1070_v54 = vld [vmem:[%s4241_s7 + $0x16c0] sm:$0xff]  ;;  %1069 = vst [vmem:[%s4246_s8 + $0x5a8] sm:$0xff] %v1068_v53 }
  0xcd   : > { %1071 = vst [vmem:[%s4246_s8 + $0x5b0] sm:$0xff] %v1070_v54  ;;  %v1072_v55 = vld [vmem:[%s4241_s7 + $0x16e0] sm:$0xff] }
  0xce   : > { %v1074_v56 = vld [vmem:[%s4241_s7 + $0x1700] sm:$0xff]  ;;  %1073 = vst [vmem:[%s4246_s8 + $0x5b8] sm:$0xff] %v1072_v55 }
  0xcf   : > { %v1076_v57 = vld [vmem:[%s4241_s7 + $0x1720] sm:$0xff]  ;;  %1075 = vst [vmem:[%s4246_s8 + $0x5c0] sm:$0xff] %v1074_v56 }
  0xd0   : > { %1077 = vst [vmem:[%s4246_s8 + $0x5c8] sm:$0xff] %v1076_v57  ;;  %v1078_v58 = vld [vmem:[%s4241_s7 + $0x1740] sm:$0xff] }
  0xd1   : > { %v1080_v59 = vld [vmem:[%s4241_s7 + $0x1760] sm:$0xff]  ;;  %1079 = vst [vmem:[%s4246_s8 + $0x5d0] sm:$0xff] %v1078_v58 }
  0xd2   : > { %v1082_v60 = vld [vmem:[%s4241_s7 + $0x1780] sm:$0xff]  ;;  %1081 = vst [vmem:[%s4246_s8 + $0x5d8] sm:$0xff] %v1080_v59 }
  0xd3   : > { %1083 = vst [vmem:[%s4246_s8 + $0x5e0] sm:$0xff] %v1082_v60  ;;  %v1084_v61 = vld [vmem:[%s4241_s7 + $0x17a0] sm:$0xff] }
  0xd4   : > { %v1086_v62 = vld [vmem:[%s4241_s7 + $0x17c0] sm:$0xff]  ;;  %1085 = vst [vmem:[%s4246_s8 + $0x5e8] sm:$0xff] %v1084_v61 }
  0xd5   : > { %v1088_v63 = vld [vmem:[%s4241_s7 + $0x17e0] sm:$0xff]  ;;  %1087 = vst [vmem:[%s4246_s8 + $0x5f0] sm:$0xff] %v1086_v62 }
  0xd6   : > { %1089 = vst [vmem:[%s4246_s8 + $0x5f8] sm:$0xff] %v1088_v63  ;;  %v1090_v0 = vld [vmem:[%s4241_s7 + $0x1800] sm:$0xff] }
  0xd7   : > { %v1092_v1 = vld [vmem:[%s4241_s7 + $0x1820] sm:$0xff]  ;;  %1091 = vst [vmem:[%s4246_s8 + $0x600] sm:$0xff] %v1090_v0 }
  0xd8   : > { %v1094_v2 = vld [vmem:[%s4241_s7 + $0x1840] sm:$0xff]  ;;  %1093 = vst [vmem:[%s4246_s8 + $0x608] sm:$0xff] %v1092_v1 }
  0xd9   : > { %1095 = vst [vmem:[%s4246_s8 + $0x610] sm:$0xff] %v1094_v2  ;;  %v1096_v3 = vld [vmem:[%s4241_s7 + $0x1860] sm:$0xff] }
  0xda   : > { %v1098_v4 = vld [vmem:[%s4241_s7 + $0x1880] sm:$0xff]  ;;  %1097 = vst [vmem:[%s4246_s8 + $0x618] sm:$0xff] %v1096_v3 }
  0xdb   : > { %v1100_v5 = vld [vmem:[%s4241_s7 + $0x18a0] sm:$0xff]  ;;  %1099 = vst [vmem:[%s4246_s8 + $0x620] sm:$0xff] %v1098_v4 }
  0xdc   : > { %1101 = vst [vmem:[%s4246_s8 + $0x628] sm:$0xff] %v1100_v5  ;;  %v1102_v6 = vld [vmem:[%s4241_s7 + $0x18c0] sm:$0xff] }
  0xdd   : > { %v1104_v7 = vld [vmem:[%s4241_s7 + $0x18e0] sm:$0xff]  ;;  %1103 = vst [vmem:[%s4246_s8 + $0x630] sm:$0xff] %v1102_v6 }
  0xde   : > { %v1106_v8 = vld [vmem:[%s4241_s7 + $0x1900] sm:$0xff]  ;;  %1105 = vst [vmem:[%s4246_s8 + $0x638] sm:$0xff] %v1104_v7 }
  0xdf   : > { %1107 = vst [vmem:[%s4246_s8 + $0x640] sm:$0xff] %v1106_v8  ;;  %v1108_v9 = vld [vmem:[%s4241_s7 + $0x1920] sm:$0xff] }
  0xe0   : > { %v1110_v10 = vld [vmem:[%s4241_s7 + $0x1940] sm:$0xff]  ;;  %1109 = vst [vmem:[%s4246_s8 + $0x648] sm:$0xff] %v1108_v9 }
  0xe1   : > { %v1112_v11 = vld [vmem:[%s4241_s7 + $0x1960] sm:$0xff]  ;;  %1111 = vst [vmem:[%s4246_s8 + $0x650] sm:$0xff] %v1110_v10 }
  0xe2   : > { %1113 = vst [vmem:[%s4246_s8 + $0x658] sm:$0xff] %v1112_v11  ;;  %v1114_v12 = vld [vmem:[%s4241_s7 + $0x1980] sm:$0xff] }
  0xe3   : > { %v1116_v13 = vld [vmem:[%s4241_s7 + $0x19a0] sm:$0xff]  ;;  %1115 = vst [vmem:[%s4246_s8 + $0x660] sm:$0xff] %v1114_v12 }
  0xe4   : > { %v1118_v14 = vld [vmem:[%s4241_s7 + $0x19c0] sm:$0xff]  ;;  %1117 = vst [vmem:[%s4246_s8 + $0x668] sm:$0xff] %v1116_v13 }
  0xe5   : > { %1119 = vst [vmem:[%s4246_s8 + $0x670] sm:$0xff] %v1118_v14  ;;  %v1120_v15 = vld [vmem:[%s4241_s7 + $0x19e0] sm:$0xff] }
  0xe6   : > { %v1122_v16 = vld [vmem:[%s4241_s7 + $0x1a00] sm:$0xff]  ;;  %1121 = vst [vmem:[%s4246_s8 + $0x678] sm:$0xff] %v1120_v15 }
  0xe7   : > { %v1124_v17 = vld [vmem:[%s4241_s7 + $0x1a20] sm:$0xff]  ;;  %1123 = vst [vmem:[%s4246_s8 + $0x680] sm:$0xff] %v1122_v16 }
  0xe8   : > { %1125 = vst [vmem:[%s4246_s8 + $0x688] sm:$0xff] %v1124_v17  ;;  %v1126_v18 = vld [vmem:[%s4241_s7 + $0x1a40] sm:$0xff] }
  0xe9   : > { %v1128_v19 = vld [vmem:[%s4241_s7 + $0x1a60] sm:$0xff]  ;;  %1127 = vst [vmem:[%s4246_s8 + $0x690] sm:$0xff] %v1126_v18 }
  0xea   : > { %v1130_v20 = vld [vmem:[%s4241_s7 + $0x1a80] sm:$0xff]  ;;  %1129 = vst [vmem:[%s4246_s8 + $0x698] sm:$0xff] %v1128_v19 }
  0xeb   : > { %1131 = vst [vmem:[%s4246_s8 + $0x6a0] sm:$0xff] %v1130_v20  ;;  %v1132_v21 = vld [vmem:[%s4241_s7 + $0x1aa0] sm:$0xff] }
  0xec   : > { %v1134_v22 = vld [vmem:[%s4241_s7 + $0x1ac0] sm:$0xff]  ;;  %1133 = vst [vmem:[%s4246_s8 + $0x6a8] sm:$0xff] %v1132_v21 }
  0xed   : > { %v1136_v23 = vld [vmem:[%s4241_s7 + $0x1ae0] sm:$0xff]  ;;  %1135 = vst [vmem:[%s4246_s8 + $0x6b0] sm:$0xff] %v1134_v22 }
  0xee   : > { %1137 = vst [vmem:[%s4246_s8 + $0x6b8] sm:$0xff] %v1136_v23  ;;  %v1138_v24 = vld [vmem:[%s4241_s7 + $0x1b00] sm:$0xff] }
  0xef   : > { %v1140_v25 = vld [vmem:[%s4241_s7 + $0x1b20] sm:$0xff]  ;;  %1139 = vst [vmem:[%s4246_s8 + $0x6c0] sm:$0xff] %v1138_v24 }
  0xf0   : > { %v1142_v26 = vld [vmem:[%s4241_s7 + $0x1b40] sm:$0xff]  ;;  %1141 = vst [vmem:[%s4246_s8 + $0x6c8] sm:$0xff] %v1140_v25 }
  0xf1   : > { %1143 = vst [vmem:[%s4246_s8 + $0x6d0] sm:$0xff] %v1142_v26  ;;  %v1144_v27 = vld [vmem:[%s4241_s7 + $0x1b60] sm:$0xff] }
  0xf2   : > { %v1146_v28 = vld [vmem:[%s4241_s7 + $0x1b80] sm:$0xff]  ;;  %1145 = vst [vmem:[%s4246_s8 + $0x6d8] sm:$0xff] %v1144_v27 }
  0xf3   : > { %v1148_v29 = vld [vmem:[%s4241_s7 + $0x1ba0] sm:$0xff]  ;;  %1147 = vst [vmem:[%s4246_s8 + $0x6e0] sm:$0xff] %v1146_v28 }
  0xf4   : > { %1149 = vst [vmem:[%s4246_s8 + $0x6e8] sm:$0xff] %v1148_v29  ;;  %v1150_v30 = vld [vmem:[%s4241_s7 + $0x1bc0] sm:$0xff] }
  0xf5   : > { %v1152_v31 = vld [vmem:[%s4241_s7 + $0x1be0] sm:$0xff]  ;;  %1151 = vst [vmem:[%s4246_s8 + $0x6f0] sm:$0xff] %v1150_v30 }
  0xf6   : > { %v1154_v32 = vld [vmem:[%s4241_s7 + $0x1c00] sm:$0xff]  ;;  %1153 = vst [vmem:[%s4246_s8 + $0x6f8] sm:$0xff] %v1152_v31 }
  0xf7   : > { %1155 = vst [vmem:[%s4246_s8 + $0x700] sm:$0xff] %v1154_v32  ;;  %v1156_v33 = vld [vmem:[%s4241_s7 + $0x1c20] sm:$0xff] }
  0xf8   : > { %v1158_v34 = vld [vmem:[%s4241_s7 + $0x1c40] sm:$0xff]  ;;  %1157 = vst [vmem:[%s4246_s8 + $0x708] sm:$0xff] %v1156_v33 }
  0xf9   : > { %v1160_v35 = vld [vmem:[%s4241_s7 + $0x1c60] sm:$0xff]  ;;  %1159 = vst [vmem:[%s4246_s8 + $0x710] sm:$0xff] %v1158_v34 }
  0xfa   : > { %1161 = vst [vmem:[%s4246_s8 + $0x718] sm:$0xff] %v1160_v35  ;;  %v1162_v36 = vld [vmem:[%s4241_s7 + $0x1c80] sm:$0xff] }
  0xfb   : > { %v1164_v37 = vld [vmem:[%s4241_s7 + $0x1ca0] sm:$0xff]  ;;  %1163 = vst [vmem:[%s4246_s8 + $0x720] sm:$0xff] %v1162_v36 }
  0xfc   : > { %v1166_v38 = vld [vmem:[%s4241_s7 + $0x1cc0] sm:$0xff]  ;;  %1165 = vst [vmem:[%s4246_s8 + $0x728] sm:$0xff] %v1164_v37 }
  0xfd   : > { %1167 = vst [vmem:[%s4246_s8 + $0x730] sm:$0xff] %v1166_v38  ;;  %v1168_v39 = vld [vmem:[%s4241_s7 + $0x1ce0] sm:$0xff] }
  0xfe   : > { %v1170_v40 = vld [vmem:[%s4241_s7 + $0x1d00] sm:$0xff]  ;;  %1169 = vst [vmem:[%s4246_s8 + $0x738] sm:$0xff] %v1168_v39 }
  0xff   : > { %v1172_v41 = vld [vmem:[%s4241_s7 + $0x1d20] sm:$0xff]  ;;  %1171 = vst [vmem:[%s4246_s8 + $0x740] sm:$0xff] %v1170_v40 }
 0x100   : > { %1173 = vst [vmem:[%s4246_s8 + $0x748] sm:$0xff] %v1172_v41  ;;  %v1174_v42 = vld [vmem:[%s4241_s7 + $0x1d40] sm:$0xff] }
 0x101   : > { %v1176_v43 = vld [vmem:[%s4241_s7 + $0x1d60] sm:$0xff]  ;;  %1175 = vst [vmem:[%s4246_s8 + $0x750] sm:$0xff] %v1174_v42 }
 0x102   : > { %v1178_v44 = vld [vmem:[%s4241_s7 + $0x1d80] sm:$0xff]  ;;  %1177 = vst [vmem:[%s4246_s8 + $0x758] sm:$0xff] %v1176_v43 }
 0x103   : > { %1179 = vst [vmem:[%s4246_s8 + $0x760] sm:$0xff] %v1178_v44  ;;  %v1180_v45 = vld [vmem:[%s4241_s7 + $0x1da0] sm:$0xff] }
 0x104   : > { %v1182_v46 = vld [vmem:[%s4241_s7 + $0x1dc0] sm:$0xff]  ;;  %1181 = vst [vmem:[%s4246_s8 + $0x768] sm:$0xff] %v1180_v45 }
 0x105   : > { %v1184_v47 = vld [vmem:[%s4241_s7 + $0x1de0] sm:$0xff]  ;;  %1183 = vst [vmem:[%s4246_s8 + $0x770] sm:$0xff] %v1182_v46 }
 0x106   : > { %1185 = vst [vmem:[%s4246_s8 + $0x778] sm:$0xff] %v1184_v47  ;;  %v1186_v48 = vld [vmem:[%s4241_s7 + $0x1e00] sm:$0xff] }
 0x107   : > { %v1188_v49 = vld [vmem:[%s4241_s7 + $0x1e20] sm:$0xff]  ;;  %1187 = vst [vmem:[%s4246_s8 + $0x780] sm:$0xff] %v1186_v48 }
 0x108   : > { %v1190_v50 = vld [vmem:[%s4241_s7 + $0x1e40] sm:$0xff]  ;;  %1189 = vst [vmem:[%s4246_s8 + $0x788] sm:$0xff] %v1188_v49 }
 0x109   : > { %1191 = vst [vmem:[%s4246_s8 + $0x790] sm:$0xff] %v1190_v50  ;;  %v1192_v51 = vld [vmem:[%s4241_s7 + $0x1e60] sm:$0xff] }
 0x10a   : > { %v1194_v52 = vld [vmem:[%s4241_s7 + $0x1e80] sm:$0xff]  ;;  %1193 = vst [vmem:[%s4246_s8 + $0x798] sm:$0xff] %v1192_v51 }
 0x10b   : > { %v1196_v53 = vld [vmem:[%s4241_s7 + $0x1ea0] sm:$0xff]  ;;  %1195 = vst [vmem:[%s4246_s8 + $0x7a0] sm:$0xff] %v1194_v52 }
 0x10c   : > { %1197 = vst [vmem:[%s4246_s8 + $0x7a8] sm:$0xff] %v1196_v53  ;;  %v1198_v54 = vld [vmem:[%s4241_s7 + $0x1ec0] sm:$0xff] }
 0x10d   : > { %v1200_v55 = vld [vmem:[%s4241_s7 + $0x1ee0] sm:$0xff]  ;;  %1199 = vst [vmem:[%s4246_s8 + $0x7b0] sm:$0xff] %v1198_v54 }
 0x10e   : > { %v1202_v56 = vld [vmem:[%s4241_s7 + $0x1f00] sm:$0xff]  ;;  %1201 = vst [vmem:[%s4246_s8 + $0x7b8] sm:$0xff] %v1200_v55 }
 0x10f   : > { %1203 = vst [vmem:[%s4246_s8 + $0x7c0] sm:$0xff] %v1202_v56  ;;  %v1204_v57 = vld [vmem:[%s4241_s7 + $0x1f20] sm:$0xff] }
 0x110   : > { %v1206_v58 = vld [vmem:[%s4241_s7 + $0x1f40] sm:$0xff]  ;;  %1205 = vst [vmem:[%s4246_s8 + $0x7c8] sm:$0xff] %v1204_v57 }
 0x111   : > { %v1208_v59 = vld [vmem:[%s4241_s7 + $0x1f60] sm:$0xff]  ;;  %1207 = vst [vmem:[%s4246_s8 + $0x7d0] sm:$0xff] %v1206_v58 }
 0x112   : > { %1209 = vst [vmem:[%s4246_s8 + $0x7d8] sm:$0xff] %v1208_v59  ;;  %v1210_v60 = vld [vmem:[%s4241_s7 + $0x1f80] sm:$0xff] }
 0x113   : > { %v1212_v61 = vld [vmem:[%s4241_s7 + $0x1fa0] sm:$0xff]  ;;  %1211 = vst [vmem:[%s4246_s8 + $0x7e0] sm:$0xff] %v1210_v60 }
 0x114   : > { %v1214_v62 = vld [vmem:[%s4241_s7 + $0x1fc0] sm:$0xff]  ;;  %1213 = vst [vmem:[%s4246_s8 + $0x7e8] sm:$0xff] %v1212_v61 }
 0x115   : > { %1215 = vst [vmem:[%s4246_s8 + $0x7f0] sm:$0xff] %v1214_v62  ;;  %v1216_v63 = vld [vmem:[%s4241_s7 + $0x1fe0] sm:$0xff] }
 0x116   : > { %1217 = vst [vmem:[%s4246_s8 + $0x7f8] sm:$0xff] %v1216_v63 }
 0x117 PF: > { %p3363_p7 = scmp.ge.s32.totalorder %s4158_s18, 1  ;;  %p1230_p8 = scmp.lt.s32.totalorder %s4158_s18, 17 }
 0x119   : > { %p1231_p9 = pnand %p3363_p7, %p1230_p8 }
 0x11a   : > { %s1237_s9 = sand.u32 (!%p1231_p9), 1, %s4134_s12   ;;  %s3365_s10 = sshll.u32 (!%p1231_p9), %s4142_s14, 4 }
 0x11b   : > { %1234 = sbr.rel (%p1231_p9) target bundleno = 771 (0x303), region = 66  ;;  %s3364_s11 = sshll.u32 (!%p1231_p9), %s1237_s9, 11 }
 0x11c   : > { %p1270_p10 = scmp.lt.s32.totalorder (!%p1231_p9), %s3365_s10, 63  ;;  %s3367_s21 = sshll.u32 (!%p1231_p9), %s4146_s15, 1 }
 0x11d   : > { %p1278_p11 = scmp.lt.s32.totalorder (!%p1231_p9), %s3367_s21, 7  ;;  %s4779_s5 = scalar_lea.vmem (!%p1231_p9), [#allocation2], %s3364_s11 }
 0x11e   : > { %p3370_p12 = scmp.ne.s32.totalorder (!%p1231_p9), %s4142_s14, 0 }
 0x120   : > { %s5136_s10 = smov (!%p1270_p10, %s3365_s10), 63  ;;  %s5138_s21 = smov (!%p1278_p11, %s3367_s21), 7 }
 0x121   : > { %s3366_s22 = sshll.u32 %s5136_s10, 2  ;;  %s1280_s12 = scalar_lea.vmem %s5121_s2, %s5138_s21 }
 0x122   : > { %s4765_s26 = scalar_lea.vmem %s5119_s0, %s3366_s22  ;;  %s3369_s29 = sshll.u32 %s5138_s21, 3 }
 0x123   : > { %s4777_s15 = scalar_lea.vmem %s5122_s3, %s3369_s29  ;;  %1291 = sbr.rel (%p3370_p12) target bundleno = 298 (0x12a), region = 74 }
 0x128   : > { %v4160_v0 = vmov 0.0  }
 0x129   : > { %1292 = vst [vmem:[%s4777_s15] sm:$0xff] %v4160_v0  ;;  %1293 = vst [vmem:[%s4777_s15 + $0x8] sm:$0xff] %v4160_v0 }
 0x12a PF: > { %v3704_v1 = vld [vmem:[%s4779_s5 + $0x74] ss:$8 sps:$4 sm:$0xff]   ;;  %v3708_v3 = vld [vmem:[%s4779_s5 + $0x70] ss:$8 sps:$4 sm:$0xff]   ;;  %v3710_v5 = vld [vmem:[%s4779_s5 + $0x64] ss:$8 sps:$4 sm:$0xff]  }
 0x12b   : > { %v3706_v2 = vld [vmem:[%s4779_s5 + $0x174] ss:$8 sps:$4 sm:$0xff]   ;;  %2896 = vmatprep.subr.bf16.mxu0 %v3704_v1  ;;  %v3709_v4 = vld [vmem:[%s4779_s5 + $0x170] ss:$8 sps:$4 sm:$0xff]   ;;  %v3712_v6 = vld [vmem:[%s4779_s5 + $0x164] ss:$8 sps:$4 sm:$0xff]  }
 0x12c   : > { %2937 = vmatprep.subr.bf16.mxu1 %v3706_v2  ;;  %2897 = vmatpush1.bf16.msra.mxu0 %v3708_v3  ;;  %v3714_v7 = vld [vmem:[%s4779_s5 + $0x60] ss:$8 sps:$4 sm:$0xff]   ;;  %v3716_v9 = vld [vmem:[%s4779_s5 + $0x54] ss:$8 sps:$4 sm:$0xff]   ;;  %v3720_v11 = vld [vmem:[%s4779_s5 + $0x50] ss:$8 sps:$4 sm:$0xff]  }
 0x12d   : > { %2938 = vmatpush1.bf16.msra.mxu1 %v3709_v4  ;;  %2898 = vmatprep.subr.bf16.mxu0 %v3710_v5  ;;  %v3715_v8 = vld [vmem:[%s4779_s5 + $0x160] ss:$8 sps:$4 sm:$0xff]   ;;  %v3718_v10 = vld [vmem:[%s4779_s5 + $0x154] ss:$8 sps:$4 sm:$0xff]   ;;  %v3721_v12 = vld [vmem:[%s4779_s5 + $0x150] ss:$8 sps:$4 sm:$0xff]  }
 0x12e   : > { %2939 = vmatprep.subr.bf16.mxu1 %v3712_v6  ;;  %v3722_v13 = vld [vmem:[%s4779_s5 + $0x44] ss:$8 sps:$4 sm:$0xff]   ;;  %v3726_v15 = vld [vmem:[%s4779_s5 + $0x40] ss:$8 sps:$4 sm:$0xff]   ;;  %v3728_v17 = vld [vmem:[%s4779_s5 + $0x34] ss:$8 sps:$4 sm:$0xff]  }
 0x12f   : > { %v3724_v14 = vld [vmem:[%s4779_s5 + $0x144] ss:$8 sps:$4 sm:$0xff]   ;;  %v3727_v16 = vld [vmem:[%s4779_s5 + $0x140] ss:$8 sps:$4 sm:$0xff]   ;;  %v3730_v18 = vld [vmem:[%s4779_s5 + $0x134] ss:$8 sps:$4 sm:$0xff]  }
 0x130   : > { %2899 = vmatpush1.bf16.msra.mxu0 %v3714_v7  ;;  %v3732_v19 = vld [vmem:[%s4779_s5 + $0x30] ss:$8 sps:$4 sm:$0xff]   ;;  %v3734_v21 = vld [vmem:[%s4779_s5 + $0x24] ss:$8 sps:$4 sm:$0xff]   ;;  %v3738_v23 = vld [vmem:[%s4779_s5 + $0x20] ss:$8 sps:$4 sm:$0xff]  }
 0x131   : > { %2940 = vmatpush1.bf16.msra.mxu1 %v3715_v8  ;;  %2900 = vmatprep.subr.bf16.mxu0 %v3716_v9  ;;  %v3733_v20 = vld [vmem:[%s4779_s5 + $0x130] ss:$8 sps:$4 sm:$0xff]   ;;  %v3736_v22 = vld [vmem:[%s4779_s5 + $0x124] ss:$8 sps:$4 sm:$0xff]   ;;  %v3739_v24 = vld [vmem:[%s4779_s5 + $0x120] ss:$8 sps:$4 sm:$0xff]  }
 0x132   : > { %2941 = vmatprep.subr.bf16.mxu1 %v3718_v10  ;;  %v3740_v25 = vld [vmem:[%s4779_s5 + $0x14] ss:$8 sps:$4 sm:$0xff]   ;;  %v3744_v27 = vld [vmem:[%s4779_s5 + $0x10] ss:$8 sps:$4 sm:$0xff]   ;;  %v3746_v29 = vld [vmem:[%s4779_s5 + $0x4] ss:$8 sps:$4 sm:$0xff]  }
 0x133   : > { %v3742_v26 = vld [vmem:[%s4779_s5 + $0x114] ss:$8 sps:$4 sm:$0xff]   ;;  %v3745_v28 = vld [vmem:[%s4779_s5 + $0x110] ss:$8 sps:$4 sm:$0xff]   ;;  %v3748_v30 = vld [vmem:[%s4779_s5 + $0x104] ss:$8 sps:$4 sm:$0xff]  }
 0x134   : > { %2901 = vmatpush1.bf16.msra.mxu0 %v3720_v11  ;;  %v3750_v31 = vld [vmem:[%s4779_s5] ss:$8 sps:$4 sm:$0xff]   ;;  %v3752_v33 = vld [vmem:[%s4779_s5 + $0xf4] ss:$8 sps:$4 sm:$0xff]   ;;  %v3756_v35 = vld [vmem:[%s4779_s5 + $0xf0] ss:$8 sps:$4 sm:$0xff]  }
 0x135   : > { %2942 = vmatpush1.bf16.msra.mxu1 %v3721_v12  ;;  %2902 = vmatprep.subr.bf16.mxu0 %v3722_v13  ;;  %v3751_v32 = vld [vmem:[%s4779_s5 + $0x100] ss:$8 sps:$4 sm:$0xff]   ;;  %v3754_v34 = vld [vmem:[%s4779_s5 + $0x1f4] ss:$8 sps:$4 sm:$0xff]   ;;  %v3757_v36 = vld [vmem:[%s4779_s5 + $0x1f0] ss:$8 sps:$4 sm:$0xff]  }
 0x136   : > { %2943 = vmatprep.subr.bf16.mxu1 %v3724_v14  ;;  %v3758_v37 = vld [vmem:[%s4779_s5 + $0xe4] ss:$8 sps:$4 sm:$0xff]   ;;  %v3762_v39 = vld [vmem:[%s4779_s5 + $0xe0] ss:$8 sps:$4 sm:$0xff]   ;;  %v3764_v41 = vld [vmem:[%s4779_s5 + $0xd4] ss:$8 sps:$4 sm:$0xff]  }
 0x137   : > { %v3760_v38 = vld [vmem:[%s4779_s5 + $0x1e4] ss:$8 sps:$4 sm:$0xff]   ;;  %v3763_v40 = vld [vmem:[%s4779_s5 + $0x1e0] ss:$8 sps:$4 sm:$0xff]   ;;  %v3766_v42 = vld [vmem:[%s4779_s5 + $0x1d4] ss:$8 sps:$4 sm:$0xff]  }
 0x138   : > { %2903 = vmatpush1.bf16.msra.mxu0 %v3726_v15  ;;  %v3768_v43 = vld [vmem:[%s4779_s5 + $0xd0] ss:$8 sps:$4 sm:$0xff]   ;;  %v3770_v45 = vld [vmem:[%s4779_s5 + $0xc4] ss:$8 sps:$4 sm:$0xff]   ;;  %v3774_v50 = vld [vmem:[%s4779_s5 + $0xc0] ss:$8 sps:$4 sm:$0xff]  }
 0x139   : > { %2944 = vmatpush1.bf16.msra.mxu1 %v3727_v16  ;;  %2904 = vmatprep.subr.bf16.mxu0 %v3728_v17  ;;  %v3769_v44 = vld [vmem:[%s4779_s5 + $0x1d0] ss:$8 sps:$4 sm:$0xff]   ;;  %v3772_v46 = vld [vmem:[%s4779_s5 + $0x1c4] ss:$8 sps:$4 sm:$0xff]   ;;  %v3775_v51 = vld [vmem:[%s4779_s5 + $0x1c0] ss:$8 sps:$4 sm:$0xff]  }
 0x13a   : > { %2945 = vmatprep.subr.bf16.mxu1 %v3730_v18  ;;  %v1296_v47 = vld [vmem:[%s4765_s26] sm:$0xff]  ;;  %v1297_v49 = vld [vmem:[%s4765_s26 + $0x8] sm:$0xff]  ;;  %v3776_v53 = vld [vmem:[%s4779_s5 + $0xb4] ss:$8 sps:$4 sm:$0xff]   ;;  %p3643_p13 = scmp.ne.s32.totalorder %s4142_s14, 3 }
 0x13b   : > { %v3372_v48 = vcombine.high %v1296_v47, %v1296_v47  ;;  %v3374_v52 = vcombine.high %v1297_v49, %v1297_v49  ;;  %v3778_v54 = vld [vmem:[%s4779_s5 + $0x1b4] ss:$8 sps:$4 sm:$0xff]   ;;  %v3780_v55 = vld [vmem:[%s4779_s5 + $0xb0] ss:$8 sps:$4 sm:$0xff]   ;;  %v3782_v57 = vld [vmem:[%s4779_s5 + $0xa4] ss:$8 sps:$4 sm:$0xff]   ;;  %v3371_v7 = vcombine.low %v1296_v47, %v1296_v47  ;;  %v3373_v8 = vcombine.low %v1297_v49, %v1297_v49 }
 0x13c   : > { %2905 = vmatpush1.bf16.msra.mxu0 %v3732_v19  ;;  %v3781_v56 = vld [vmem:[%s4779_s5 + $0x1b0] ss:$8 sps:$4 sm:$0xff]   ;;  %v3784_v58 = vld [vmem:[%s4779_s5 + $0x1a4] ss:$8 sps:$4 sm:$0xff]   ;;  %v3786_v59 = vld [vmem:[%s4779_s5 + $0xa0] ss:$8 sps:$4 sm:$0xff]  }
 0x13d   : > { %2946 = vmatpush1.bf16.msra.mxu1 %v3733_v20  ;;  %2906 = vmatprep.subr.bf16.mxu0 %v3734_v21  ;;  %v3787_v60 = vld [vmem:[%s4779_s5 + $0x1a0] ss:$8 sps:$4 sm:$0xff]   ;;  %v3788_v61 = vld [vmem:[%s4779_s5 + $0x94] ss:$8 sps:$4 sm:$0xff]   ;;  %v3792_v63 = vld [vmem:[%s4779_s5 + $0x90] ss:$8 sps:$4 sm:$0xff]  }
 0x13e   : > { %2947 = vmatprep.subr.bf16.mxu1 %v3736_v22  ;;  %2928 = vmatprep.mubr.bf16.mxu0 %v3372_v48  ;;  %v3790_v62 = vld [vmem:[%s4779_s5 + $0x194] ss:$8 sps:$4 sm:$0xff]   ;;  %v3793_v0 = vld [vmem:[%s4779_s5 + $0x190] ss:$8 sps:$4 sm:$0xff]   ;;  %v3794_v1 = vld [vmem:[%s4779_s5 + $0x84] ss:$8 sps:$4 sm:$0xff]  }
 0x13f   : > { %2969 = vmatprep.mubr.bf16.mxu1 %v3374_v52  ;;  %v3796_v2 = vld [vmem:[%s4779_s5 + $0x184] ss:$8 sps:$4 sm:$0xff]   ;;  %v3798_v3 = vld [vmem:[%s4779_s5 + $0x80] ss:$8 sps:$4 sm:$0xff]   ;;  %v3806_v5 = vld [vmem:[%s4779_s5 + $0x274] ss:$8 sps:$4 sm:$0xff]  }
 0x140   : > { %2907 = vmatpush1.bf16.msra.mxu0 %v3738_v23  ;;  %v3799_v4 = vld [vmem:[%s4779_s5 + $0x180] ss:$8 sps:$4 sm:$0xff]   ;;  %v3809_v6 = vld [vmem:[%s4779_s5 + $0x374] ss:$8 sps:$4 sm:$0xff]   ;;  %v3804_v9 = vld [vmem:[%s4779_s5 + $0x270] ss:$8 sps:$4 sm:$0xff]  }
 0x141   : > { %2948 = vmatpush1.bf16.msra.mxu1 %v3739_v24  ;;  %2908 = vmatprep.subr.bf16.mxu0 %v3740_v25  ;;  %v3807_v10 = vld [vmem:[%s4779_s5 + $0x370] ss:$8 sps:$4 sm:$0xff]   ;;  %v3812_v11 = vld [vmem:[%s4779_s5 + $0x264] ss:$8 sps:$4 sm:$0xff]   ;;  %v3810_v13 = vld [vmem:[%s4779_s5 + $0x260] ss:$8 sps:$4 sm:$0xff]  }
 0x142   : > { %2949 = vmatprep.subr.bf16.mxu1 %v3742_v26  ;;  %v3815_v12 = vld [vmem:[%s4779_s5 + $0x364] ss:$8 sps:$4 sm:$0xff]   ;;  %v3813_v14 = vld [vmem:[%s4779_s5 + $0x360] ss:$8 sps:$4 sm:$0xff]   ;;  %v3818_v15 = vld [vmem:[%s4779_s5 + $0x254] ss:$8 sps:$4 sm:$0xff]  }
 0x143   : > { %v3821_v16 = vld [vmem:[%s4779_s5 + $0x354] ss:$8 sps:$4 sm:$0xff]   ;;  %v3816_v17 = vld [vmem:[%s4779_s5 + $0x250] ss:$8 sps:$4 sm:$0xff]   ;;  %v3824_v19 = vld [vmem:[%s4779_s5 + $0x244] ss:$8 sps:$4 sm:$0xff]  }
 0x144   : > { %2909 = vmatpush1.bf16.msra.mxu0 %v3744_v27  ;;  %v3819_v18 = vld [vmem:[%s4779_s5 + $0x350] ss:$8 sps:$4 sm:$0xff]   ;;  %v3827_v20 = vld [vmem:[%s4779_s5 + $0x344] ss:$8 sps:$4 sm:$0xff]   ;;  %v3822_v21 = vld [vmem:[%s4779_s5 + $0x240] ss:$8 sps:$4 sm:$0xff]  }
 0x145   : > { %2950 = vmatpush1.bf16.msra.mxu1 %v3745_v28  ;;  %2910 = vmatprep.subr.bf16.mxu0 %v3746_v29  ;;  %v3825_v22 = vld [vmem:[%s4779_s5 + $0x340] ss:$8 sps:$4 sm:$0xff]   ;;  %v3830_v23 = vld [vmem:[%s4779_s5 + $0x234] ss:$8 sps:$4 sm:$0xff]   ;;  %v3828_v25 = vld [vmem:[%s4779_s5 + $0x230] ss:$8 sps:$4 sm:$0xff]  }
 0x146   : > { %2951 = vmatprep.subr.bf16.mxu1 %v3748_v30  ;;  %v3833_v24 = vld [vmem:[%s4779_s5 + $0x334] ss:$8 sps:$4 sm:$0xff]   ;;  %v3831_v26 = vld [vmem:[%s4779_s5 + $0x330] ss:$8 sps:$4 sm:$0xff]   ;;  %v3836_v27 = vld [vmem:[%s4779_s5 + $0x224] ss:$8 sps:$4 sm:$0xff]  }
 0x147   : > { %v3839_v28 = vld [vmem:[%s4779_s5 + $0x324] ss:$8 sps:$4 sm:$0xff]   ;;  %v3834_v29 = vld [vmem:[%s4779_s5 + $0x220] ss:$8 sps:$4 sm:$0xff]   ;;  %v3869_v52 = vld [vmem:[%s4779_s5 + $0x3d4] ss:$8 sps:$4 sm:$0xff]  }
 0x148   : > { %2911 = vmatpush1.bf16.msra.mxu0 %v3750_v31  ;;  %v3837_v30 = vld [vmem:[%s4779_s5 + $0x320] ss:$8 sps:$4 sm:$0xff]   ;;  %v3842_v31 = vld [vmem:[%s4779_s5 + $0x214] ss:$8 sps:$4 sm:$0xff]   ;;  %v3860_v47 = vld [vmem:[%s4779_s5 + $0x2e4] ss:$8 sps:$4 sm:$0xff]  }
 0x149   : > { %2952 = vmatpush1.bf16.msra.mxu1 %v3751_v32  ;;  %2912 = vmatprep.subr.bf16.mxu0 %v3752_v33  ;;  %v3845_v32 = vld [vmem:[%s4779_s5 + $0x314] ss:$8 sps:$4 sm:$0xff]   ;;  %v3863_v48 = vld [vmem:[%s4779_s5 + $0x3e4] ss:$8 sps:$4 sm:$0xff]   ;;  %v3858_v49 = vld [vmem:[%s4779_s5 + $0x2e0] ss:$8 sps:$4 sm:$0xff]  }
 0x14a   : > { %2953 = vmatprep.subr.bf16.mxu1 %v3754_v34  ;;  %v4877_v33 = vld [vmem:[%s4765_s26 + $0x10] sm:$0xff]  ;;  %v4880_v34 = vld [vmem:[%s4765_s26 + $0x18] sm:$0xff] }
 0x14c   : > { %2913 = vmatpush2.bf16.msra.mxu0 %v3756_v35  ;;  %v3840_v35 = vld [vmem:[%s4779_s5 + $0x210] ss:$8 sps:$4 sm:$0xff]  }
 0x14d   : > { %2954 = vmatpush2.bf16.msra.mxu1 %v3757_v36  ;;  %2914 = vmatprep.subr.bf16.mxu0 %v3758_v37  ;;  %v3843_v36 = vld [vmem:[%s4779_s5 + $0x310] ss:$8 sps:$4 sm:$0xff]   ;;  %v3376_v37 = vcombine.high %v4877_v33, %v4877_v33 }
 0x14e   : > { %2955 = vmatprep.subr.bf16.mxu1 %v3760_v38  ;;  %v3378_v38 = vcombine.high %v4880_v34, %v4880_v34 }
 0x150   : > { %2915 = vmatpush2.bf16.msra.mxu0 %v3762_v39  ;;  %v3848_v39 = vld [vmem:[%s4779_s5 + $0x204] ss:$8 sps:$4 sm:$0xff]  }
 0x151   : > { %2956 = vmatpush2.bf16.msra.mxu1 %v3763_v40  ;;  %2916 = vmatprep.subr.bf16.mxu0 %v3764_v41  ;;  %v3851_v40 = vld [vmem:[%s4779_s5 + $0x304] ss:$8 sps:$4 sm:$0xff]   ;;  %v3846_v41 = vld [vmem:[%s4779_s5 + $0x200] ss:$8 sps:$4 sm:$0xff]  }
 0x152   : > { %2957 = vmatprep.subr.bf16.mxu1 %v3766_v42  ;;  %v3849_v42 = vld [vmem:[%s4779_s5 + $0x300] ss:$8 sps:$4 sm:$0xff]  }
 0x154   : > { %2917 = vmatpush2.bf16.msra.mxu0 %v3768_v43  ;;  %v3854_v43 = vld [vmem:[%s4779_s5 + $0x2f4] ss:$8 sps:$4 sm:$0xff]  }
 0x155   : > { %2958 = vmatpush2.bf16.msra.mxu1 %v3769_v44  ;;  %2918 = vmatprep.subr.bf16.mxu0 %v3770_v45  ;;  %v3857_v44 = vld [vmem:[%s4779_s5 + $0x3f4] ss:$8 sps:$4 sm:$0xff]   ;;  %v3852_v45 = vld [vmem:[%s4779_s5 + $0x2f0] ss:$8 sps:$4 sm:$0xff]  }
 0x156   : > { %2959 = vmatprep.subr.bf16.mxu1 %v3772_v46  ;;  %v3855_v46 = vld [vmem:[%s4779_s5 + $0x3f0] ss:$8 sps:$4 sm:$0xff]  }
 0x158   : > { %2919 = vmatpush2.bf16.msra.mxu0 %v3774_v50  ;;  %v3861_v50 = vld [vmem:[%s4779_s5 + $0x3e0] ss:$8 sps:$4 sm:$0xff]  }
 0x159   : > { %2960 = vmatpush2.bf16.msra.mxu1 %v3775_v51  ;;  %2920 = vmatprep.subr.bf16.mxu0 %v3776_v53  ;;  %v3866_v51 = vld [vmem:[%s4779_s5 + $0x2d4] ss:$8 sps:$4 sm:$0xff]   ;;  %v3864_v53 = vld [vmem:[%s4779_s5 + $0x2d0] ss:$8 sps:$4 sm:$0xff]  }
 0x15a   : > { %2961 = vmatprep.subr.bf16.mxu1 %v3778_v54  ;;  %v3867_v54 = vld [vmem:[%s4779_s5 + $0x3d0] ss:$8 sps:$4 sm:$0xff]  }
 0x15c   : > { %2921 = vmatpush2.bf16.msra.mxu0 %v3780_v55  ;;  %v3872_v55 = vld [vmem:[%s4779_s5 + $0x2c4] ss:$8 sps:$4 sm:$0xff]  }
 0x15d   : > { %2962 = vmatpush2.bf16.msra.mxu1 %v3781_v56  ;;  %2922 = vmatprep.subr.bf16.mxu0 %v3782_v57  ;;  %v3875_v56 = vld [vmem:[%s4779_s5 + $0x3c4] ss:$8 sps:$4 sm:$0xff]   ;;  %v3870_v57 = vld [vmem:[%s4779_s5 + $0x2c0] ss:$8 sps:$4 sm:$0xff]  }
 0x15e   : > { %2963 = vmatprep.subr.bf16.mxu1 %v3784_v58  ;;  %v3873_v58 = vld [vmem:[%s4779_s5 + $0x3c0] ss:$8 sps:$4 sm:$0xff]  }
 0x160   : > { %2923 = vmatpush2.bf16.msra.mxu0 %v3786_v59  ;;  %v3878_v59 = vld [vmem:[%s4779_s5 + $0x2b4] ss:$8 sps:$4 sm:$0xff]  }
 0x161   : > { %2964 = vmatpush2.bf16.msra.mxu1 %v3787_v60  ;;  %2924 = vmatprep.subr.bf16.mxu0 %v3788_v61  ;;  %v3881_v60 = vld [vmem:[%s4779_s5 + $0x3b4] ss:$8 sps:$4 sm:$0xff]   ;;  %v3876_v61 = vld [vmem:[%s4779_s5 + $0x2b0] ss:$8 sps:$4 sm:$0xff]  }
 0x162   : > { %2965 = vmatprep.subr.bf16.mxu1 %v3790_v62  ;;  %v3879_v62 = vld [vmem:[%s4779_s5 + $0x3b0] ss:$8 sps:$4 sm:$0xff]  }
 0x164   : > { %2925 = vmatpush2.bf16.msra.mxu0 %v3792_v63  ;;  %v3884_v63 = vld [vmem:[%s4779_s5 + $0x2a4] ss:$8 sps:$4 sm:$0xff]  }
 0x165   : > { %2966 = vmatpush2.bf16.msra.mxu1 %v3793_v0  ;;  %2926 = vmatprep.subr.bf16.mxu0 %v3794_v1  ;;  %v3887_v0 = vld [vmem:[%s4779_s5 + $0x3a4] ss:$8 sps:$4 sm:$0xff]   ;;  %v3882_v1 = vld [vmem:[%s4779_s5 + $0x2a0] ss:$8 sps:$4 sm:$0xff]  }
 0x166   : > { %2967 = vmatprep.subr.bf16.mxu1 %v3796_v2  ;;  %v3885_v2 = vld [vmem:[%s4779_s5 + $0x3a0] ss:$8 sps:$4 sm:$0xff]  }
 0x168   : > { %2927 = vmatpush2.bf16.msra.mxu0 %v3798_v3  ;;  %v3890_v3 = vld [vmem:[%s4779_s5 + $0x294] ss:$8 sps:$4 sm:$0xff]  }
 0x169   : > { %2968 = vmatpush2.bf16.msra.mxu1 %v3799_v4  ;;  %2978 = vmatprep.subr.bf16.mxu0 %v3806_v5  ;;  %v3893_v4 = vld [vmem:[%s4779_s5 + $0x394] ss:$8 sps:$4 sm:$0xff]   ;;  %v3888_v5 = vld [vmem:[%s4779_s5 + $0x290] ss:$8 sps:$4 sm:$0xff]  }
 0x16a   : > { %3019 = vmatprep.subr.bf16.mxu1 %v3809_v6  ;;  %v3891_v6 = vld [vmem:[%s4779_s5 + $0x390] ss:$8 sps:$4 sm:$0xff]  }
 0x16b   : > { %2929 = vmatmul.mubr.bf16.vlgmr.msra.gmra.mxu0 %v3371_v7  ;;  %v3896_v7 = vld [vmem:[%s4779_s5 + $0x284] ss:$8 sps:$4 sm:$0xff]  }
 0x16c   : > { %2970 = vmatmul.mubr.bf16.vlgmr.msra.gmra.mxu1 %v3373_v8  ;;  %2979 = vmatpush1.bf16.msra.mxu0 %v3804_v9  ;;  %v3899_v8 = vld [vmem:[%s4779_s5 + $0x384] ss:$8 sps:$4 sm:$0xff]   ;;  %v3894_v9 = vld [vmem:[%s4779_s5 + $0x280] ss:$8 sps:$4 sm:$0xff]  }
 0x16d   : > { %3020 = vmatpush1.bf16.msra.mxu1 %v3807_v10  ;;  %2980 = vmatprep.subr.bf16.mxu0 %v3812_v11  ;;  %v3897_v10 = vld [vmem:[%s4779_s5 + $0x380] ss:$8 sps:$4 sm:$0xff]   ;;  %v3906_v11 = vld [vmem:[%s4779_s5 + $0x474] ss:$8 sps:$4 sm:$0xff]  }
 0x16e   : > { %3021 = vmatprep.subr.bf16.mxu1 %v3815_v12  ;;  %3010 = vmatprep.mubr.bf16.mxu0 %v3376_v37  ;;  %v3909_v12 = vld [vmem:[%s4779_s5 + $0x574] ss:$8 sps:$4 sm:$0xff]   ;;  %v3936_v37 = vld [vmem:[%s4779_s5 + $0x424] ss:$8 sps:$4 sm:$0xff]  }
 0x16f   : > { %3051 = vmatprep.mubr.bf16.mxu1 %v3378_v38  ;;  %v3939_v38 = vld [vmem:[%s4779_s5 + $0x524] ss:$8 sps:$4 sm:$0xff]  }
 0x170   : > { %2981 = vmatpush1.bf16.msra.mxu0 %v3810_v13  ;;  %v3375_v13 = vcombine.low %v4877_v33, %v4877_v33  ;;  %v3930_v33 = vld [vmem:[%s4779_s5 + $0x434] ss:$8 sps:$4 sm:$0xff]  }
 0x171   : > { %3022 = vmatpush1.bf16.msra.mxu1 %v3813_v14  ;;  %2982 = vmatprep.subr.bf16.mxu0 %v3818_v15  ;;  %v3377_v14 = vcombine.low %v4880_v34, %v4880_v34  ;;  %v3904_v15 = vld [vmem:[%s4779_s5 + $0x470] ss:$8 sps:$4 sm:$0xff]   ;;  %v3933_v34 = vld [vmem:[%s4779_s5 + $0x534] ss:$8 sps:$4 sm:$0xff]  }
 0x172   : > { %3023 = vmatprep.subr.bf16.mxu1 %v3821_v16  ;;  %v3907_v16 = vld [vmem:[%s4779_s5 + $0x570] ss:$8 sps:$4 sm:$0xff]  }
 0x174   : > { %2983 = vmatpush1.bf16.msra.mxu0 %v3816_v17  ;;  %v3912_v17 = vld [vmem:[%s4779_s5 + $0x464] ss:$8 sps:$4 sm:$0xff]  }
 0x175   : > { %3024 = vmatpush1.bf16.msra.mxu1 %v3819_v18  ;;  %2984 = vmatprep.subr.bf16.mxu0 %v3824_v19  ;;  %v3915_v18 = vld [vmem:[%s4779_s5 + $0x564] ss:$8 sps:$4 sm:$0xff]  }
 0x176   : > { %3025 = vmatprep.subr.bf16.mxu1 %v3827_v20  ;;  %v4935_v19 = vld [vmem:[%s4765_s26 + $0x20] sm:$0xff]  ;;  %v4938_v20 = vld [vmem:[%s4765_s26 + $0x28] sm:$0xff] }
 0x178   : > { %2985 = vmatpush1.bf16.msra.mxu0 %v3822_v21  ;;  %v3380_v21 = vcombine.high %v4935_v19, %v4935_v19 }
 0x179   : > { %3026 = vmatpush1.bf16.msra.mxu1 %v3825_v22  ;;  %2986 = vmatprep.subr.bf16.mxu0 %v3830_v23  ;;  %v3382_v22 = vcombine.high %v4938_v20, %v4938_v20  ;;  %v3910_v23 = vld [vmem:[%s4779_s5 + $0x460] ss:$8 sps:$4 sm:$0xff]  }
 0x17a   : > { %3027 = vmatprep.subr.bf16.mxu1 %v3833_v24  ;;  %v3913_v24 = vld [vmem:[%s4779_s5 + $0x560] ss:$8 sps:$4 sm:$0xff]  }
 0x17c   : > { %2987 = vmatpush1.bf16.msra.mxu0 %v3828_v25  ;;  %v3918_v25 = vld [vmem:[%s4779_s5 + $0x454] ss:$8 sps:$4 sm:$0xff]  }
 0x17d   : > { %3028 = vmatpush1.bf16.msra.mxu1 %v3831_v26  ;;  %2988 = vmatprep.subr.bf16.mxu0 %v3836_v27  ;;  %v3921_v26 = vld [vmem:[%s4779_s5 + $0x554] ss:$8 sps:$4 sm:$0xff]   ;;  %v3916_v27 = vld [vmem:[%s4779_s5 + $0x450] ss:$8 sps:$4 sm:$0xff]  }
 0x17e   : > { %3029 = vmatprep.subr.bf16.mxu1 %v3839_v28  ;;  %v3919_v28 = vld [vmem:[%s4779_s5 + $0x550] ss:$8 sps:$4 sm:$0xff]  }
 0x180   : > { %2989 = vmatpush1.bf16.msra.mxu0 %v3834_v29  ;;  %v3924_v29 = vld [vmem:[%s4779_s5 + $0x444] ss:$8 sps:$4 sm:$0xff]  }
 0x181   : > { %3030 = vmatpush1.bf16.msra.mxu1 %v3837_v30  ;;  %2990 = vmatprep.subr.bf16.mxu0 %v3842_v31  ;;  %v3927_v30 = vld [vmem:[%s4779_s5 + $0x544] ss:$8 sps:$4 sm:$0xff]   ;;  %v3922_v31 = vld [vmem:[%s4779_s5 + $0x440] ss:$8 sps:$4 sm:$0xff]  }
 0x182   : > { %3031 = vmatprep.subr.bf16.mxu1 %v3845_v32  ;;  %v3925_v32 = vld [vmem:[%s4779_s5 + $0x540] ss:$8 sps:$4 sm:$0xff]  }
 0x184   : > { %2991 = vmatpush1.bf16.msra.mxu0 %v3840_v35  ;;  %v3928_v35 = vld [vmem:[%s4779_s5 + $0x430] ss:$8 sps:$4 sm:$0xff]  }
 0x185   : > { %3032 = vmatpush1.bf16.msra.mxu1 %v3843_v36  ;;  %2992 = vmatprep.subr.bf16.mxu0 %v3848_v39  ;;  %v3931_v36 = vld [vmem:[%s4779_s5 + $0x530] ss:$8 sps:$4 sm:$0xff]   ;;  %v3934_v39 = vld [vmem:[%s4779_s5 + $0x420] ss:$8 sps:$4 sm:$0xff]  }
 0x186   : > { %3033 = vmatprep.subr.bf16.mxu1 %v3851_v40  ;;  %v3937_v40 = vld [vmem:[%s4779_s5 + $0x520] ss:$8 sps:$4 sm:$0xff]  }
 0x188   : > { %2993 = vmatpush1.bf16.msra.mxu0 %v3846_v41  ;;  %v3942_v41 = vld [vmem:[%s4779_s5 + $0x414] ss:$8 sps:$4 sm:$0xff]  }
 0x189   : > { %3034 = vmatpush1.bf16.msra.mxu1 %v3849_v42  ;;  %2994 = vmatprep.subr.bf16.mxu0 %v3854_v43  ;;  %v3945_v42 = vld [vmem:[%s4779_s5 + $0x514] ss:$8 sps:$4 sm:$0xff]   ;;  %v3940_v43 = vld [vmem:[%s4779_s5 + $0x410] ss:$8 sps:$4 sm:$0xff]  }
 0x18a   : > { %3035 = vmatprep.subr.bf16.mxu1 %v3857_v44  ;;  %v3943_v44 = vld [vmem:[%s4779_s5 + $0x510] ss:$8 sps:$4 sm:$0xff]  }
 0x18c   : > { %2995 = vmatpush2.bf16.msra.mxu0 %v3852_v45  ;;  %v3948_v45 = vld [vmem:[%s4779_s5 + $0x404] ss:$8 sps:$4 sm:$0xff]  }
 0x18d   : > { %3036 = vmatpush2.bf16.msra.mxu1 %v3855_v46  ;;  %2996 = vmatprep.subr.bf16.mxu0 %v3860_v47  ;;  %v3951_v46 = vld [vmem:[%s4779_s5 + $0x504] ss:$8 sps:$4 sm:$0xff]   ;;  %v3946_v47 = vld [vmem:[%s4779_s5 + $0x400] ss:$8 sps:$4 sm:$0xff]  }
 0x18e   : > { %3037 = vmatprep.subr.bf16.mxu1 %v3863_v48  ;;  %v3949_v48 = vld [vmem:[%s4779_s5 + $0x500] ss:$8 sps:$4 sm:$0xff]  }
 0x190   : > { %2997 = vmatpush2.bf16.msra.mxu0 %v3858_v49  ;;  %v3954_v49 = vld [vmem:[%s4779_s5 + $0x4f4] ss:$8 sps:$4 sm:$0xff]  }
 0x191   : > { %3038 = vmatpush2.bf16.msra.mxu1 %v3861_v50  ;;  %2998 = vmatprep.subr.bf16.mxu0 %v3866_v51  ;;  %v3957_v50 = vld [vmem:[%s4779_s5 + $0x5f4] ss:$8 sps:$4 sm:$0xff]   ;;  %v3952_v51 = vld [vmem:[%s4779_s5 + $0x4f0] ss:$8 sps:$4 sm:$0xff]  }
 0x192   : > { %3039 = vmatprep.subr.bf16.mxu1 %v3869_v52  ;;  %v3955_v52 = vld [vmem:[%s4779_s5 + $0x5f0] ss:$8 sps:$4 sm:$0xff]  }
 0x194   : > { %2999 = vmatpush2.bf16.msra.mxu0 %v3864_v53  ;;  %v3960_v53 = vld [vmem:[%s4779_s5 + $0x4e4] ss:$8 sps:$4 sm:$0xff]  }
 0x195   : > { %3040 = vmatpush2.bf16.msra.mxu1 %v3867_v54  ;;  %3000 = vmatprep.subr.bf16.mxu0 %v3872_v55  ;;  %v3963_v54 = vld [vmem:[%s4779_s5 + $0x5e4] ss:$8 sps:$4 sm:$0xff]   ;;  %v3958_v55 = vld [vmem:[%s4779_s5 + $0x4e0] ss:$8 sps:$4 sm:$0xff]  }
 0x196   : > { %3041 = vmatprep.subr.bf16.mxu1 %v3875_v56  ;;  %v3961_v56 = vld [vmem:[%s4779_s5 + $0x5e0] ss:$8 sps:$4 sm:$0xff]  }
 0x198   : > { %3001 = vmatpush2.bf16.msra.mxu0 %v3870_v57  ;;  %v3966_v57 = vld [vmem:[%s4779_s5 + $0x4d4] ss:$8 sps:$4 sm:$0xff]  }
 0x199   : > { %3042 = vmatpush2.bf16.msra.mxu1 %v3873_v58  ;;  %3002 = vmatprep.subr.bf16.mxu0 %v3878_v59  ;;  %v3969_v58 = vld [vmem:[%s4779_s5 + $0x5d4] ss:$8 sps:$4 sm:$0xff]   ;;  %v3964_v59 = vld [vmem:[%s4779_s5 + $0x4d0] ss:$8 sps:$4 sm:$0xff]  }
 0x19a   : > { %3043 = vmatprep.subr.bf16.mxu1 %v3881_v60  ;;  %v3967_v60 = vld [vmem:[%s4779_s5 + $0x5d0] ss:$8 sps:$4 sm:$0xff]  }
 0x19c   : > { %3003 = vmatpush2.bf16.msra.mxu0 %v3876_v61  ;;  %v3972_v61 = vld [vmem:[%s4779_s5 + $0x4c4] ss:$8 sps:$4 sm:$0xff]  }
 0x19d   : > { %3044 = vmatpush2.bf16.msra.mxu1 %v3879_v62  ;;  %3004 = vmatprep.subr.bf16.mxu0 %v3884_v63  ;;  %v3975_v62 = vld [vmem:[%s4779_s5 + $0x5c4] ss:$8 sps:$4 sm:$0xff]   ;;  %v3970_v63 = vld [vmem:[%s4779_s5 + $0x4c0] ss:$8 sps:$4 sm:$0xff]  }
 0x19e   : > { %3045 = vmatprep.subr.bf16.mxu1 %v3887_v0  ;;  %v3973_v0 = vld [vmem:[%s4779_s5 + $0x5c0] ss:$8 sps:$4 sm:$0xff]  }
 0x1a0   : > { %3005 = vmatpush2.bf16.msra.mxu0 %v3882_v1  ;;  %v3978_v1 = vld [vmem:[%s4779_s5 + $0x4b4] ss:$8 sps:$4 sm:$0xff]  }
 0x1a1   : > { %3046 = vmatpush2.bf16.msra.mxu1 %v3885_v2  ;;  %3006 = vmatprep.subr.bf16.mxu0 %v3890_v3  ;;  %v3981_v2 = vld [vmem:[%s4779_s5 + $0x5b4] ss:$8 sps:$4 sm:$0xff]   ;;  %v3976_v3 = vld [vmem:[%s4779_s5 + $0x4b0] ss:$8 sps:$4 sm:$0xff]  }
 0x1a2   : > { %3047 = vmatprep.subr.bf16.mxu1 %v3893_v4  ;;  %v3979_v4 = vld [vmem:[%s4779_s5 + $0x5b0] ss:$8 sps:$4 sm:$0xff]  }
 0x1a4   : > { %3007 = vmatpush2.bf16.msra.mxu0 %v3888_v5  ;;  %v3984_v5 = vld [vmem:[%s4779_s5 + $0x4a4] ss:$8 sps:$4 sm:$0xff]  }
 0x1a5   : > { %3048 = vmatpush2.bf16.msra.mxu1 %v3891_v6  ;;  %3008 = vmatprep.subr.bf16.mxu0 %v3896_v7  ;;  %v3987_v6 = vld [vmem:[%s4779_s5 + $0x5a4] ss:$8 sps:$4 sm:$0xff]   ;;  %v3982_v7 = vld [vmem:[%s4779_s5 + $0x4a0] ss:$8 sps:$4 sm:$0xff]  }
 0x1a6   : > { %3049 = vmatprep.subr.bf16.mxu1 %v3899_v8  ;;  %v3985_v8 = vld [vmem:[%s4779_s5 + $0x5a0] ss:$8 sps:$4 sm:$0xff]  }
 0x1a8   : > { %3009 = vmatpush2.bf16.msra.mxu0 %v3894_v9  ;;  %v3990_v9 = vld [vmem:[%s4779_s5 + $0x494] ss:$8 sps:$4 sm:$0xff]  }
 0x1a9   : > { %3050 = vmatpush2.bf16.msra.mxu1 %v3897_v10  ;;  %3060 = vmatprep.subr.bf16.mxu0 %v3906_v11  ;;  %v3993_v10 = vld [vmem:[%s4779_s5 + $0x594] ss:$8 sps:$4 sm:$0xff]   ;;  %v3988_v11 = vld [vmem:[%s4779_s5 + $0x490] ss:$8 sps:$4 sm:$0xff]  }
 0x1aa   : > { %3101 = vmatprep.subr.bf16.mxu1 %v3909_v12  ;;  %v3991_v12 = vld [vmem:[%s4779_s5 + $0x590] ss:$8 sps:$4 sm:$0xff]  }
 0x1ab   : > { %3011 = vmatmul.mubr.bf16.vlgmr.msra.gmra.mxu0 %v3375_v13  ;;  %v3996_v13 = vld [vmem:[%s4779_s5 + $0x484] ss:$8 sps:$4 sm:$0xff]  }
 0x1ac   : > { %3052 = vmatmul.mubr.bf16.vlgmr.msra.gmra.mxu1 %v3377_v14  ;;  %3061 = vmatpush1.bf16.msra.mxu0 %v3904_v15  ;;  %v3999_v14 = vld [vmem:[%s4779_s5 + $0x584] ss:$8 sps:$4 sm:$0xff]   ;;  %v3994_v15 = vld [vmem:[%s4779_s5 + $0x480] ss:$8 sps:$4 sm:$0xff]  }
 0x1ad   : > { %3102 = vmatpush1.bf16.msra.mxu1 %v3907_v16  ;;  %3062 = vmatprep.subr.bf16.mxu0 %v3912_v17  ;;  %v3997_v16 = vld [vmem:[%s4779_s5 + $0x580] ss:$8 sps:$4 sm:$0xff]   ;;  %v4006_v17 = vld [vmem:[%s4779_s5 + $0x674] ss:$8 sps:$4 sm:$0xff]  }
 0x1ae   : > { %3103 = vmatprep.subr.bf16.mxu1 %v3915_v18  ;;  %3092 = vmatprep.mubr.bf16.mxu0 %v3380_v21  ;;  %v4009_v18 = vld [vmem:[%s4779_s5 + $0x774] ss:$8 sps:$4 sm:$0xff]   ;;  %v3379_v21 = vcombine.low %v4935_v19, %v4935_v19 }
 0x1af   : > { %3133 = vmatprep.mubr.bf16.mxu1 %v3382_v22  ;;  %v3381_v22 = vcombine.low %v4938_v20, %v4938_v20 }
 0x1b0   : > { %3063 = vmatpush1.bf16.msra.mxu0 %v3910_v23  ;;  %v5009_v23 = vld [vmem:[%s4765_s26 + $0x30] sm:$0xff] }
 0x1b1   : > { %3104 = vmatpush1.bf16.msra.mxu1 %v3913_v24  ;;  %3064 = vmatprep.subr.bf16.mxu0 %v3918_v25  ;;  %v5012_v24 = vld [vmem:[%s4765_s26 + $0x38] sm:$0xff]  ;;  %v3384_v19 = vcombine.high %v5009_v23, %v5009_v23 }
 0x1b2   : > { %3105 = vmatprep.subr.bf16.mxu1 %v3921_v26  ;;  %v4004_v25 = vld [vmem:[%s4779_s5 + $0x670] ss:$8 sps:$4 sm:$0xff]   ;;  %v3386_v20 = vcombine.high %v5012_v24, %v5012_v24 }
 0x1b3   : > { %v4007_v26 = vld [vmem:[%s4779_s5 + $0x770] ss:$8 sps:$4 sm:$0xff]  }
 0x1b4   : > { %3065 = vmatpush1.bf16.msra.mxu0 %v3916_v27  ;;  %v4012_v27 = vld [vmem:[%s4779_s5 + $0x664] ss:$8 sps:$4 sm:$0xff]  }
 0x1b5   : > { %3106 = vmatpush1.bf16.msra.mxu1 %v3919_v28  ;;  %3066 = vmatprep.subr.bf16.mxu0 %v3924_v29  ;;  %v4015_v28 = vld [vmem:[%s4779_s5 + $0x764] ss:$8 sps:$4 sm:$0xff]   ;;  %v4010_v29 = vld [vmem:[%s4779_s5 + $0x660] ss:$8 sps:$4 sm:$0xff]  }
 0x1b6   : > { %3107 = vmatprep.subr.bf16.mxu1 %v3927_v30  ;;  %v4013_v30 = vld [vmem:[%s4779_s5 + $0x760] ss:$8 sps:$4 sm:$0xff]  }
 0x1b8   : > { %3067 = vmatpush1.bf16.msra.mxu0 %v3922_v31  ;;  %v4018_v31 = vld [vmem:[%s4779_s5 + $0x654] ss:$8 sps:$4 sm:$0xff]  }
 0x1b9   : > { %3108 = vmatpush1.bf16.msra.mxu1 %v3925_v32  ;;  %3068 = vmatprep.subr.bf16.mxu0 %v3930_v33  ;;  %v4021_v32 = vld [vmem:[%s4779_s5 + $0x754] ss:$8 sps:$4 sm:$0xff]   ;;  %v4016_v33 = vld [vmem:[%s4779_s5 + $0x650] ss:$8 sps:$4 sm:$0xff]  }
 0x1ba   : > { %3109 = vmatprep.subr.bf16.mxu1 %v3933_v34  ;;  %v4019_v34 = vld [vmem:[%s4779_s5 + $0x750] ss:$8 sps:$4 sm:$0xff]  }
 0x1bc   : > { %3069 = vmatpush1.bf16.msra.mxu0 %v3928_v35  ;;  %v4024_v35 = vld [vmem:[%s4779_s5 + $0x644] ss:$8 sps:$4 sm:$0xff]  }
 0x1bd   : > { %3110 = vmatpush1.bf16.msra.mxu1 %v3931_v36  ;;  %3070 = vmatprep.subr.bf16.mxu0 %v3936_v37  ;;  %v4027_v36 = vld [vmem:[%s4779_s5 + $0x744] ss:$8 sps:$4 sm:$0xff]   ;;  %v4022_v37 = vld [vmem:[%s4779_s5 + $0x640] ss:$8 sps:$4 sm:$0xff]  }
 0x1be   : > { %3111 = vmatprep.subr.bf16.mxu1 %v3939_v38  ;;  %v4025_v38 = vld [vmem:[%s4779_s5 + $0x740] ss:$8 sps:$4 sm:$0xff]  }
 0x1c0   : > { %3071 = vmatpush1.bf16.msra.mxu0 %v3934_v39  ;;  %v4030_v39 = vld [vmem:[%s4779_s5 + $0x634] ss:$8 sps:$4 sm:$0xff]  }
 0x1c1   : > { %3112 = vmatpush1.bf16.msra.mxu1 %v3937_v40  ;;  %3072 = vmatprep.subr.bf16.mxu0 %v3942_v41  ;;  %v4033_v40 = vld [vmem:[%s4779_s5 + $0x734] ss:$8 sps:$4 sm:$0xff]   ;;  %v4028_v41 = vld [vmem:[%s4779_s5 + $0x630] ss:$8 sps:$4 sm:$0xff]  }
 0x1c2   : > { %3113 = vmatprep.subr.bf16.mxu1 %v3945_v42  ;;  %v4031_v42 = vld [vmem:[%s4779_s5 + $0x730] ss:$8 sps:$4 sm:$0xff]  }
 0x1c4   : > { %3073 = vmatpush1.bf16.msra.mxu0 %v3940_v43  ;;  %v4036_v43 = vld [vmem:[%s4779_s5 + $0x624] ss:$8 sps:$4 sm:$0xff]  }
 0x1c5   : > { %3114 = vmatpush1.bf16.msra.mxu1 %v3943_v44  ;;  %3074 = vmatprep.subr.bf16.mxu0 %v3948_v45  ;;  %v4039_v44 = vld [vmem:[%s4779_s5 + $0x724] ss:$8 sps:$4 sm:$0xff]   ;;  %v4034_v45 = vld [vmem:[%s4779_s5 + $0x620] ss:$8 sps:$4 sm:$0xff]  }
 0x1c6   : > { %3115 = vmatprep.subr.bf16.mxu1 %v3951_v46  ;;  %v4037_v46 = vld [vmem:[%s4779_s5 + $0x720] ss:$8 sps:$4 sm:$0xff]  }
 0x1c8   : > { %3075 = vmatpush1.bf16.msra.mxu0 %v3946_v47  ;;  %v4042_v47 = vld [vmem:[%s4779_s5 + $0x614] ss:$8 sps:$4 sm:$0xff]  }
 0x1c9   : > { %3116 = vmatpush1.bf16.msra.mxu1 %v3949_v48  ;;  %3076 = vmatprep.subr.bf16.mxu0 %v3954_v49  ;;  %v4045_v48 = vld [vmem:[%s4779_s5 + $0x714] ss:$8 sps:$4 sm:$0xff]   ;;  %v4040_v49 = vld [vmem:[%s4779_s5 + $0x610] ss:$8 sps:$4 sm:$0xff]  }
 0x1ca   : > { %3117 = vmatprep.subr.bf16.mxu1 %v3957_v50  ;;  %v4043_v50 = vld [vmem:[%s4779_s5 + $0x710] ss:$8 sps:$4 sm:$0xff]  }
 0x1cc   : > { %3077 = vmatpush2.bf16.msra.mxu0 %v3952_v51  ;;  %v4048_v51 = vld [vmem:[%s4779_s5 + $0x604] ss:$8 sps:$4 sm:$0xff]  }
 0x1cd   : > { %3118 = vmatpush2.bf16.msra.mxu1 %v3955_v52  ;;  %3078 = vmatprep.subr.bf16.mxu0 %v3960_v53  ;;  %v4051_v52 = vld [vmem:[%s4779_s5 + $0x704] ss:$8 sps:$4 sm:$0xff]   ;;  %v4046_v53 = vld [vmem:[%s4779_s5 + $0x600] ss:$8 sps:$4 sm:$0xff]  }
 0x1ce   : > { %3119 = vmatprep.subr.bf16.mxu1 %v3963_v54  ;;  %v4049_v54 = vld [vmem:[%s4779_s5 + $0x700] ss:$8 sps:$4 sm:$0xff]  }
 0x1d0   : > { %3079 = vmatpush2.bf16.msra.mxu0 %v3958_v55  ;;  %v4054_v55 = vld [vmem:[%s4779_s5 + $0x6f4] ss:$8 sps:$4 sm:$0xff]  }
 0x1d1   : > { %3120 = vmatpush2.bf16.msra.mxu1 %v3961_v56  ;;  %3080 = vmatprep.subr.bf16.mxu0 %v3966_v57  ;;  %v4057_v56 = vld [vmem:[%s4779_s5 + $0x7f4] ss:$8 sps:$4 sm:$0xff]   ;;  %v4052_v57 = vld [vmem:[%s4779_s5 + $0x6f0] ss:$8 sps:$4 sm:$0xff]  }
 0x1d2   : > { %3121 = vmatprep.subr.bf16.mxu1 %v3969_v58  ;;  %v4055_v58 = vld [vmem:[%s4779_s5 + $0x7f0] ss:$8 sps:$4 sm:$0xff]  }
 0x1d4   : > { %3081 = vmatpush2.bf16.msra.mxu0 %v3964_v59  ;;  %v4060_v59 = vld [vmem:[%s4779_s5 + $0x6e4] ss:$8 sps:$4 sm:$0xff]  }
 0x1d5   : > { %3122 = vmatpush2.bf16.msra.mxu1 %v3967_v60  ;;  %3082 = vmatprep.subr.bf16.mxu0 %v3972_v61  ;;  %v4063_v60 = vld [vmem:[%s4779_s5 + $0x7e4] ss:$8 sps:$4 sm:$0xff]   ;;  %v4058_v61 = vld [vmem:[%s4779_s5 + $0x6e0] ss:$8 sps:$4 sm:$0xff]  }
 0x1d6   : > { %3123 = vmatprep.subr.bf16.mxu1 %v3975_v62  ;;  %v4061_v62 = vld [vmem:[%s4779_s5 + $0x7e0] ss:$8 sps:$4 sm:$0xff]  }
 0x1d8   : > { %3083 = vmatpush2.bf16.msra.mxu0 %v3970_v63  ;;  %v4066_v63 = vld [vmem:[%s4779_s5 + $0x6d4] ss:$8 sps:$4 sm:$0xff]  }
 0x1d9   : > { %3124 = vmatpush2.bf16.msra.mxu1 %v3973_v0  ;;  %3084 = vmatprep.subr.bf16.mxu0 %v3978_v1  ;;  %v4069_v0 = vld [vmem:[%s4779_s5 + $0x7d4] ss:$8 sps:$4 sm:$0xff]   ;;  %v4064_v1 = vld [vmem:[%s4779_s5 + $0x6d0] ss:$8 sps:$4 sm:$0xff]  }
 0x1da   : > { %3125 = vmatprep.subr.bf16.mxu1 %v3981_v2  ;;  %v4067_v2 = vld [vmem:[%s4779_s5 + $0x7d0] ss:$8 sps:$4 sm:$0xff]  }
 0x1dc   : > { %3085 = vmatpush2.bf16.msra.mxu0 %v3976_v3  ;;  %v4072_v3 = vld [vmem:[%s4779_s5 + $0x6c4] ss:$8 sps:$4 sm:$0xff]  }
 0x1dd   : > { %3126 = vmatpush2.bf16.msra.mxu1 %v3979_v4  ;;  %3086 = vmatprep.subr.bf16.mxu0 %v3984_v5  ;;  %v4075_v4 = vld [vmem:[%s4779_s5 + $0x7c4] ss:$8 sps:$4 sm:$0xff]   ;;  %v4070_v5 = vld [vmem:[%s4779_s5 + $0x6c0] ss:$8 sps:$4 sm:$0xff]  }
 0x1de   : > { %3127 = vmatprep.subr.bf16.mxu1 %v3987_v6  ;;  %v4073_v6 = vld [vmem:[%s4779_s5 + $0x7c0] ss:$8 sps:$4 sm:$0xff]  }
 0x1e0   : > { %3087 = vmatpush2.bf16.msra.mxu0 %v3982_v7  ;;  %v4078_v7 = vld [vmem:[%s4779_s5 + $0x6b4] ss:$8 sps:$4 sm:$0xff]  }
 0x1e1   : > { %3128 = vmatpush2.bf16.msra.mxu1 %v3985_v8  ;;  %3088 = vmatprep.subr.bf16.mxu0 %v3990_v9  ;;  %v4081_v8 = vld [vmem:[%s4779_s5 + $0x7b4] ss:$8 sps:$4 sm:$0xff]   ;;  %v4076_v9 = vld [vmem:[%s4779_s5 + $0x6b0] ss:$8 sps:$4 sm:$0xff]  }
 0x1e2   : > { %3129 = vmatprep.subr.bf16.mxu1 %v3993_v10  ;;  %v4079_v10 = vld [vmem:[%s4779_s5 + $0x7b0] ss:$8 sps:$4 sm:$0xff]  }
 0x1e4   : > { %3089 = vmatpush2.bf16.msra.mxu0 %v3988_v11  ;;  %v4084_v11 = vld [vmem:[%s4779_s5 + $0x6a4] ss:$8 sps:$4 sm:$0xff]  }
 0x1e5   : > { %3130 = vmatpush2.bf16.msra.mxu1 %v3991_v12  ;;  %3090 = vmatprep.subr.bf16.mxu0 %v3996_v13  ;;  %v4087_v12 = vld [vmem:[%s4779_s5 + $0x7a4] ss:$8 sps:$4 sm:$0xff]   ;;  %v4082_v13 = vld [vmem:[%s4779_s5 + $0x6a0] ss:$8 sps:$4 sm:$0xff]  }
 0x1e6   : > { %3131 = vmatprep.subr.bf16.mxu1 %v3999_v14  ;;  %v4085_v14 = vld [vmem:[%s4779_s5 + $0x7a0] ss:$8 sps:$4 sm:$0xff]  }
 0x1e8   : > { %3091 = vmatpush2.bf16.msra.mxu0 %v3994_v15  ;;  %v4090_v15 = vld [vmem:[%s4779_s5 + $0x694] ss:$8 sps:$4 sm:$0xff]  }
 0x1e9   : > { %3132 = vmatpush2.bf16.msra.mxu1 %v3997_v16  ;;  %3142 = vmatprep.subr.bf16.mxu0 %v4006_v17  ;;  %v4093_v16 = vld [vmem:[%s4779_s5 + $0x794] ss:$8 sps:$4 sm:$0xff]   ;;  %v4088_v17 = vld [vmem:[%s4779_s5 + $0x690] ss:$8 sps:$4 sm:$0xff]  }
 0x1ea   : > { %3183 = vmatprep.subr.bf16.mxu1 %v4009_v18  ;;  %v4091_v18 = vld [vmem:[%s4779_s5 + $0x790] ss:$8 sps:$4 sm:$0xff]  }
 0x1eb   : > { %3093 = vmatmul.mubr.bf16.vlgmr.msra.gmra.mxu0 %v3379_v21  ;;  %v4096_v21 = vld [vmem:[%s4779_s5 + $0x684] ss:$8 sps:$4 sm:$0xff]  }
 0x1ec   : > { %3134 = vmatmul.mubr.bf16.vlgmr.msra.gmra.mxu1 %v3381_v22  ;;  %3143 = vmatpush1.bf16.msra.mxu0 %v4004_v25  ;;  %v4099_v22 = vld [vmem:[%s4779_s5 + $0x784] ss:$8 sps:$4 sm:$0xff]   ;;  %v4094_v25 = vld [vmem:[%s4779_s5 + $0x680] ss:$8 sps:$4 sm:$0xff]  }
 0x1ed   : > { %3184 = vmatpush1.bf16.msra.mxu1 %v4007_v26  ;;  %3144 = vmatprep.subr.bf16.mxu0 %v4012_v27  ;;  %v4097_v26 = vld [vmem:[%s4779_s5 + $0x780] ss:$8 sps:$4 sm:$0xff]   ;;  %v3383_v27 = vcombine.low %v5009_v23, %v5009_v23 }
 0x1ee   : > { %3185 = vmatprep.subr.bf16.mxu1 %v4015_v28  ;;  %3174 = vmatprep.mubr.bf16.mxu0 %v3384_v19  ;;  %v3385_v28 = vcombine.low %v5012_v24, %v5012_v24 }
 0x1ef   : > { %3215 = vmatprep.mubr.bf16.mxu1 %v3386_v20 }
 0x1f0   : > { %3145 = vmatpush1.bf16.msra.mxu0 %v4010_v29 }
 0x1f1   : > { %3186 = vmatpush1.bf16.msra.mxu1 %v4013_v30  ;;  %3146 = vmatprep.subr.bf16.mxu0 %v4018_v31 }
 0x1f2   : > { %3187 = vmatprep.subr.bf16.mxu1 %v4021_v32 }
 0x1f4   : > { %3147 = vmatpush1.bf16.msra.mxu0 %v4016_v33 }
 0x1f5   : > { %3188 = vmatpush1.bf16.msra.mxu1 %v4019_v34  ;;  %3148 = vmatprep.subr.bf16.mxu0 %v4024_v35 }
 0x1f6   : > { %3189 = vmatprep.subr.bf16.mxu1 %v4027_v36 }
 0x1f8   : > { %3149 = vmatpush1.bf16.msra.mxu0 %v4022_v37 }
 0x1f9   : > { %3190 = vmatpush1.bf16.msra.mxu1 %v4025_v38  ;;  %3150 = vmatprep.subr.bf16.mxu0 %v4030_v39 }
 0x1fa   : > { %3191 = vmatprep.subr.bf16.mxu1 %v4033_v40 }
 0x1fc   : > { %3151 = vmatpush1.bf16.msra.mxu0 %v4028_v41 }
 0x1fd   : > { %3192 = vmatpush1.bf16.msra.mxu1 %v4031_v42  ;;  %3152 = vmatprep.subr.bf16.mxu0 %v4036_v43 }
 0x1fe   : > { %3193 = vmatprep.subr.bf16.mxu1 %v4039_v44 }
 0x200   : > { %3153 = vmatpush1.bf16.msra.mxu0 %v4034_v45 }
 0x201   : > { %3194 = vmatpush1.bf16.msra.mxu1 %v4037_v46  ;;  %3154 = vmatprep.subr.bf16.mxu0 %v4042_v47 }
 0x202   : > { %3195 = vmatprep.subr.bf16.mxu1 %v4045_v48 }
 0x204   : > { %3155 = vmatpush1.bf16.msra.mxu0 %v4040_v49 }
 0x205   : > { %3196 = vmatpush1.bf16.msra.mxu1 %v4043_v50  ;;  %3156 = vmatprep.subr.bf16.mxu0 %v4048_v51 }
 0x206   : > { %3197 = vmatprep.subr.bf16.mxu1 %v4051_v52 }
 0x208   : > { %3157 = vmatpush1.bf16.msra.mxu0 %v4046_v53 }
 0x209   : > { %3198 = vmatpush1.bf16.msra.mxu1 %v4049_v54  ;;  %3158 = vmatprep.subr.bf16.mxu0 %v4054_v55 }
 0x20a   : > { %3199 = vmatprep.subr.bf16.mxu1 %v4057_v56 }
 0x20c   : > { %3159 = vmatpush2.bf16.msra.mxu0 %v4052_v57 }
 0x20d   : > { %3200 = vmatpush2.bf16.msra.mxu1 %v4055_v58  ;;  %3160 = vmatprep.subr.bf16.mxu0 %v4060_v59 }
 0x20e   : > { %3201 = vmatprep.subr.bf16.mxu1 %v4063_v60 }
 0x210   : > { %3161 = vmatpush2.bf16.msra.mxu0 %v4058_v61 }
 0x211   : > { %3202 = vmatpush2.bf16.msra.mxu1 %v4061_v62  ;;  %3162 = vmatprep.subr.bf16.mxu0 %v4066_v63  ;;  %v1294_v62 = vld [vmem:[%s4777_s15] sm:$0xff] }
 0x212   : > { %3203 = vmatprep.subr.bf16.mxu1 %v4069_v0 }
 0x214   : > { %3163 = vmatpush2.bf16.msra.mxu0 %v4064_v1 }
 0x215   : > { %3204 = vmatpush2.bf16.msra.mxu1 %v4067_v2  ;;  %3164 = vmatprep.subr.bf16.mxu0 %v4072_v3  ;;  %v1295_v3 = vld [vmem:[%s4777_s15 + $0x8] sm:$0xff] }
 0x216   : > { %3205 = vmatprep.subr.bf16.mxu1 %v4075_v4 }
 0x218   : > { %3165 = vmatpush2.bf16.msra.mxu0 %v4070_v5 }
 0x219   : > { %3206 = vmatpush2.bf16.msra.mxu1 %v4073_v6  ;;  %3166 = vmatprep.subr.bf16.mxu0 %v4078_v7 }
 0x21a   : > { %3207 = vmatprep.subr.bf16.mxu1 %v4081_v8 }
 0x21c   : > { %3167 = vmatpush2.bf16.msra.mxu0 %v4076_v9 }
 0x21d   : > { %3208 = vmatpush2.bf16.msra.mxu1 %v4079_v10  ;;  %3168 = vmatprep.subr.bf16.mxu0 %v4084_v11 }
 0x21e   : > { %3209 = vmatprep.subr.bf16.mxu1 %v4087_v12 }
 0x220   : > { %3169 = vmatpush2.bf16.msra.mxu0 %v4082_v13 }
 0x221   : > { %3210 = vmatpush2.bf16.msra.mxu1 %v4085_v14  ;;  %3170 = vmatprep.subr.bf16.mxu0 %v4090_v15 }
 0x222   : > { %3211 = vmatprep.subr.bf16.mxu1 %v4093_v16 }
 0x224   : > { %3171 = vmatpush2.bf16.msra.mxu0 %v4088_v17 }
 0x225   : > { %3212 = vmatpush2.bf16.msra.mxu1 %v4091_v18  ;;  %3172 = vmatprep.subr.bf16.mxu0 %v4096_v21 }
 0x226   : > { %3213 = vmatprep.subr.bf16.mxu1 %v4099_v22 }
 0x228   : > { %3173 = vmatpush2.bf16.msra.mxu0 %v4094_v25 }
 0x229   : > { %3214 = vmatpush2.bf16.msra.mxu1 %v4097_v26 }
 0x22b   : > { %v2930_v19 = vpop.f32.mrf.mxu0  ;;  %3175 = vmatmul.mubr.bf16.vlgmr.msra.gmra.mxu0 %v3383_v27 }
 0x22c   : > { %v2971_v20 = vpop.f32.mrf.mxu1  ;;  %3216 = vmatmul.mubr.bf16.vlgmr.msra.gmra.mxu1 %v3385_v28 }
 0x22d   : > { %v2972_v29 = vadd.f32 %v2971_v20, %v2930_v19  ;;  %v2932_v30 = vpop.f32.mrf.mxu0 }
 0x22e   : > { %v2973_v31 = vpop.f32.mrf.mxu1 }
 0x22f   : > { %v2974_v32 = vadd.f32 %v2973_v31, %v2932_v30  ;;  %v2934_v33 = vpop.f32.mrf.mxu0 }
 0x230   : > { %v2975_v34 = vpop.f32.mrf.mxu1 }
 0x231   : > { %v2935_v35 = vpop.f32.mrf.mxu0 }
 0x232   : > { %v2976_v36 = vpop.f32.mrf.mxu1 }
 0x26b   : > { %v3012_v37 = vpop.f32.mrf.mxu0 }
 0x26c   : > { %v3053_v38 = vpop.f32.mrf.mxu1  ;;  %v3013_v23 = vadd.f32 %v3012_v37, %v2972_v29 }
 0x26d   : > { %v3014_v39 = vpop.f32.mrf.mxu0 }
 0x26e   : > { %v3055_v40 = vpop.f32.mrf.mxu1  ;;  %v3054_v24 = vadd.f32 %v3053_v38, %v3013_v23  ;;  %v3015_v41 = vadd.f32 %v3014_v39, %v2974_v32 }
 0x26f   : > { %v3016_v42 = vpop.f32.mrf.mxu0 }
 0x270   : > { %v3057_v43 = vpop.f32.mrf.mxu1  ;;  %v3056_v44 = vadd.f32 %v3055_v40, %v3015_v41 }
 0x271   : > { %v3017_v45 = vpop.f32.mrf.mxu0 }
 0x272   : > { %v3058_v46 = vpop.f32.mrf.mxu1 }
 0x2ab   : > { %v3094_v47 = vpop.f32.mrf.mxu0 }
 0x2ac   : > { %v3135_v48 = vpop.f32.mrf.mxu1  ;;  %v3095_v55 = vadd.f32 %v3094_v47, %v3054_v24 }
 0x2ad   : > { %v3096_v49 = vpop.f32.mrf.mxu0 }
 0x2ae   : > { %v3137_v50 = vpop.f32.mrf.mxu1  ;;  %v3097_v56 = vadd.f32 %v3096_v49, %v3056_v44  ;;  %v3136_v57 = vadd.f32 %v3135_v48, %v3095_v55 }
 0x2af   : > { %v3098_v51 = vpop.f32.mrf.mxu0 }
 0x2b0   : > { %v3139_v52 = vpop.f32.mrf.mxu1  ;;  %v3138_v60 = vadd.f32 %v3137_v50, %v3097_v56 }
 0x2b1   : > { %v3099_v53 = vpop.f32.mrf.mxu0 }
 0x2b2   : > { %v3140_v54 = vpop.f32.mrf.mxu1 }
 0x2eb   : > { %v3176_v58 = vpop.f32.mrf.mxu0 }
 0x2ec   : > { %v3217_v59 = vpop.f32.mrf.mxu1  ;;  %v3177_v61 = vadd.f32 %v3176_v58, %v3136_v57 }
 0x2ed   : > { %v3178_v63 = vpop.f32.mrf.mxu0 }
 0x2ee   : > { %v3219_v0 = vpop.f32.mrf.mxu1  ;;  %v3218_v1 = vadd.f32 %v3217_v59, %v3177_v61  ;;  %v3179_v2 = vadd.f32 %v3178_v63, %v3138_v60 }
 0x2ef   : > { %v3180_v4 = vpop.f32.mrf.mxu0 }
 0x2f0   : > { %v3221_v5 = vpop.f32.mrf.mxu1  ;;  %v3224_v6 = vadd.f32 %v3218_v1, %v1294_v62  ;;  %v3220_v7 = vadd.f32 %v3219_v0, %v3179_v2  ;;  %3231 = sbr.rel (%p3643_p13) target bundleno = 771 (0x303), region = 78 }
 0x2f1   : > { %v3181_v8 = vpop.f32.mrf.mxu0 }
 0x2f2   : > { %v3222_v9 = vpop.f32.mrf.mxu1  ;;  %v3225_v10 = vadd.f32 %v3220_v7, %v1295_v3  ;;  %3226 = vst [vmem:[%s4777_s15] sm:$0xff] %v3224_v6 }
 0x2f4   : > { %3227 = vst [vmem:[%s4777_s15 + $0x8] sm:$0xff] %v3225_v10 }
 0x2f5   : > { %v3236_v11 = vlaneseq  ;;  %v3234_v13 = vld [vmem:[%s1280_s12] sm:$0x3] }
 0x2f7   : > { %v3237_v12 = vshrl.u32 %v3236_v11, 7 }
 0x2f9   : > { %v3238_v14 = vsub.s32 0, %v3237_v12  ;;  %v3242_v15 = vsub.s32 1, %v3237_v12  ;;  %v3232_v16 = vld [vmem:[%s4777_s15] sm:$0xff] }
 0x2fb   : > { %v3233_v17 = vld [vmem:[%s4777_s15 + $0x8] sm:$0xff]  ;;  %v3239_v18 = vrot.slane %v3234_v13, %v3238_v14  ;;  %v3243_v21 = vrot.slane %v3234_v13, %v3242_v15 }
 0x2fd   : > { %v3246_v22 = vadd.f32 %v3239_v18, %v3232_v16  ;;  %v3247_v25 = vadd.f32 %v3243_v21, %v3233_v17 }
 0x2ff   : > { %vm3248_vm0 = vcmp.gt.f32.partialorder %v3246_v22, 0.0  ;;  %v3250_v26 = vmul.f32 0.2, %v3246_v22  ;;  %vm3249_vm1 = vcmp.gt.f32.partialorder %v3247_v25, 0.0  ;;  %v3251_v27 = vmul.f32 0.2, %v3247_v25 }
 0x301   : > { %v3252_v28 = vsel %vm3248_vm0, %v3246_v22, %v3250_v26  ;;  %v3253_v19 = vsel %vm3249_vm1, %v3247_v25, %v3251_v27 }
 0x302   : > { %3254 = vst [vmem:[%s4777_s15] sm:$0xff] %v3252_v28  ;;  %3255 = vst [vmem:[%s4777_s15 + $0x8] sm:$0xff] %v3253_v19 }
 0x303 PF: > { %s13_s18 = sadd.s32 1, %s4158_s18   ;;  %s5123_s12 = smov %s4138_s13 }
 0x304   : > { %p10_p0 = scmp.ge.s32.totalorder %s13_s18, 18   ;;  %s5124_s13 = smov %s4232_s25 }
 0x305   : > { %s5125_s14 = smov %s4150_s16  ;;  %s5126_s15 = smov %s4154_s17 }
 0x306   : > { %s5127_s16 = smov %s5130_s19  ;;  %s5128_s17 = smov %s5134_s20 }
 0x307   :  { %12 = sbr.rel (!%p10_p0) target bundleno = 4 (0x4), region = 119 }

</bundles_post_ra>
